<compile_context>
chip_gen: v7x
topology: tpu7x:2x2x1
jax: 0.10.0
libtpu: 0.0.40
codegen_flags: <defaults>
</compile_context>

<pallas_src>
import math
import jax
import jax.numpy as jnp
from jax.experimental import pallas as pl
from jax.experimental.pallas import tpu as pltpu


# ----------------------------- in-kernel helpers -----------------------------

def _layernorm(x, g, b, eps=1e-5):
    mean = jnp.mean(x, axis=-1, keepdims=True)
    var = jnp.mean(jnp.square(x - mean), axis=-1, keepdims=True)
    return (x - mean) * jax.lax.rsqrt(var + eps) * g + b


def _sdpa_heads(ao_scr, q_src, k_src, v_src, q_off, k_off, v_off, bias_v,
                B, H, Lq, Lk, Dh, scale, attn_ref=None):
    """Multi-head scaled-dot-product attention on batch-major 2D slabs.

    q_src has (B*Lq) rows, head h occupies columns [q_off + h*Dh, ...); k_src /
    v_src have (B*Lk) rows.  Per-head outputs are written (concatenated along the
    feature axis) into the VMEM scratch ao_scr of shape (B*Lq, H*Dh).
    If attn_ref is given, the head-averaged weights for batch b are written to
    attn_ref[0, b*Lq:(b+1)*Lq, :] (matches nn.MultiheadAttention average weights).
    bias_v: additive key bias (B, Lk) (-1e9 at padded keys) or None.
    """
    for b in range(B):
        qr0, qr1 = b * Lq, (b + 1) * Lq
        kr0, kr1 = b * Lk, (b + 1) * Lk
        bias_b = None if bias_v is None else bias_v[b:b + 1, :]
        w_sum = None
        for h in range(H):
            qh = q_src[qr0:qr1, q_off + h * Dh:q_off + (h + 1) * Dh] * scale
            kh = k_src[kr0:kr1, k_off + h * Dh:k_off + (h + 1) * Dh]
            vh = v_src[kr0:kr1, v_off + h * Dh:v_off + (h + 1) * Dh]
            s = jax.lax.dot_general(qh, kh, (((1,), (1,)), ((), ())),
                                    preferred_element_type=jnp.float32)   # (Lq, Lk)
            if bias_b is not None:
                s = s + bias_b
            m = jnp.max(s, axis=-1, keepdims=True)
            p = jnp.exp(s - m)
            p = p / jnp.sum(p, axis=-1, keepdims=True)
            oh = jnp.dot(p, vh, preferred_element_type=jnp.float32)       # (Lq, Dh)
            ao_scr[qr0:qr1, h * Dh:(h + 1) * Dh] = oh
            if attn_ref is not None:
                w_sum = p if w_sum is None else w_sum + p
        if attn_ref is not None:
            attn_ref[0, qr0:qr1, :] = w_sum * (1.0 / H)


# ------------------------------ BlockSpec helpers ------------------------------

def _const_spec(arr):
    """Full array block, same block for every grid step."""
    nd = arr.ndim
    return pl.BlockSpec(tuple(arr.shape), lambda *_: (0,) * nd)


def _layer_spec(arr):
    """Stacked-per-layer array: select layer `l` along the leading axis."""
    nd = arr.ndim
    return pl.BlockSpec((1,) + tuple(arr.shape[1:]),
                        lambda l: (l,) + (0,) * (nd - 1))


# ------------------------------ fused encoder ------------------------------

def encoder_forward(ep, pre_w, pre_b, meas2d, pos2d, bias, cfg, B, L):
    """Preprocessor + all encoder layers in ONE pallas_call (grid over layers)."""
    E, H = cfg["d_model"], cfg["n_heads"]
    n_layers = cfg["n_enc"]
    inv_norm = 1.0 / cfg["norm_factor"]
    BL = B * L
    Dh = E // H
    scale = 1.0 / math.sqrt(Dh)

    def kernel(meas_ref, prew_ref, preb_ref, pos_ref, bias_ref,
               wqk_ref, bqk_ref, wv_ref, bv_ref, wo_ref, bo_ref,
               w1_ref, b1_ref, w2_ref, b2_ref,
               g1_ref, n1_ref, g2_ref, n2_ref,
               out_ref, ao_scr):
        layer = pl.program_id(0)

        @pl.when(layer == 0)
        def _():
            # preprocessor: Linear(d_detections -> d_model) on normalized measurements
            out_ref[...] = (jnp.dot(meas_ref[...] * inv_norm, prew_ref[...],
                                    preferred_element_type=jnp.float32)
                            + preb_ref[...])

        x = out_ref[...]                       # activations resident across layers
        pos = pos_ref[...]
        bias_v = bias_ref[...]

        # self-attention: q = k = src + pos, v = src   (packed QK projection)
        q_in = x + pos
        qk = jnp.dot(q_in, wqk_ref[0], preferred_element_type=jnp.float32) + bqk_ref[0]
        v = jnp.dot(x, wv_ref[0], preferred_element_type=jnp.float32) + bv_ref[0]
        _sdpa_heads(ao_scr, qk, qk, v, 0, E, 0, bias_v, B, H, L, L, Dh, scale)
        src2 = jnp.dot(ao_scr[...], wo_ref[0], preferred_element_type=jnp.float32) + bo_ref[0]
        x = _layernorm(x + src2, g1_ref[0], n1_ref[0])

        # feed-forward (relu)
        h1 = jnp.maximum(jnp.dot(x, w1_ref[0], preferred_element_type=jnp.float32)
                         + b1_ref[0], 0.0)
        ffn = jnp.dot(h1, w2_ref[0], preferred_element_type=jnp.float32) + b2_ref[0]
        x = _layernorm(x + ffn, g2_ref[0], n2_ref[0])
        out_ref[...] = x

    names = ["wqk", "bqk", "wv", "bv", "wo", "bo",
             "w1", "b1", "w2", "b2", "g1", "n1", "g2", "n2"]
    stacked = [ep[n] for n in names]
    const_in = [meas2d, pre_w, pre_b, pos2d, bias]

    return pl.pallas_call(
        kernel,
        out_shape=jax.ShapeDtypeStruct((BL, E), jnp.float32),
        grid=(n_layers,),
        in_specs=[_const_spec(a) for a in const_in] + [_layer_spec(a) for a in stacked],
        out_specs=pl.BlockSpec((BL, E), lambda l: (0, 0)),
        scratch_shapes=[pltpu.VMEM((BL, E), jnp.float32)],
        compiler_params=pltpu.CompilerParams(dimension_semantics=("arbitrary",)),
    )(*const_in, *stacked)


# ------------------------------ fused decoder ------------------------------

def decoder_forward(dp, mem2d, pos2d, qpos2d, bias, cfg, B, L, nq):
    """All decoder layers in ONE pallas_call (grid over layers); returns hs and
    the per-layer head-averaged cross-attention weights."""
    E, H = cfg["d_model"], cfg["n_heads"]
    n_layers = cfg["n_dec"]
    Dh = E // H
    scale = 1.0 / math.sqrt(Dh)
    BQ = B * nq

    def kernel(mem_ref, pos_ref, qpos_ref, bias_ref,
               swqk_ref, sbqk_ref, swv_ref, sbv_ref, swo_ref, sbo_ref,
               cwq_ref, cbq_ref, cwk_ref, cbk_ref, cwv_ref, cbv_ref, cwo_ref, cbo_ref,
               w1_ref, b1_ref, w2_ref, b2_ref,
               g1_ref, n1_ref, g2_ref, n2_ref, g3_ref, n3_ref,
               hs_ref, attn_ref, ao_scr):
        layer = pl.program_id(0)

        @pl.when(layer == 0)
        def _():
            hs_ref[...] = jnp.zeros_like(hs_ref)     # tgt = zeros_like(query_embed)

        tgt = hs_ref[...]
        mem = mem_ref[...]
        pos = pos_ref[...]
        qpos = qpos_ref[...]
        bias_v = bias_ref[...]

        # ---- self-attention over queries (no mask, weights discarded) ----
        q_in = tgt + qpos
        qk = jnp.dot(q_in, swqk_ref[0], preferred_element_type=jnp.float32) + sbqk_ref[0]
        v = jnp.dot(tgt, swv_ref[0], preferred_element_type=jnp.float32) + sbv_ref[0]
        _sdpa_heads(ao_scr, qk, qk, v, 0, E, 0, None, B, H, nq, nq, Dh, scale)
        tgt2 = jnp.dot(ao_scr[...], swo_ref[0], preferred_element_type=jnp.float32) + sbo_ref[0]
        tgt = _layernorm(tgt + tgt2, g1_ref[0], n1_ref[0])

        # ---- cross-attention over encoder memory (key-padding mask, keep weights) ----
        qc = jnp.dot(tgt + qpos, cwq_ref[0], preferred_element_type=jnp.float32) + cbq_ref[0]
        kc = jnp.dot(mem + pos, cwk_ref[0], preferred_element_type=jnp.float32) + cbk_ref[0]
        vc = jnp.dot(mem, cwv_ref[0], preferred_element_type=jnp.float32) + cbv_ref[0]
        _sdpa_heads(ao_scr, qc, kc, vc, 0, 0, 0, bias_v, B, H, nq, L, Dh, scale,
                    attn_ref=attn_ref)
        tgt2 = jnp.dot(ao_scr[...], cwo_ref[0], preferred_element_type=jnp.float32) + cbo_ref[0]
        tgt = _layernorm(tgt + tgt2, g2_ref[0], n2_ref[0])

        # ---- feed-forward (relu) ----
        h1 = jnp.maximum(jnp.dot(tgt, w1_ref[0], preferred_element_type=jnp.float32)
                         + b1_ref[0], 0.0)
        ffn = jnp.dot(h1, w2_ref[0], preferred_element_type=jnp.float32) + b2_ref[0]
        tgt = _layernorm(tgt + ffn, g3_ref[0], n3_ref[0])
        hs_ref[...] = tgt

    names = ["swqk", "sbqk", "swv", "sbv", "swo", "sbo",
             "cwq", "cbq", "cwk", "cbk", "cwv", "cbv", "cwo", "cbo",
             "w1", "b1", "w2", "b2",
             "g1", "n1", "g2", "n2", "g3", "n3"]
    stacked = [dp[n] for n in names]
    const_in = [mem2d, pos2d, qpos2d, bias]

    return pl.pallas_call(
        kernel,
        out_shape=(jax.ShapeDtypeStruct((BQ, E), jnp.float32),
                   jax.ShapeDtypeStruct((n_layers, BQ, L), jnp.float32)),
        grid=(n_layers,),
        in_specs=[_const_spec(a) for a in const_in] + [_layer_spec(a) for a in stacked],
        out_specs=(pl.BlockSpec((BQ, E), lambda l: (0, 0)),
                   pl.BlockSpec((1, BQ, L), lambda l: (l, 0, 0))),
        scratch_shapes=[pltpu.VMEM((BQ, E), jnp.float32)],
        compiler_params=pltpu.CompilerParams(dimension_semantics=("arbitrary",)),
    )(*const_in, *stacked)


# ------------------------------ fused heads ------------------------------

def heads_forward(params, hs2d, qpos2d, cfg, B, nq):
    """Reference-points linear + inverse_sigmoid + obj classifier + state MLP in one call."""
    E = cfg["d_model"]
    d_det = cfg["d_detections"]
    norm_fac = cfg["norm_factor"]
    mlp = params["state_mlp"]
    n_mlp = len(mlp)
    BQ = B * nq

    def kernel(*refs):
        hs_ref, qp_ref, refw_ref, refb_ref, objw_ref, objb_ref = refs[:6]
        mlp_refs = refs[6:6 + 2 * n_mlp]
        obj_ref, state_ref = refs[6 + 2 * n_mlp:]

        # reference points: sigmoid(Linear(query_embed)), then inverse_sigmoid (eps=1e-5)
        qp = qp_ref[...]
        rp_lin = jnp.dot(qp, refw_ref[...], preferred_element_type=jnp.float32) + refb_ref[...]
        rp = 1.0 / (1.0 + jnp.exp(-rp_lin))
        rp = jnp.clip(rp, 0.0, 1.0)
        ref_logit = (jnp.log(jnp.maximum(rp, 1e-5))
                     - jnp.log(jnp.maximum(1.0 - rp, 1e-5)))

        h = hs_ref[...]
        obj = jnp.dot(h, objw_ref[...], preferred_element_type=jnp.float32) + objb_ref[...]

        t = h
        for i in range(n_mlp):
            t = (jnp.dot(t, mlp_refs[2 * i][...], preferred_element_type=jnp.float32)
                 + mlp_refs[2 * i + 1][...])
            if i < n_mlp - 1:
                t = jnp.maximum(t, 0.0)
        t = t + ref_logit
        state = (1.0 / (1.0 + jnp.exp(-t)) - 0.5) * norm_fac

        obj_ref[...] = obj
        state_ref[...] = state

    mlp_flat = []
    for lp in mlp:
        mlp_flat.extend([lp["w"], lp["b"]])
    inputs = [hs2d, qpos2d, params["ref_w"], params["ref_b"],
              params["obj_w"], params["obj_b"]] + mlp_flat

    return pl.pallas_call(
        kernel,
        out_shape=(jax.ShapeDtypeStruct((BQ, 1), jnp.float32),
                   jax.ShapeDtypeStruct((BQ, d_det), jnp.float32)),
        grid=(1,),
        in_specs=[_const_spec(a) for a in inputs],
        out_specs=(pl.BlockSpec((BQ, 1), lambda i: (0, 0)),
                   pl.BlockSpec((BQ, d_det), lambda i: (0, 0))),
        compiler_params=pltpu.CompilerParams(dimension_semantics=("arbitrary",)),
    )(*inputs)


# --------------------------------- forward ---------------------------------

def mott_forward(params, tensors, mask, cfg):
    """tensors: (bs, n_meas, d_detections + 1) [x, y, t]; mask: (bs, n_meas) bool (True=pad)."""
    d_det = cfg["d_detections"]
    d_model = cfg["d_model"]
    nq = cfg["num_queries"]
    dt = cfg["dt"]
    bs, n_meas, _ = tensors.shape

    # temporal position encoding (learned embedding lookup; gather stays in glue JAX)
    t_idx = jnp.round(tensors[:, :, -1] / dt).astype(jnp.int32)
    time_enc = jnp.take(params["temporal_embed"], t_idx, axis=0)        # (bs, L, E)
    pos2d = time_enc.reshape(bs * n_meas, d_model)

    meas2d = tensors[:, :, :d_det].reshape(bs * n_meas, d_det)
    bias = jnp.where(mask, -1e9, 0.0).astype(jnp.float32)               # (bs, L)
    qpos2d = jnp.broadcast_to(params["query_embed"][None, :, :],
                              (bs, nq, d_model)).reshape(bs * nq, d_model)

    memory2d = encoder_forward(params["enc"], params["pre_w"], params["pre_b"],
                               meas2d, pos2d, bias, cfg, bs, n_meas)
    hs2d, attn = decoder_forward(params["dec"], memory2d, pos2d, qpos2d, bias,
                                 cfg, bs, n_meas, nq)
    obj2d, state2d = heads_forward(params, hs2d, qpos2d, cfg, bs, nq)

    # TODO(synk): two_stage / with_state_refine / return_intermediate branches not exercised.
    # TODO(synk): contrastive_classifier / false_classifier branches disabled (configs off).
    aux_classifications = {}

    out = {"state": state2d.reshape(bs, nq, d_det),
           "logits": obj2d.reshape(bs, nq, 1)}
    memory_out = memory2d.reshape(bs, n_meas, d_model)                  # (bs, L, E)
    hs = hs2d.reshape(bs, nq, d_model)[None]                            # (1, bs, nq, E)
    attn_out = jnp.transpose(attn.reshape(cfg["n_dec"], bs, nq, n_meas),
                             (1, 0, 2, 3))                              # (bs, n_dec, nq, L)
    return out, memory_out, aux_classifications, hs, attn_out


# ------------------------------- param init -------------------------------

def init_params(key, cfg):
    E = cfg["d_model"]
    d_det = cfg["d_detections"]
    F_enc, F_dec = cfg["enc_ff"], cfg["dec_ff"]
    ne, nd = cfg["n_enc"], cfg["n_dec"]
    counter = [0]

    def nk():
        counter[0] += 1
        return jax.random.fold_in(key, counter[0])

    def xavier(shape):
        fan_in, fan_out = shape[-2], shape[-1]
        lim = math.sqrt(6.0 / (fan_in + fan_out))
        return jax.random.uniform(nk(), shape, jnp.float32, -lim, lim)

    def zeros(shape):
        return jnp.zeros(shape, jnp.float32)

    def ones(shape):
        return jnp.ones(shape, jnp.float32)

    enc = {"wqk": xavier((ne, E, 2 * E)), "bqk": zeros((ne, 1, 2 * E)),
           "wv": xavier((ne, E, E)), "bv": zeros((ne, 1, E)),
           "wo": xavier((ne, E, E)), "bo": zeros((ne, 1, E)),
           "w1": xavier((ne, E, F_enc)), "b1": zeros((ne, 1, F_enc)),
           "w2": xavier((ne, F_enc, E)), "b2": zeros((ne, 1, E)),
           "g1": ones((ne, 1, E)), "n1": zeros((ne, 1, E)),
           "g2": ones((ne, 1, E)), "n2": zeros((ne, 1, E))}

    dec = {"swqk": xavier((nd, E, 2 * E)), "sbqk": zeros((nd, 1, 2 * E)),
           "swv": xavier((nd, E, E)), "sbv": zeros((nd, 1, E)),
           "swo": xavier((nd, E, E)), "sbo": zeros((nd, 1, E)),
           "cwq": xavier((nd, E, E)), "cbq": zeros((nd, 1, E)),
           "cwk": xavier((nd, E, E)), "cbk": zeros((nd, 1, E)),
           "cwv": xavier((nd, E, E)), "cbv": zeros((nd, 1, E)),
           "cwo": xavier((nd, E, E)), "cbo": zeros((nd, 1, E)),
           "w1": xavier((nd, E, F_dec)), "b1": zeros((nd, 1, F_dec)),
           "w2": xavier((nd, F_dec, E)), "b2": zeros((nd, 1, E)),
           "g1": ones((nd, 1, E)), "n1": zeros((nd, 1, E)),
           "g2": ones((nd, 1, E)), "n2": zeros((nd, 1, E)),
           "g3": ones((nd, 1, E)), "n3": zeros((nd, 1, E))}

    hid = cfg["d_pred_hidden"]
    dims = [E] + [hid] * (cfg["n_pred_layers"] - 1) + [d_det]
    state_mlp = [{"w": xavier((dims[i], dims[i + 1])), "b": zeros((1, dims[i + 1]))}
                 for i in range(cfg["n_pred_layers"])]

    return {"temporal_embed": xavier((cfg["n_timesteps"], E)),
            "pre_w": xavier((d_det, E)), "pre_b": zeros((1, E)),
            "query_embed": xavier((cfg["num_queries"], E)),
            "ref_w": xavier((E, d_det)), "ref_b": zeros((1, d_det)),
            "obj_w": xavier((E, 1)), "obj_b": zeros((1, 1)),
            "enc": enc, "dec": dec, "state_mlp": state_mlp}


# ---------------------------------- main ----------------------------------

if __name__ == "__main__":
    cfg = dict(d_model=32, d_detections=2, n_heads=4, enc_ff=64, dec_ff=64,
               n_enc=2, n_dec=2, num_queries=4, d_pred_hidden=32, n_pred_layers=3,
               n_timesteps=10, dt=0.1, norm_factor=20.0)  # fov_ub(10) - fov_lb(-10)

    bs, n_meas = 2, 8
    key = jax.random.PRNGKey(0)
    kp, kx = jax.random.split(key, 2)

    params = init_params(kp, cfg)

    pos = jax.random.uniform(kx, (bs, n_meas, cfg["d_detections"]), jnp.float32, -10.0, 10.0)
    t_idx = jnp.tile(jnp.arange(n_meas) % cfg["n_timesteps"], (bs, 1)).astype(jnp.float32)
    times = (t_idx * cfg["dt"])[:, :, None]
    tensors = jnp.concatenate([pos, times], axis=-1)      # (bs, n_meas, d_det + 1)
    mask = jnp.zeros((bs, n_meas), dtype=bool).at[1, -2:].set(True)  # True = padded

    fwd = jax.jit(lambda p, t, m: mott_forward(p, t, m, cfg))
    out, memory, aux, hs, attn_maps = fwd(params, tensors, mask)
    jax.block_until_ready((out, memory, hs, attn_maps))

    assert out["state"].shape == (bs, cfg["num_queries"], cfg["d_detections"])
    assert out["logits"].shape == (bs, cfg["num_queries"], 1)
    assert memory.shape == (bs, n_meas, cfg["d_model"])
    assert hs.shape == (1, bs, cfg["num_queries"], cfg["d_model"])
    assert attn_maps.shape == (bs, cfg["n_dec"], cfg["num_queries"], n_meas)
    print("KERNEL_OK")
</pallas_src>

<mosaic_0001>
module attributes {stable_mosaic.version = 11 : i64} {
  func.func @kernel(%arg0: i32, %arg1: memref<16x2xf32, #tpu.memory_space<vmem>>, %arg2: memref<2x32xf32, #tpu.memory_space<vmem>>, %arg3: memref<1x32xf32, #tpu.memory_space<vmem>>, %arg4: memref<16x32xf32, #tpu.memory_space<vmem>>, %arg5: memref<2x8xf32, #tpu.memory_space<vmem>>, %arg6: memref<1x32x64xf32, #tpu.memory_space<vmem>>, %arg7: memref<1x1x64xf32, #tpu.memory_space<vmem>>, %arg8: memref<1x32x32xf32, #tpu.memory_space<vmem>>, %arg9: memref<1x1x32xf32, #tpu.memory_space<vmem>>, %arg10: memref<1x32x32xf32, #tpu.memory_space<vmem>>, %arg11: memref<1x1x32xf32, #tpu.memory_space<vmem>>, %arg12: memref<1x32x64xf32, #tpu.memory_space<vmem>>, %arg13: memref<1x1x64xf32, #tpu.memory_space<vmem>>, %arg14: memref<1x64x32xf32, #tpu.memory_space<vmem>>, %arg15: memref<1x1x32xf32, #tpu.memory_space<vmem>>, %arg16: memref<1x1x32xf32, #tpu.memory_space<vmem>>, %arg17: memref<1x1x32xf32, #tpu.memory_space<vmem>>, %arg18: memref<1x1x32xf32, #tpu.memory_space<vmem>>, %arg19: memref<1x1x32xf32, #tpu.memory_space<vmem>>, %arg20: memref<16x32xf32, #tpu.memory_space<vmem>>, %arg21: memref<16x32xf32, #tpu.memory_space<vmem>>) attributes {dimension_semantics = [#tpu.dimension_semantics<arbitrary>], iteration_bounds = array<i64: 2>, scalar_prefetch = 0 : i64, scratch_operands = 1 : i64, tpu.core_type = #tpu.core_type<tc>, window_params = [{pipeline_mode = #tpu.pipeline_mode<synchronous>, transform_indices = @transform_0, window_bounds = array<i64: 16, 2>}, {pipeline_mode = #tpu.pipeline_mode<synchronous>, transform_indices = @transform_1, window_bounds = array<i64: 2, 32>}, {pipeline_mode = #tpu.pipeline_mode<synchronous>, transform_indices = @transform_2, window_bounds = array<i64: 1, 32>}, {pipeline_mode = #tpu.pipeline_mode<synchronous>, transform_indices = @transform_3, window_bounds = array<i64: 16, 32>}, {pipeline_mode = #tpu.pipeline_mode<synchronous>, transform_indices = @transform_4, window_bounds = array<i64: 2, 8>}, {transform_indices = @transform_5, window_bounds = array<i64: 1, 32, 64>}, {transform_indices = @transform_6, window_bounds = array<i64: 1, 1, 64>}, {transform_indices = @transform_7, window_bounds = array<i64: 1, 32, 32>}, {transform_indices = @transform_8, window_bounds = array<i64: 1, 1, 32>}, {transform_indices = @transform_9, window_bounds = array<i64: 1, 32, 32>}, {transform_indices = @transform_10, window_bounds = array<i64: 1, 1, 32>}, {transform_indices = @transform_11, window_bounds = array<i64: 1, 32, 64>}, {transform_indices = @transform_12, window_bounds = array<i64: 1, 1, 64>}, {transform_indices = @transform_13, window_bounds = array<i64: 1, 64, 32>}, {transform_indices = @transform_14, window_bounds = array<i64: 1, 1, 32>}, {transform_indices = @transform_15, window_bounds = array<i64: 1, 1, 32>}, {transform_indices = @transform_16, window_bounds = array<i64: 1, 1, 32>}, {transform_indices = @transform_17, window_bounds = array<i64: 1, 1, 32>}, {transform_indices = @transform_18, window_bounds = array<i64: 1, 1, 32>}, {pipeline_mode = #tpu.pipeline_mode<synchronous>, transform_indices = @transform_19, window_bounds = array<i64: 16, 32>}]} {
    %c0_i32 = arith.constant 0 : i32
    %0 = arith.cmpi eq, %arg0, %c0_i32 : i32
    %1 = arith.extui %0 : i1 to i32
    %c0_i32_0 = arith.constant 0 : i32
    %2 = arith.cmpi ne, %1, %c0_i32_0 : i32
    scf.if %2 {
      %c0_120 = arith.constant 0 : index
      %c0_121 = arith.constant 0 : index
      %254 = vector.load %arg1[%c0_120, %c0_121] : memref<16x2xf32, #tpu.memory_space<vmem>>, vector<16x2xf32>
      %cst_122 = arith.constant 5.000000e-02 : f32
      %255 = vector.broadcast %cst_122 : f32 to vector<16x2xf32>
      %256 = arith.mulf %254, %255 : vector<16x2xf32>
      %c0_123 = arith.constant 0 : index
      %c0_124 = arith.constant 0 : index
      %257 = vector.load %arg2[%c0_123, %c0_124] : memref<2x32xf32, #tpu.memory_space<vmem>>, vector<2x32xf32>
      %cst_125 = arith.constant dense<0.000000e+00> : vector<16x32xf32>
      %258 = tpu.matmul %256, %257, %cst_125 {dimension_numbers = #tpu.dot_dimension_numbers<[1], [0], [0], [1], [0, 0, 1, 1], [], []>} : vector<16x2xf32>, vector<2x32xf32>, vector<16x32xf32> -> vector<16x32xf32>
      %c0_126 = arith.constant 0 : index
      %c0_127 = arith.constant 0 : index
      %259 = vector.load %arg3[%c0_126, %c0_127] : memref<1x32xf32, #tpu.memory_space<vmem>>, vector<1x32xf32>
      %260 = vector.broadcast %259 : vector<1x32xf32> to vector<16x32xf32>
      %261 = arith.addf %258, %260 : vector<16x32xf32>
      %c0_128 = arith.constant 0 : index
      %c0_129 = arith.constant 0 : index
      %262 = vector.load %arg20[%c0_128, %c0_129] : memref<16x32xf32, #tpu.memory_space<vmem>>, vector<16x32xf32>
      tpu.vector_store %arg20[%c0_128, %c0_129], %261 {strides = array<i32>} : memref<16x32xf32, #tpu.memory_space<vmem>>, vector<16x32xf32>,
    } else {
    }
    %c0 = arith.constant 0 : index
    %c0_1 = arith.constant 0 : index
    %3 = vector.load %arg20[%c0, %c0_1] : memref<16x32xf32, #tpu.memory_space<vmem>>, vector<16x32xf32>
    %c0_2 = arith.constant 0 : index
    %c0_3 = arith.constant 0 : index
    %4 = vector.load %arg4[%c0_2, %c0_3] : memref<16x32xf32, #tpu.memory_space<vmem>>, vector<16x32xf32>
    %c0_4 = arith.constant 0 : index
    %c0_5 = arith.constant 0 : index
    %5 = vector.load %arg5[%c0_4, %c0_5] : memref<2x8xf32, #tpu.memory_space<vmem>>, vector<2x8xf32>
    %6 = arith.addf %3, %4 : vector<16x32xf32>
    %c0_6 = arith.constant 0 : index
    %c0_7 = arith.constant 0 : index
    %c0_8 = arith.constant 0 : index
    %7 = vector.load %arg6[%c0_6, %c0_7, %c0_8] : memref<1x32x64xf32, #tpu.memory_space<vmem>>, vector<1x32x64xf32>
    %8 = vector.shape_cast %7 : vector<1x32x64xf32> to vector<32x64xf32>
    %cst = arith.constant dense<0.000000e+00> : vector<16x64xf32>
    %9 = tpu.matmul %6, %8, %cst {dimension_numbers = #tpu.dot_dimension_numbers<[1], [0], [0], [1], [0, 0, 1, 1], [], []>} : vector<16x32xf32>, vector<32x64xf32>, vector<16x64xf32> -> vector<16x64xf32>
    %c0_9 = arith.constant 0 : index
    %c0_10 = arith.constant 0 : index
    %c0_11 = arith.constant 0 : index
    %10 = vector.load %arg7[%c0_9, %c0_10, %c0_11] : memref<1x1x64xf32, #tpu.memory_space<vmem>>, vector<1x1x64xf32>
    %11 = vector.shape_cast %10 : vector<1x1x64xf32> to vector<1x64xf32>
    %12 = vector.broadcast %11 : vector<1x64xf32> to vector<16x64xf32>
    %13 = arith.addf %9, %12 : vector<16x64xf32>
    %c0_12 = arith.constant 0 : index
    %c0_13 = arith.constant 0 : index
    %c0_14 = arith.constant 0 : index
    %14 = vector.load %arg8[%c0_12, %c0_13, %c0_14] : memref<1x32x32xf32, #tpu.memory_space<vmem>>, vector<1x32x32xf32>
    %15 = vector.shape_cast %14 : vector<1x32x32xf32> to vector<32x32xf32>
    %cst_15 = arith.constant dense<0.000000e+00> : vector<16x32xf32>
    %16 = tpu.matmul %3, %15, %cst_15 {dimension_numbers = #tpu.dot_dimension_numbers<[1], [0], [0], [1], [0, 0, 1, 1], [], []>} : vector<16x32xf32>, vector<32x32xf32>, vector<16x32xf32> -> vector<16x32xf32>
    %c0_16 = arith.constant 0 : index
    %c0_17 = arith.constant 0 : index
    %c0_18 = arith.constant 0 : index
    %17 = vector.load %arg9[%c0_16, %c0_17, %c0_18] : memref<1x1x32xf32, #tpu.memory_space<vmem>>, vector<1x1x32xf32>
    %18 = vector.shape_cast %17 : vector<1x1x32xf32> to vector<1x32xf32>
    %19 = vector.broadcast %18 : vector<1x32xf32> to vector<16x32xf32>
    %20 = arith.addf %16, %19 : vector<16x32xf32>
    %21 = vector.extract_strided_slice %5 {offsets = [0, 0], sizes = [1, 8], strides = [1, 1]} : vector<2x8xf32> to vector<1x8xf32>
    %22 = vector.extract_strided_slice %13 {offsets = [0, 0], sizes = [8, 8], strides = [1, 1]} : vector<16x64xf32> to vector<8x8xf32>
    %cst_19 = arith.constant 0.353553385 : f32
    %23 = vector.broadcast %cst_19 : f32 to vector<8x8xf32>
    %24 = arith.mulf %22, %23 : vector<8x8xf32>
    %25 = vector.extract_strided_slice %13 {offsets = [0, 32], sizes = [8, 8], strides = [1, 1]} : vector<16x64xf32> to vector<8x8xf32>
    %26 = vector.extract_strided_slice %20 {offsets = [0, 0], sizes = [8, 8], strides = [1, 1]} : vector<16x32xf32> to vector<8x8xf32>
    %cst_20 = arith.constant dense<0.000000e+00> : vector<8x8xf32>
    %27 = tpu.matmul %24, %25, %cst_20 {dimension_numbers = #tpu.dot_dimension_numbers<[1], [1], [0], [0], [0, 0, 1, 0], [], []>} : vector<8x8xf32>, vector<8x8xf32>, vector<8x8xf32> -> vector<8x8xf32>
    %28 = vector.broadcast %21 : vector<1x8xf32> to vector<8x8xf32>
    %29 = arith.addf %27, %28 : vector<8x8xf32>
    %cst_21 = arith.constant dense<0xFF800000> : vector<8xf32>
    %30 = vector.multi_reduction <maximumf>, %29, %cst_21 [1] : vector<8x8xf32> to vector<8xf32>
    %31 = vector.shape_cast %30 : vector<8xf32> to vector<8x1xf32>
    %32 = vector.broadcast %31 : vector<8x1xf32> to vector<8x8xf32>
    %33 = arith.subf %29, %32 : vector<8x8xf32>
    %34 = math.exp %33 : vector<8x8xf32>
    %cst_22 = arith.constant dense<0.000000e+00> : vector<8xf32>
    %35 = vector.multi_reduction <add>, %34, %cst_22 [1] : vector<8x8xf32> to vector<8xf32>
    %36 = vector.shape_cast %35 : vector<8xf32> to vector<8x1xf32>
    %37 = vector.broadcast %36 : vector<8x1xf32> to vector<8x8xf32>
    %38 = arith.divf %34, %37 : vector<8x8xf32>
    %cst_23 = arith.constant dense<0.000000e+00> : vector<8x8xf32>
    %39 = tpu.matmul %38, %26, %cst_23 {dimension_numbers = #tpu.dot_dimension_numbers<[1], [0], [0], [1], [0, 0, 1, 1], [], []>} : vector<8x8xf32>, vector<8x8xf32>, vector<8x8xf32> -> vector<8x8xf32>
    %c0_24 = arith.constant 0 : index
    %c0_25 = arith.constant 0 : index
    %40 = vector.load %arg21[%c0_24, %c0_25] : memref<16x32xf32, #tpu.memory_space<vmem>>, vector<8x8xf32>
    tpu.vector_store %arg21[%c0_24, %c0_25], %39 {strides = array<i32>} : memref<16x32xf32, #tpu.memory_space<vmem>>, vector<8x8xf32>,
    %41 = vector.extract_strided_slice %13 {offsets = [0, 8], sizes = [8, 8], strides = [1, 1]} : vector<16x64xf32> to vector<8x8xf32>
    %cst_26 = arith.constant 0.353553385 : f32
    %42 = vector.broadcast %cst_26 : f32 to vector<8x8xf32>
    %43 = arith.mulf %41, %42 : vector<8x8xf32>
    %44 = vector.extract_strided_slice %13 {offsets = [0, 40], sizes = [8, 8], strides = [1, 1]} : vector<16x64xf32> to vector<8x8xf32>
    %45 = vector.extract_strided_slice %20 {offsets = [0, 8], sizes = [8, 8], strides = [1, 1]} : vector<16x32xf32> to vector<8x8xf32>
    %cst_27 = arith.constant dense<0.000000e+00> : vector<8x8xf32>
    %46 = tpu.matmul %43, %44, %cst_27 {dimension_numbers = #tpu.dot_dimension_numbers<[1], [1], [0], [0], [0, 0, 1, 0], [], []>} : vector<8x8xf32>, vector<8x8xf32>, vector<8x8xf32> -> vector<8x8xf32>
    %47 = vector.broadcast %21 : vector<1x8xf32> to vector<8x8xf32>
    %48 = arith.addf %46, %47 : vector<8x8xf32>
    %cst_28 = arith.constant dense<0xFF800000> : vector<8xf32>
    %49 = vector.multi_reduction <maximumf>, %48, %cst_28 [1] : vector<8x8xf32> to vector<8xf32>
    %50 = vector.shape_cast %49 : vector<8xf32> to vector<8x1xf32>
    %51 = vector.broadcast %50 : vector<8x1xf32> to vector<8x8xf32>
    %52 = arith.subf %48, %51 : vector<8x8xf32>
    %53 = math.exp %52 : vector<8x8xf32>
    %cst_29 = arith.constant dense<0.000000e+00> : vector<8xf32>
    %54 = vector.multi_reduction <add>, %53, %cst_29 [1] : vector<8x8xf32> to vector<8xf32>
    %55 = vector.shape_cast %54 : vector<8xf32> to vector<8x1xf32>
    %56 = vector.broadcast %55 : vector<8x1xf32> to vector<8x8xf32>
    %57 = arith.divf %53, %56 : vector<8x8xf32>
    %cst_30 = arith.constant dense<0.000000e+00> : vector<8x8xf32>
    %58 = tpu.matmul %57, %45, %cst_30 {dimension_numbers = #tpu.dot_dimension_numbers<[1], [0], [0], [1], [0, 0, 1, 1], [], []>} : vector<8x8xf32>, vector<8x8xf32>, vector<8x8xf32> -> vector<8x8xf32>
    %c0_31 = arith.constant 0 : index
    %c8 = arith.constant 8 : index
    %59 = vector.load %arg21[%c0_31, %c8] : memref<16x32xf32, #tpu.memory_space<vmem>>, vector<8x8xf32>
    tpu.vector_store %arg21[%c0_31, %c8], %58 {strides = array<i32>} : memref<16x32xf32, #tpu.memory_space<vmem>>, vector<8x8xf32>,
    %60 = vector.extract_strided_slice %13 {offsets = [0, 16], sizes = [8, 8], strides = [1, 1]} : vector<16x64xf32> to vector<8x8xf32>
    %cst_32 = arith.constant 0.353553385 : f32
    %61 = vector.broadcast %cst_32 : f32 to vector<8x8xf32>
    %62 = arith.mulf %60, %61 : vector<8x8xf32>
    %63 = vector.extract_strided_slice %13 {offsets = [0, 48], sizes = [8, 8], strides = [1, 1]} : vector<16x64xf32> to vector<8x8xf32>
    %64 = vector.extract_strided_slice %20 {offsets = [0, 16], sizes = [8, 8], strides = [1, 1]} : vector<16x32xf32> to vector<8x8xf32>
    %cst_33 = arith.constant dense<0.000000e+00> : vector<8x8xf32>
    %65 = tpu.matmul %62, %63, %cst_33 {dimension_numbers = #tpu.dot_dimension_numbers<[1], [1], [0], [0], [0, 0, 1, 0], [], []>} : vector<8x8xf32>, vector<8x8xf32>, vector<8x8xf32> -> vector<8x8xf32>
    %66 = vector.broadcast %21 : vector<1x8xf32> to vector<8x8xf32>
    %67 = arith.addf %65, %66 : vector<8x8xf32>
    %cst_34 = arith.constant dense<0xFF800000> : vector<8xf32>
    %68 = vector.multi_reduction <maximumf>, %67, %cst_34 [1] : vector<8x8xf32> to vector<8xf32>
    %69 = vector.shape_cast %68 : vector<8xf32> to vector<8x1xf32>
    %70 = vector.broadcast %69 : vector<8x1xf32> to vector<8x8xf32>
    %71 = arith.subf %67, %70 : vector<8x8xf32>
    %72 = math.exp %71 : vector<8x8xf32>
    %cst_35 = arith.constant dense<0.000000e+00> : vector<8xf32>
    %73 = vector.multi_reduction <add>, %72, %cst_35 [1] : vector<8x8xf32> to vector<8xf32>
    %74 = vector.shape_cast %73 : vector<8xf32> to vector<8x1xf32>
    %75 = vector.broadcast %74 : vector<8x1xf32> to vector<8x8xf32>
    %76 = arith.divf %72, %75 : vector<8x8xf32>
    %cst_36 = arith.constant dense<0.000000e+00> : vector<8x8xf32>
    %77 = tpu.matmul %76, %64, %cst_36 {dimension_numbers = #tpu.dot_dimension_numbers<[1], [0], [0], [1], [0, 0, 1, 1], [], []>} : vector<8x8xf32>, vector<8x8xf32>, vector<8x8xf32> -> vector<8x8xf32>
    %c0_37 = arith.constant 0 : index
    %c16 = arith.constant 16 : index
    %78 = vector.load %arg21[%c0_37, %c16] : memref<16x32xf32, #tpu.memory_space<vmem>>, vector<8x8xf32>
    tpu.vector_store %arg21[%c0_37, %c16], %77 {strides = array<i32>} : memref<16x32xf32, #tpu.memory_space<vmem>>, vector<8x8xf32>,
    %79 = vector.extract_strided_slice %13 {offsets = [0, 24], sizes = [8, 8], strides = [1, 1]} : vector<16x64xf32> to vector<8x8xf32>
    %cst_38 = arith.constant 0.353553385 : f32
    %80 = vector.broadcast %cst_38 : f32 to vector<8x8xf32>
    %81 = arith.mulf %79, %80 : vector<8x8xf32>
    %82 = vector.extract_strided_slice %13 {offsets = [0, 56], sizes = [8, 8], strides = [1, 1]} : vector<16x64xf32> to vector<8x8xf32>
    %83 = vector.extract_strided_slice %20 {offsets = [0, 24], sizes = [8, 8], strides = [1, 1]} : vector<16x32xf32> to vector<8x8xf32>
    %cst_39 = arith.constant dense<0.000000e+00> : vector<8x8xf32>
    %84 = tpu.matmul %81, %82, %cst_39 {dimension_numbers = #tpu.dot_dimension_numbers<[1], [1], [0], [0], [0, 0, 1, 0], [], []>} : vector<8x8xf32>, vector<8x8xf32>, vector<8x8xf32> -> vector<8x8xf32>
    %85 = vector.broadcast %21 : vector<1x8xf32> to vector<8x8xf32>
    %86 = arith.addf %84, %85 : vector<8x8xf32>
    %cst_40 = arith.constant dense<0xFF800000> : vector<8xf32>
    %87 = vector.multi_reduction <maximumf>, %86, %cst_40 [1] : vector<8x8xf32> to vector<8xf32>
    %88 = vector.shape_cast %87 : vector<8xf32> to vector<8x1xf32>
    %89 = vector.broadcast %88 : vector<8x1xf32> to vector<8x8xf32>
    %90 = arith.subf %86, %89 : vector<8x8xf32>
    %91 = math.exp %90 : vector<8x8xf32>
    %cst_41 = arith.constant dense<0.000000e+00> : vector<8xf32>
    %92 = vector.multi_reduction <add>, %91, %cst_41 [1] : vector<8x8xf32> to vector<8xf32>
    %93 = vector.shape_cast %92 : vector<8xf32> to vector<8x1xf32>
    %94 = vector.broadcast %93 : vector<8x1xf32> to vector<8x8xf32>
    %95 = arith.divf %91, %94 : vector<8x8xf32>
    %cst_42 = arith.constant dense<0.000000e+00> : vector<8x8xf32>
    %96 = tpu.matmul %95, %83, %cst_42 {dimension_numbers = #tpu.dot_dimension_numbers<[1], [0], [0], [1], [0, 0, 1, 1], [], []>} : vector<8x8xf32>, vector<8x8xf32>, vector<8x8xf32> -> vector<8x8xf32>
    %c0_43 = arith.constant 0 : index
    %c24 = arith.constant 24 : index
    %97 = vector.load %arg21[%c0_43, %c24] : memref<16x32xf32, #tpu.memory_space<vmem>>, vector<8x8xf32>
    tpu.vector_store %arg21[%c0_43, %c24], %96 {strides = array<i32>} : memref<16x32xf32, #tpu.memory_space<vmem>>, vector<8x8xf32>,
    %98 = vector.extract_strided_slice %5 {offsets = [1, 0], sizes = [1, 8], strides = [1, 1]} : vector<2x8xf32> to vector<1x8xf32>
    %99 = vector.extract_strided_slice %13 {offsets = [8, 0], sizes = [8, 8], strides = [1, 1]} : vector<16x64xf32> to vector<8x8xf32>
    %cst_44 = arith.constant 0.353553385 : f32
    %100 = vector.broadcast %cst_44 : f32 to vector<8x8xf32>
    %101 = arith.mulf %99, %100 : vector<8x8xf32>
    %102 = vector.extract_strided_slice %13 {offsets = [8, 32], sizes = [8, 8], strides = [1, 1]} : vector<16x64xf32> to vector<8x8xf32>
    %103 = vector.extract_strided_slice %20 {offsets = [8, 0], sizes = [8, 8], strides = [1, 1]} : vector<16x32xf32> to vector<8x8xf32>
    %cst_45 = arith.constant dense<0.000000e+00> : vector<8x8xf32>
    %104 = tpu.matmul %101, %102, %cst_45 {dimension_numbers = #tpu.dot_dimension_numbers<[1], [1], [0], [0], [0, 0, 1, 0], [], []>} : vector<8x8xf32>, vector<8x8xf32>, vector<8x8xf32> -> vector<8x8xf32>
    %105 = vector.broadcast %98 : vector<1x8xf32> to vector<8x8xf32>
    %106 = arith.addf %104, %105 : vector<8x8xf32>
    %cst_46 = arith.constant dense<0xFF800000> : vector<8xf32>
    %107 = vector.multi_reduction <maximumf>, %106, %cst_46 [1] : vector<8x8xf32> to vector<8xf32>
    %108 = vector.shape_cast %107 : vector<8xf32> to vector<8x1xf32>
    %109 = vector.broadcast %108 : vector<8x1xf32> to vector<8x8xf32>
    %110 = arith.subf %106, %109 : vector<8x8xf32>
    %111 = math.exp %110 : vector<8x8xf32>
    %cst_47 = arith.constant dense<0.000000e+00> : vector<8xf32>
    %112 = vector.multi_reduction <add>, %111, %cst_47 [1] : vector<8x8xf32> to vector<8xf32>
    %113 = vector.shape_cast %112 : vector<8xf32> to vector<8x1xf32>
    %114 = vector.broadcast %113 : vector<8x1xf32> to vector<8x8xf32>
    %115 = arith.divf %111, %114 : vector<8x8xf32>
    %cst_48 = arith.constant dense<0.000000e+00> : vector<8x8xf32>
    %116 = tpu.matmul %115, %103, %cst_48 {dimension_numbers = #tpu.dot_dimension_numbers<[1], [0], [0], [1], [0, 0, 1, 1], [], []>} : vector<8x8xf32>, vector<8x8xf32>, vector<8x8xf32> -> vector<8x8xf32>
    %c8_49 = arith.constant 8 : index
    %c0_50 = arith.constant 0 : index
    %117 = vector.load %arg21[%c8_49, %c0_50] : memref<16x32xf32, #tpu.memory_space<vmem>>, vector<8x8xf32>
    tpu.vector_store %arg21[%c8_49, %c0_50], %116 {strides = array<i32>} : memref<16x32xf32, #tpu.memory_space<vmem>>, vector<8x8xf32>,
    %118 = vector.extract_strided_slice %13 {offsets = [8, 8], sizes = [8, 8], strides = [1, 1]} : vector<16x64xf32> to vector<8x8xf32>
    %cst_51 = arith.constant 0.353553385 : f32
    %119 = vector.broadcast %cst_51 : f32 to vector<8x8xf32>
    %120 = arith.mulf %118, %119 : vector<8x8xf32>
    %121 = vector.extract_strided_slice %13 {offsets = [8, 40], sizes = [8, 8], strides = [1, 1]} : vector<16x64xf32> to vector<8x8xf32>
    %122 = vector.extract_strided_slice %20 {offsets = [8, 8], sizes = [8, 8], strides = [1, 1]} : vector<16x32xf32> to vector<8x8xf32>
    %cst_52 = arith.constant dense<0.000000e+00> : vector<8x8xf32>
    %123 = tpu.matmul %120, %121, %cst_52 {dimension_numbers = #tpu.dot_dimension_numbers<[1], [1], [0], [0], [0, 0, 1, 0], [], []>} : vector<8x8xf32>, vector<8x8xf32>, vector<8x8xf32> -> vector<8x8xf32>
    %124 = vector.broadcast %98 : vector<1x8xf32> to vector<8x8xf32>
    %125 = arith.addf %123, %124 : vector<8x8xf32>
    %cst_53 = arith.constant dense<0xFF800000> : vector<8xf32>
    %126 = vector.multi_reduction <maximumf>, %125, %cst_53 [1] : vector<8x8xf32> to vector<8xf32>
    %127 = vector.shape_cast %126 : vector<8xf32> to vector<8x1xf32>
    %128 = vector.broadcast %127 : vector<8x1xf32> to vector<8x8xf32>
    %129 = arith.subf %125, %128 : vector<8x8xf32>
    %130 = math.exp %129 : vector<8x8xf32>
    %cst_54 = arith.constant dense<0.000000e+00> : vector<8xf32>
    %131 = vector.multi_reduction <add>, %130, %cst_54 [1] : vector<8x8xf32> to vector<8xf32>
    %132 = vector.shape_cast %131 : vector<8xf32> to vector<8x1xf32>
    %133 = vector.broadcast %132 : vector<8x1xf32> to vector<8x8xf32>
    %134 = arith.divf %130, %133 : vector<8x8xf32>
    %cst_55 = arith.constant dense<0.000000e+00> : vector<8x8xf32>
    %135 = tpu.matmul %134, %122, %cst_55 {dimension_numbers = #tpu.dot_dimension_numbers<[1], [0], [0], [1], [0, 0, 1, 1], [], []>} : vector<8x8xf32>, vector<8x8xf32>, vector<8x8xf32> -> vector<8x8xf32>
    %c8_56 = arith.constant 8 : index
    %c8_57 = arith.constant 8 : index
    %136 = vector.load %arg21[%c8_56, %c8_57] : memref<16x32xf32, #tpu.memory_space<vmem>>, vector<8x8xf32>
    tpu.vector_store %arg21[%c8_56, %c8_57], %135 {strides = array<i32>} : memref<16x32xf32, #tpu.memory_space<vmem>>, vector<8x8xf32>,
    %137 = vector.extract_strided_slice %13 {offsets = [8, 16], sizes = [8, 8], strides = [1, 1]} : vector<16x64xf32> to vector<8x8xf32>
    %cst_58 = arith.constant 0.353553385 : f32
    %138 = vector.broadcast %cst_58 : f32 to vector<8x8xf32>
    %139 = arith.mulf %137, %138 : vector<8x8xf32>
    %140 = vector.extract_strided_slice %13 {offsets = [8, 48], sizes = [8, 8], strides = [1, 1]} : vector<16x64xf32> to vector<8x8xf32>
    %141 = vector.extract_strided_slice %20 {offsets = [8, 16], sizes = [8, 8], strides = [1, 1]} : vector<16x32xf32> to vector<8x8xf32>
    %cst_59 = arith.constant dense<0.000000e+00> : vector<8x8xf32>
    %142 = tpu.matmul %139, %140, %cst_59 {dimension_numbers = #tpu.dot_dimension_numbers<[1], [1], [0], [0], [0, 0, 1, 0], [], []>} : vector<8x8xf32>, vector<8x8xf32>, vector<8x8xf32> -> vector<8x8xf32>
    %143 = vector.broadcast %98 : vector<1x8xf32> to vector<8x8xf32>
    %144 = arith.addf %142, %143 : vector<8x8xf32>
    %cst_60 = arith.constant dense<0xFF800000> : vector<8xf32>
    %145 = vector.multi_reduction <maximumf>, %144, %cst_60 [1] : vector<8x8xf32> to vector<8xf32>
    %146 = vector.shape_cast %145 : vector<8xf32> to vector<8x1xf32>
    %147 = vector.broadcast %146 : vector<8x1xf32> to vector<8x8xf32>
    %148 = arith.subf %144, %147 : vector<8x8xf32>
    %149 = math.exp %148 : vector<8x8xf32>
    %cst_61 = arith.constant dense<0.000000e+00> : vector<8xf32>
    %150 = vector.multi_reduction <add>, %149, %cst_61 [1] : vector<8x8xf32> to vector<8xf32>
    %151 = vector.shape_cast %150 : vector<8xf32> to vector<8x1xf32>
    %152 = vector.broadcast %151 : vector<8x1xf32> to vector<8x8xf32>
    %153 = arith.divf %149, %152 : vector<8x8xf32>
    %cst_62 = arith.constant dense<0.000000e+00> : vector<8x8xf32>
    %154 = tpu.matmul %153, %141, %cst_62 {dimension_numbers = #tpu.dot_dimension_numbers<[1], [0], [0], [1], [0, 0, 1, 1], [], []>} : vector<8x8xf32>, vector<8x8xf32>, vector<8x8xf32> -> vector<8x8xf32>
    %c8_63 = arith.constant 8 : index
    %c16_64 = arith.constant 16 : index
    %155 = vector.load %arg21[%c8_63, %c16_64] : memref<16x32xf32, #tpu.memory_space<vmem>>, vector<8x8xf32>
    tpu.vector_store %arg21[%c8_63, %c16_64], %154 {strides = array<i32>} : memref<16x32xf32, #tpu.memory_space<vmem>>, vector<8x8xf32>,
    %156 = vector.extract_strided_slice %13 {offsets = [8, 24], sizes = [8, 8], strides = [1, 1]} : vector<16x64xf32> to vector<8x8xf32>
    %cst_65 = arith.constant 0.353553385 : f32
    %157 = vector.broadcast %cst_65 : f32 to vector<8x8xf32>
    %158 = arith.mulf %156, %157 : vector<8x8xf32>
    %159 = vector.extract_strided_slice %13 {offsets = [8, 56], sizes = [8, 8], strides = [1, 1]} : vector<16x64xf32> to vector<8x8xf32>
    %160 = vector.extract_strided_slice %20 {offsets = [8, 24], sizes = [8, 8], strides = [1, 1]} : vector<16x32xf32> to vector<8x8xf32>
    %cst_66 = arith.constant dense<0.000000e+00> : vector<8x8xf32>
    %161 = tpu.matmul %158, %159, %cst_66 {dimension_numbers = #tpu.dot_dimension_numbers<[1], [1], [0], [0], [0, 0, 1, 0], [], []>} : vector<8x8xf32>, vector<8x8xf32>, vector<8x8xf32> -> vector<8x8xf32>
    %162 = vector.broadcast %98 : vector<1x8xf32> to vector<8x8xf32>
    %163 = arith.addf %161, %162 : vector<8x8xf32>
    %cst_67 = arith.constant dense<0xFF800000> : vector<8xf32>
    %164 = vector.multi_reduction <maximumf>, %163, %cst_67 [1] : vector<8x8xf32> to vector<8xf32>
    %165 = vector.shape_cast %164 : vector<8xf32> to vector<8x1xf32>
    %166 = vector.broadcast %165 : vector<8x1xf32> to vector<8x8xf32>
    %167 = arith.subf %163, %166 : vector<8x8xf32>
    %168 = math.exp %167 : vector<8x8xf32>
    %cst_68 = arith.constant dense<0.000000e+00> : vector<8xf32>
    %169 = vector.multi_reduction <add>, %168, %cst_68 [1] : vector<8x8xf32> to vector<8xf32>
    %170 = vector.shape_cast %169 : vector<8xf32> to vector<8x1xf32>
    %171 = vector.broadcast %170 : vector<8x1xf32> to vector<8x8xf32>
    %172 = arith.divf %168, %171 : vector<8x8xf32>
    %cst_69 = arith.constant dense<0.000000e+00> : vector<8x8xf32>
    %173 = tpu.matmul %172, %160, %cst_69 {dimension_numbers = #tpu.dot_dimension_numbers<[1], [0], [0], [1], [0, 0, 1, 1], [], []>} : vector<8x8xf32>, vector<8x8xf32>, vector<8x8xf32> -> vector<8x8xf32>
    %c8_70 = arith.constant 8 : index
    %c24_71 = arith.constant 24 : index
    %174 = vector.load %arg21[%c8_70, %c24_71] : memref<16x32xf32, #tpu.memory_space<vmem>>, vector<8x8xf32>
    tpu.vector_store %arg21[%c8_70, %c24_71], %173 {strides = array<i32>} : memref<16x32xf32, #tpu.memory_space<vmem>>, vector<8x8xf32>,
    %c0_72 = arith.constant 0 : index
    %c0_73 = arith.constant 0 : index
    %175 = vector.load %arg21[%c0_72, %c0_73] : memref<16x32xf32, #tpu.memory_space<vmem>>, vector<16x32xf32>
    %c0_74 = arith.constant 0 : index
    %c0_75 = arith.constant 0 : index
    %c0_76 = arith.constant 0 : index
    %176 = vector.load %arg10[%c0_74, %c0_75, %c0_76] : memref<1x32x32xf32, #tpu.memory_space<vmem>>, vector<1x32x32xf32>
    %177 = vector.shape_cast %176 : vector<1x32x32xf32> to vector<32x32xf32>
    %cst_77 = arith.constant dense<0.000000e+00> : vector<16x32xf32>
    %178 = tpu.matmul %175, %177, %cst_77 {dimension_numbers = #tpu.dot_dimension_numbers<[1], [0], [0], [1], [0, 0, 1, 1], [], []>} : vector<16x32xf32>, vector<32x32xf32>, vector<16x32xf32> -> vector<16x32xf32>
    %c0_78 = arith.constant 0 : index
    %c0_79 = arith.constant 0 : index
    %c0_80 = arith.constant 0 : index
    %179 = vector.load %arg11[%c0_78, %c0_79, %c0_80] : memref<1x1x32xf32, #tpu.memory_space<vmem>>, vector<1x1x32xf32>
    %180 = vector.shape_cast %179 : vector<1x1x32xf32> to vector<1x32xf32>
    %181 = vector.broadcast %180 : vector<1x32xf32> to vector<16x32xf32>
    %182 = arith.addf %178, %181 : vector<16x32xf32>
    %183 = arith.addf %3, %182 : vector<16x32xf32>
    %c0_81 = arith.constant 0 : index
    %c0_82 = arith.constant 0 : index
    %c0_83 = arith.constant 0 : index
    %184 = vector.load %arg16[%c0_81, %c0_82, %c0_83] : memref<1x1x32xf32, #tpu.memory_space<vmem>>, vector<1x1x32xf32>
    %185 = vector.shape_cast %184 : vector<1x1x32xf32> to vector<1x32xf32>
    %c0_84 = arith.constant 0 : index
    %c0_85 = arith.constant 0 : index
    %c0_86 = arith.constant 0 : index
    %186 = vector.load %arg17[%c0_84, %c0_85, %c0_86] : memref<1x1x32xf32, #tpu.memory_space<vmem>>, vector<1x1x32xf32>
    %187 = vector.shape_cast %186 : vector<1x1x32xf32> to vector<1x32xf32>
    %cst_87 = arith.constant dense<0.000000e+00> : vector<16xf32>
    %188 = vector.multi_reduction <add>, %183, %cst_87 [1] : vector<16x32xf32> to vector<16xf32>
    %189 = vector.shape_cast %188 : vector<16xf32> to vector<16x1xf32>
    %cst_88 = arith.constant 3.200000e+01 : f32
    %190 = vector.broadcast %cst_88 : f32 to vector<16x1xf32>
    %191 = arith.divf %189, %190 : vector<16x1xf32>
    %192 = vector.broadcast %191 : vector<16x1xf32> to vector<16x32xf32>
    %193 = arith.subf %183, %192 : vector<16x32xf32>
    %194 = arith.mulf %193, %193 : vector<16x32xf32>
    %cst_89 = arith.constant dense<0.000000e+00> : vector<16xf32>
    %195 = vector.multi_reduction <add>, %194, %cst_89 [1] : vector<16x32xf32> to vector<16xf32>
    %196 = vector.shape_cast %195 : vector<16xf32> to vector<16x1xf32>
    %cst_90 = arith.constant 3.200000e+01 : f32
    %197 = vector.broadcast %cst_90 : f32 to vector<16x1xf32>
    %198 = arith.divf %196, %197 : vector<16x1xf32>
    %199 = vector.broadcast %191 : vector<16x1xf32> to vector<16x32xf32>
    %200 = arith.subf %183, %199 : vector<16x32xf32>
    %cst_91 = arith.constant 9.99999974E-6 : f32
    %201 = vector.broadcast %cst_91 : f32 to vector<16x1xf32>
    %202 = arith.addf %198, %201 : vector<16x1xf32>
    %203 = math.rsqrt %202 : vector<16x1xf32>
    %204 = vector.broadcast %203 : vector<16x1xf32> to vector<16x32xf32>
    %205 = arith.mulf %200, %204 : vector<16x32xf32>
    %206 = vector.broadcast %185 : vector<1x32xf32> to vector<16x32xf32>
    %207 = arith.mulf %205, %206 : vector<16x32xf32>
    %208 = vector.broadcast %187 : vector<1x32xf32> to vector<16x32xf32>
    %209 = arith.addf %207, %208 : vector<16x32xf32>
    %c0_92 = arith.constant 0 : index
    %c0_93 = arith.constant 0 : index
    %c0_94 = arith.constant 0 : index
    %210 = vector.load %arg12[%c0_92, %c0_93, %c0_94] : memref<1x32x64xf32, #tpu.memory_space<vmem>>, vector<1x32x64xf32>
    %211 = vector.shape_cast %210 : vector<1x32x64xf32> to vector<32x64xf32>
    %cst_95 = arith.constant dense<0.000000e+00> : vector<16x64xf32>
    %212 = tpu.matmul %209, %211, %cst_95 {dimension_numbers = #tpu.dot_dimension_numbers<[1], [0], [0], [1], [0, 0, 1, 1], [], []>} : vector<16x32xf32>, vector<32x64xf32>, vector<16x64xf32> -> vector<16x64xf32>
    %c0_96 = arith.constant 0 : index
    %c0_97 = arith.constant 0 : index
    %c0_98 = arith.constant 0 : index
    %213 = vector.load %arg13[%c0_96, %c0_97, %c0_98] : memref<1x1x64xf32, #tpu.memory_space<vmem>>, vector<1x1x64xf32>
    %214 = vector.shape_cast %213 : vector<1x1x64xf32> to vector<1x64xf32>
    %215 = vector.broadcast %214 : vector<1x64xf32> to vector<16x64xf32>
    %216 = arith.addf %212, %215 : vector<16x64xf32>
    %cst_99 = arith.constant 0.000000e+00 : f32
    %217 = vector.broadcast %cst_99 : f32 to vector<16x64xf32>
    %218 = arith.maximumf %216, %217 : vector<16x64xf32>
    %c0_100 = arith.constant 0 : index
    %c0_101 = arith.constant 0 : index
    %c0_102 = arith.constant 0 : index
    %219 = vector.load %arg14[%c0_100, %c0_101, %c0_102] : memref<1x64x32xf32, #tpu.memory_space<vmem>>, vector<1x64x32xf32>
    %220 = vector.shape_cast %219 : vector<1x64x32xf32> to vector<64x32xf32>
    %cst_103 = arith.constant dense<0.000000e+00> : vector<16x32xf32>
    %221 = tpu.matmul %218, %220, %cst_103 {dimension_numbers = #tpu.dot_dimension_numbers<[1], [0], [0], [1], [0, 0, 1, 1], [], []>} : vector<16x64xf32>, vector<64x32xf32>, vector<16x32xf32> -> vector<16x32xf32>
    %c0_104 = arith.constant 0 : index
    %c0_105 = arith.constant 0 : index
    %c0_106 = arith.constant 0 : index
    %222 = vector.load %arg15[%c0_104, %c0_105, %c0_106] : memref<1x1x32xf32, #tpu.memory_space<vmem>>, vector<1x1x32xf32>
    %223 = vector.shape_cast %222 : vector<1x1x32xf32> to vector<1x32xf32>
    %224 = vector.broadcast %223 : vector<1x32xf32> to vector<16x32xf32>
    %225 = arith.addf %221, %224 : vector<16x32xf32>
    %226 = arith.addf %209, %225 : vector<16x32xf32>
    %c0_107 = arith.constant 0 : index
    %c0_108 = arith.constant 0 : index
    %c0_109 = arith.constant 0 : index
    %227 = vector.load %arg18[%c0_107, %c0_108, %c0_109] : memref<1x1x32xf32, #tpu.memory_space<vmem>>, vector<1x1x32xf32>
    %228 = vector.shape_cast %227 : vector<1x1x32xf32> to vector<1x32xf32>
    %c0_110 = arith.constant 0 : index
    %c0_111 = arith.constant 0 : index
    %c0_112 = arith.constant 0 : index
    %229 = vector.load %arg19[%c0_110, %c0_111, %c0_112] : memref<1x1x32xf32, #tpu.memory_space<vmem>>, vector<1x1x32xf32>
    %230 = vector.shape_cast %229 : vector<1x1x32xf32> to vector<1x32xf32>
    %cst_113 = arith.constant dense<0.000000e+00> : vector<16xf32>
    %231 = vector.multi_reduction <add>, %226, %cst_113 [1] : vector<16x32xf32> to vector<16xf32>
    %232 = vector.shape_cast %231 : vector<16xf32> to vector<16x1xf32>
    %cst_114 = arith.constant 3.200000e+01 : f32
    %233 = vector.broadcast %cst_114 : f32 to vector<16x1xf32>
    %234 = arith.divf %232, %233 : vector<16x1xf32>
    %235 = vector.broadcast %234 : vector<16x1xf32> to vector<16x32xf32>
    %236 = arith.subf %226, %235 : vector<16x32xf32>
    %237 = arith.mulf %236, %236 : vector<16x32xf32>
    %cst_115 = arith.constant dense<0.000000e+00> : vector<16xf32>
    %238 = vector.multi_reduction <add>, %237, %cst_115 [1] : vector<16x32xf32> to vector<16xf32>
    %239 = vector.shape_cast %238 : vector<16xf32> to vector<16x1xf32>
    %cst_116 = arith.constant 3.200000e+01 : f32
    %240 = vector.broadcast %cst_116 : f32 to vector<16x1xf32>
    %241 = arith.divf %239, %240 : vector<16x1xf32>
    %242 = vector.broadcast %234 : vector<16x1xf32> to vector<16x32xf32>
    %243 = arith.subf %226, %242 : vector<16x32xf32>
    %cst_117 = arith.constant 9.99999974E-6 : f32
    %244 = vector.broadcast %cst_117 : f32 to vector<16x1xf32>
    %245 = arith.addf %241, %244 : vector<16x1xf32>
    %246 = math.rsqrt %245 : vector<16x1xf32>
    %247 = vector.broadcast %246 : vector<16x1xf32> to vector<16x32xf32>
    %248 = arith.mulf %243, %247 : vector<16x32xf32>
    %249 = vector.broadcast %228 : vector<1x32xf32> to vector<16x32xf32>
    %250 = arith.mulf %248, %249 : vector<16x32xf32>
    %251 = vector.broadcast %230 : vector<1x32xf32> to vector<16x32xf32>
    %252 = arith.addf %250, %251 : vector<16x32xf32>
    %c0_118 = arith.constant 0 : index
    %c0_119 = arith.constant 0 : index
    %253 = vector.load %arg20[%c0_118, %c0_119] : memref<16x32xf32, #tpu.memory_space<vmem>>, vector<16x32xf32>
    tpu.vector_store %arg20[%c0_118, %c0_119], %252 {strides = array<i32>} : memref<16x32xf32, #tpu.memory_space<vmem>>, vector<16x32xf32>,
    return
  }
  func.func @transform_0(%arg0: i32) -> (i32, i32) {
    %c0_i32 = arith.constant 0 : i32
    %c0_i32_0 = arith.constant 0 : i32
    %c0_i32_1 = arith.constant 0 : i32
    return %c0_i32, %c0_i32_0 : i32, i32
  }
  func.func @transform_1(%arg0: i32) -> (i32, i32) {
    %c0_i32 = arith.constant 0 : i32
    %c0_i32_0 = arith.constant 0 : i32
    %c0_i32_1 = arith.constant 0 : i32
    return %c0_i32, %c0_i32_0 : i32, i32
  }
  func.func @transform_2(%arg0: i32) -> (i32, i32) {
    %c0_i32 = arith.constant 0 : i32
    %c0_i32_0 = arith.constant 0 : i32
    %c0_i32_1 = arith.constant 0 : i32
    return %c0_i32, %c0_i32_0 : i32, i32
  }
  func.func @transform_3(%arg0: i32) -> (i32, i32) {
    %c0_i32 = arith.constant 0 : i32
    %c0_i32_0 = arith.constant 0 : i32
    %c0_i32_1 = arith.constant 0 : i32
    return %c0_i32, %c0_i32_0 : i32, i32
  }
  func.func @transform_4(%arg0: i32) -> (i32, i32) {
    %c0_i32 = arith.constant 0 : i32
    %c0_i32_0 = arith.constant 0 : i32
    %c0_i32_1 = arith.constant 0 : i32
    return %c0_i32, %c0_i32_0 : i32, i32
  }
  func.func @transform_5(%arg0: i32) -> (i32, i32, i32) {
    %c0_i32 = arith.constant 0 : i32
    %c0_i32_0 = arith.constant 0 : i32
    %c0_i32_1 = arith.constant 0 : i32
    return %arg0, %c0_i32, %c0_i32_0 : i32, i32, i32
  }
  func.func @transform_6(%arg0: i32) -> (i32, i32, i32) {
    %c0_i32 = arith.constant 0 : i32
    %c0_i32_0 = arith.constant 0 : i32
    %c0_i32_1 = arith.constant 0 : i32
    return %arg0, %c0_i32, %c0_i32_0 : i32, i32, i32
  }
  func.func @transform_7(%arg0: i32) -> (i32, i32, i32) {
    %c0_i32 = arith.constant 0 : i32
    %c0_i32_0 = arith.constant 0 : i32
    %c0_i32_1 = arith.constant 0 : i32
    return %arg0, %c0_i32, %c0_i32_0 : i32, i32, i32
  }
  func.func @transform_8(%arg0: i32) -> (i32, i32, i32) {
    %c0_i32 = arith.constant 0 : i32
    %c0_i32_0 = arith.constant 0 : i32
    %c0_i32_1 = arith.constant 0 : i32
    return %arg0, %c0_i32, %c0_i32_0 : i32, i32, i32
  }
  func.func @transform_9(%arg0: i32) -> (i32, i32, i32) {
    %c0_i32 = arith.constant 0 : i32
    %c0_i32_0 = arith.constant 0 : i32
    %c0_i32_1 = arith.constant 0 : i32
    return %arg0, %c0_i32, %c0_i32_0 : i32, i32, i32
  }
  func.func @transform_10(%arg0: i32) -> (i32, i32, i32) {
    %c0_i32 = arith.constant 0 : i32
    %c0_i32_0 = arith.constant 0 : i32
    %c0_i32_1 = arith.constant 0 : i32
    return %arg0, %c0_i32, %c0_i32_0 : i32, i32, i32
  }
  func.func @transform_11(%arg0: i32) -> (i32, i32, i32) {
    %c0_i32 = arith.constant 0 : i32
    %c0_i32_0 = arith.constant 0 : i32
    %c0_i32_1 = arith.constant 0 : i32
    return %arg0, %c0_i32, %c0_i32_0 : i32, i32, i32
  }
  func.func @transform_12(%arg0: i32) -> (i32, i32, i32) {
    %c0_i32 = arith.constant 0 : i32
    %c0_i32_0 = arith.constant 0 : i32
    %c0_i32_1 = arith.constant 0 : i32
    return %arg0, %c0_i32, %c0_i32_0 : i32, i32, i32
  }
  func.func @transform_13(%arg0: i32) -> (i32, i32, i32) {
    %c0_i32 = arith.constant 0 : i32
    %c0_i32_0 = arith.constant 0 : i32
    %c0_i32_1 = arith.constant 0 : i32
    return %arg0, %c0_i32, %c0_i32_0 : i32, i32, i32
  }
  func.func @transform_14(%arg0: i32) -> (i32, i32, i32) {
    %c0_i32 = arith.constant 0 : i32
    %c0_i32_0 = arith.constant 0 : i32
    %c0_i32_1 = arith.constant 0 : i32
    return %arg0, %c0_i32, %c0_i32_0 : i32, i32, i32
  }
  func.func @transform_15(%arg0: i32) -> (i32, i32, i32) {
    %c0_i32 = arith.constant 0 : i32
    %c0_i32_0 = arith.constant 0 : i32
    %c0_i32_1 = arith.constant 0 : i32
    return %arg0, %c0_i32, %c0_i32_0 : i32, i32, i32
  }
  func.func @transform_16(%arg0: i32) -> (i32, i32, i32) {
    %c0_i32 = arith.constant 0 : i32
    %c0_i32_0 = arith.constant 0 : i32
    %c0_i32_1 = arith.constant 0 : i32
    return %arg0, %c0_i32, %c0_i32_0 : i32, i32, i32
  }
  func.func @transform_17(%arg0: i32) -> (i32, i32, i32) {
    %c0_i32 = arith.constant 0 : i32
    %c0_i32_0 = arith.constant 0 : i32
    %c0_i32_1 = arith.constant 0 : i32
    return %arg0, %c0_i32, %c0_i32_0 : i32, i32, i32
  }
  func.func @transform_18(%arg0: i32) -> (i32, i32, i32) {
    %c0_i32 = arith.constant 0 : i32
    %c0_i32_0 = arith.constant 0 : i32
    %c0_i32_1 = arith.constant 0 : i32
    return %arg0, %c0_i32, %c0_i32_0 : i32, i32, i32
  }
  func.func @transform_19(%arg0: i32) -> (i32, i32) {
    %c0_i32 = arith.constant 0 : i32
    %c0_i32_0 = arith.constant 0 : i32
    %c0_i32_1 = arith.constant 0 : i32
    return %c0_i32, %c0_i32_0 : i32, i32
  }
}

module attributes {stable_mosaic.version = 11 : i64} {
  func.func @kernel(%arg0: i32, %arg1: memref<8x32xf32, #tpu.memory_space<vmem>>, %arg2: memref<8x32xf32, #tpu.memory_space<vmem>>, %arg3: memref<32x2xf32, #tpu.memory_space<vmem>>, %arg4: memref<1x2xf32, #tpu.memory_space<vmem>>, %arg5: memref<32x1xf32, #tpu.memory_space<vmem>>, %arg6: memref<1x1xf32, #tpu.memory_space<vmem>>, %arg7: memref<32x32xf32, #tpu.memory_space<vmem>>, %arg8: memref<1x32xf32, #tpu.memory_space<vmem>>, %arg9: memref<32x32xf32, #tpu.memory_space<vmem>>, %arg10: memref<1x32xf32, #tpu.memory_space<vmem>>, %arg11: memref<32x2xf32, #tpu.memory_space<vmem>>, %arg12: memref<1x2xf32, #tpu.memory_space<vmem>>, %arg13: memref<8x1xf32, #tpu.memory_space<vmem>>, %arg14: memref<8x2xf32, #tpu.memory_space<vmem>>) attributes {dimension_semantics = [#tpu.dimension_semantics<arbitrary>], iteration_bounds = array<i64: 1>, scalar_prefetch = 0 : i64, scratch_operands = 0 : i64, tpu.core_type = #tpu.core_type<tc>, window_params = [{pipeline_mode = #tpu.pipeline_mode<synchronous>, transform_indices = @transform_0, window_bounds = array<i64: 8, 32>}, {pipeline_mode = #tpu.pipeline_mode<synchronous>, transform_indices = @transform_1, window_bounds = array<i64: 8, 32>}, {pipeline_mode = #tpu.pipeline_mode<synchronous>, transform_indices = @transform_2, window_bounds = array<i64: 32, 2>}, {pipeline_mode = #tpu.pipeline_mode<synchronous>, transform_indices = @transform_3, window_bounds = array<i64: 1, 2>}, {pipeline_mode = #tpu.pipeline_mode<synchronous>, transform_indices = @transform_4, window_bounds = array<i64: 32, 1>}, {pipeline_mode = #tpu.pipeline_mode<synchronous>, transform_indices = @transform_5, window_bounds = array<i64: 1, 1>}, {pipeline_mode = #tpu.pipeline_mode<synchronous>, transform_indices = @transform_6, window_bounds = array<i64: 32, 32>}, {pipeline_mode = #tpu.pipeline_mode<synchronous>, transform_indices = @transform_7, window_bounds = array<i64: 1, 32>}, {pipeline_mode = #tpu.pipeline_mode<synchronous>, transform_indices = @transform_8, window_bounds = array<i64: 32, 32>}, {pipeline_mode = #tpu.pipeline_mode<synchronous>, transform_indices = @transform_9, window_bounds = array<i64: 1, 32>}, {pipeline_mode = #tpu.pipeline_mode<synchronous>, transform_indices = @transform_10, window_bounds = array<i64: 32, 2>}, {pipeline_mode = #tpu.pipeline_mode<synchronous>, transform_indices = @transform_11, window_bounds = array<i64: 1, 2>}, {pipeline_mode = #tpu.pipeline_mode<synchronous>, transform_indices = @transform_12, window_bounds = array<i64: 8, 1>}, {pipeline_mode = #tpu.pipeline_mode<synchronous>, transform_indices = @transform_13, window_bounds = array<i64: 8, 2>}]} {
    %c0 = arith.constant 0 : index
    %c0_0 = arith.constant 0 : index
    %0 = vector.load %arg2[%c0, %c0_0] : memref<8x32xf32, #tpu.memory_space<vmem>>, vector<8x32xf32>
    %c0_1 = arith.constant 0 : index
    %c0_2 = arith.constant 0 : index
    %1 = vector.load %arg3[%c0_1, %c0_2] : memref<32x2xf32, #tpu.memory_space<vmem>>, vector<32x2xf32>
    %cst = arith.constant dense<0.000000e+00> : vector<8x2xf32>
    %2 = tpu.matmul %0, %1, %cst {dimension_numbers = #tpu.dot_dimension_numbers<[1], [0], [0], [1], [0, 0, 1, 1], [], []>} : vector<8x32xf32>, vector<32x2xf32>, vector<8x2xf32> -> vector<8x2xf32>
    %c0_3 = arith.constant 0 : index
    %c0_4 = arith.constant 0 : index
    %3 = vector.load %arg4[%c0_3, %c0_4] : memref<1x2xf32, #tpu.memory_space<vmem>>, vector<1x2xf32>
    %4 = vector.broadcast %3 : vector<1x2xf32> to vector<8x2xf32>
    %5 = arith.addf %2, %4 : vector<8x2xf32>
    %cst_5 = arith.constant 0.000000e+00 : f32
    %6 = vector.broadcast %cst_5 : f32 to vector<8x2xf32>
    %7 = arith.subf %6, %5 : vector<8x2xf32>
    %8 = math.exp %7 : vector<8x2xf32>
    %cst_6 = arith.constant 1.000000e+00 : f32
    %9 = vector.broadcast %cst_6 : f32 to vector<8x2xf32>
    %10 = arith.addf %9, %8 : vector<8x2xf32>
    %cst_7 = arith.constant 1.000000e+00 : f32
    %11 = vector.broadcast %cst_7 : f32 to vector<8x2xf32>
    %12 = arith.divf %11, %10 : vector<8x2xf32>
    %cst_8 = arith.constant 0.000000e+00 : f32
    %cst_9 = arith.constant 1.000000e+00 : f32
    %13 = vector.broadcast %cst_8 : f32 to vector<8x2xf32>
    %14 = arith.maximumf %13, %12 : vector<8x2xf32>
    %15 = vector.broadcast %cst_9 : f32 to vector<8x2xf32>
    %16 = arith.minimumf %15, %14 : vector<8x2xf32>
    %cst_10 = arith.constant 9.99999974E-6 : f32
    %17 = vector.broadcast %cst_10 : f32 to vector<8x2xf32>
    %18 = arith.maximumf %16, %17 : vector<8x2xf32>
    %19 = math.log %18 : vector<8x2xf32>
    %cst_11 = arith.constant 1.000000e+00 : f32
    %20 = vector.broadcast %cst_11 : f32 to vector<8x2xf32>
    %21 = arith.subf %20, %16 : vector<8x2xf32>
    %cst_12 = arith.constant 9.99999974E-6 : f32
    %22 = vector.broadcast %cst_12 : f32 to vector<8x2xf32>
    %23 = arith.maximumf %21, %22 : vector<8x2xf32>
    %24 = math.log %23 : vector<8x2xf32>
    %25 = arith.subf %19, %24 : vector<8x2xf32>
    %c0_13 = arith.constant 0 : index
    %c0_14 = arith.constant 0 : index
    %26 = vector.load %arg1[%c0_13, %c0_14] : memref<8x32xf32, #tpu.memory_space<vmem>>, vector<8x32xf32>
    %c0_15 = arith.constant 0 : index
    %c0_16 = arith.constant 0 : index
    %27 = vector.load %arg5[%c0_15, %c0_16] : memref<32x1xf32, #tpu.memory_space<vmem>>, vector<32x1xf32>
    %cst_17 = arith.constant dense<0.000000e+00> : vector<8x1xf32>
    %28 = tpu.matmul %26, %27, %cst_17 {dimension_numbers = #tpu.dot_dimension_numbers<[1], [0], [0], [1], [0, 0, 1, 1], [], []>} : vector<8x32xf32>, vector<32x1xf32>, vector<8x1xf32> -> vector<8x1xf32>
    %c0_18 = arith.constant 0 : index
    %c0_19 = arith.constant 0 : index
    %29 = vector.load %arg6[%c0_18, %c0_19] : memref<1x1xf32, #tpu.memory_space<vmem>>, vector<1x1xf32>
    %30 = vector.broadcast %29 : vector<1x1xf32> to vector<8x1xf32>
    %31 = arith.addf %28, %30 : vector<8x1xf32>
    %c0_20 = arith.constant 0 : index
    %c0_21 = arith.constant 0 : index
    %32 = vector.load %arg7[%c0_20, %c0_21] : memref<32x32xf32, #tpu.memory_space<vmem>>, vector<32x32xf32>
    %cst_22 = arith.constant dense<0.000000e+00> : vector<8x32xf32>
    %33 = tpu.matmul %26, %32, %cst_22 {dimension_numbers = #tpu.dot_dimension_numbers<[1], [0], [0], [1], [0, 0, 1, 1], [], []>} : vector<8x32xf32>, vector<32x32xf32>, vector<8x32xf32> -> vector<8x32xf32>
    %c0_23 = arith.constant 0 : index
    %c0_24 = arith.constant 0 : index
    %34 = vector.load %arg8[%c0_23, %c0_24] : memref<1x32xf32, #tpu.memory_space<vmem>>, vector<1x32xf32>
    %35 = vector.broadcast %34 : vector<1x32xf32> to vector<8x32xf32>
    %36 = arith.addf %33, %35 : vector<8x32xf32>
    %cst_25 = arith.constant 0.000000e+00 : f32
    %37 = vector.broadcast %cst_25 : f32 to vector<8x32xf32>
    %38 = arith.maximumf %36, %37 : vector<8x32xf32>
    %c0_26 = arith.constant 0 : index
    %c0_27 = arith.constant 0 : index
    %39 = vector.load %arg9[%c0_26, %c0_27] : memref<32x32xf32, #tpu.memory_space<vmem>>, vector<32x32xf32>
    %cst_28 = arith.constant dense<0.000000e+00> : vector<8x32xf32>
    %40 = tpu.matmul %38, %39, %cst_28 {dimension_numbers = #tpu.dot_dimension_numbers<[1], [0], [0], [1], [0, 0, 1, 1], [], []>} : vector<8x32xf32>, vector<32x32xf32>, vector<8x32xf32> -> vector<8x32xf32>
    %c0_29 = arith.constant 0 : index
    %c0_30 = arith.constant 0 : index
    %41 = vector.load %arg10[%c0_29, %c0_30] : memref<1x32xf32, #tpu.memory_space<vmem>>, vector<1x32xf32>
    %42 = vector.broadcast %41 : vector<1x32xf32> to vector<8x32xf32>
    %43 = arith.addf %40, %42 : vector<8x32xf32>
    %cst_31 = arith.constant 0.000000e+00 : f32
    %44 = vector.broadcast %cst_31 : f32 to vector<8x32xf32>
    %45 = arith.maximumf %43, %44 : vector<8x32xf32>
    %c0_32 = arith.constant 0 : index
    %c0_33 = arith.constant 0 : index
    %46 = vector.load %arg11[%c0_32, %c0_33] : memref<32x2xf32, #tpu.memory_space<vmem>>, vector<32x2xf32>
    %cst_34 = arith.constant dense<0.000000e+00> : vector<8x2xf32>
    %47 = tpu.matmul %45, %46, %cst_34 {dimension_numbers = #tpu.dot_dimension_numbers<[1], [0], [0], [1], [0, 0, 1, 1], [], []>} : vector<8x32xf32>, vector<32x2xf32>, vector<8x2xf32> -> vector<8x2xf32>
    %c0_35 = arith.constant 0 : index
    %c0_36 = arith.constant 0 : index
    %48 = vector.load %arg12[%c0_35, %c0_36] : memref<1x2xf32, #tpu.memory_space<vmem>>, vector<1x2xf32>
    %49 = vector.broadcast %48 : vector<1x2xf32> to vector<8x2xf32>
    %50 = arith.addf %47, %49 : vector<8x2xf32>
    %51 = arith.addf %50, %25 : vector<8x2xf32>
    %cst_37 = arith.constant 0.000000e+00 : f32
    %52 = vector.broadcast %cst_37 : f32 to vector<8x2xf32>
    %53 = arith.subf %52, %51 : vector<8x2xf32>
    %54 = math.exp %53 : vector<8x2xf32>
    %cst_38 = arith.constant 1.000000e+00 : f32
    %55 = vector.broadcast %cst_38 : f32 to vector<8x2xf32>
    %56 = arith.addf %55, %54 : vector<8x2xf32>
    %cst_39 = arith.constant 1.000000e+00 : f32
    %57 = vector.broadcast %cst_39 : f32 to vector<8x2xf32>
    %58 = arith.divf %57, %56 : vector<8x2xf32>
    %cst_40 = arith.constant 5.000000e-01 : f32
    %59 = vector.broadcast %cst_40 : f32 to vector<8x2xf32>
    %60 = arith.subf %58, %59 : vector<8x2xf32>
    %cst_41 = arith.constant 2.000000e+01 : f32
    %61 = vector.broadcast %cst_41 : f32 to vector<8x2xf32>
    %62 = arith.mulf %60, %61 : vector<8x2xf32>
    %c0_42 = arith.constant 0 : index
    %c0_43 = arith.constant 0 : index
    %63 = vector.load %arg13[%c0_42, %c0_43] : memref<8x1xf32, #tpu.memory_space<vmem>>, vector<8x1xf32>
    tpu.vector_store %arg13[%c0_42, %c0_43], %31 {strides = array<i32>} : memref<8x1xf32, #tpu.memory_space<vmem>>, vector<8x1xf32>,
    %c0_44 = arith.constant 0 : index
    %c0_45 = arith.constant 0 : index
    %64 = vector.load %arg14[%c0_44, %c0_45] : memref<8x2xf32, #tpu.memory_space<vmem>>, vector<8x2xf32>
    tpu.vector_store %arg14[%c0_44, %c0_45], %62 {strides = array<i32>} : memref<8x2xf32, #tpu.memory_space<vmem>>, vector<8x2xf32>,
    return
  }
  func.func @transform_0(%arg0: i32) -> (i32, i32) {
    %c0_i32 = arith.constant 0 : i32
    %c0_i32_0 = arith.constant 0 : i32
    %c0_i32_1 = arith.constant 0 : i32
    return %c0_i32, %c0_i32_0 : i32, i32
  }
  func.func @transform_1(%arg0: i32) -> (i32, i32) {
    %c0_i32 = arith.constant 0 : i32
    %c0_i32_0 = arith.constant 0 : i32
    %c0_i32_1 = arith.constant 0 : i32
    return %c0_i32, %c0_i32_0 : i32, i32
  }
  func.func @transform_2(%arg0: i32) -> (i32, i32) {
    %c0_i32 = arith.constant 0 : i32
    %c0_i32_0 = arith.constant 0 : i32
    %c0_i32_1 = arith.constant 0 : i32
    return %c0_i32, %c0_i32_0 : i32, i32
  }
  func.func @transform_3(%arg0: i32) -> (i32, i32) {
    %c0_i32 = arith.constant 0 : i32
    %c0_i32_0 = arith.constant 0 : i32
    %c0_i32_1 = arith.constant 0 : i32
    return %c0_i32, %c0_i32_0 : i32, i32
  }
  func.func @transform_4(%arg0: i32) -> (i32, i32) {
    %c0_i32 = arith.constant 0 : i32
    %c0_i32_0 = arith.constant 0 : i32
    %c0_i32_1 = arith.constant 0 : i32
    return %c0_i32, %c0_i32_0 : i32, i32
  }
  func.func @transform_5(%arg0: i32) -> (i32, i32) {
    %c0_i32 = arith.constant 0 : i32
    %c0_i32_0 = arith.constant 0 : i32
    %c0_i32_1 = arith.constant 0 : i32
    return %c0_i32, %c0_i32_0 : i32, i32
  }
  func.func @transform_6(%arg0: i32) -> (i32, i32) {
    %c0_i32 = arith.constant 0 : i32
    %c0_i32_0 = arith.constant 0 : i32
    %c0_i32_1 = arith.constant 0 : i32
    return %c0_i32, %c0_i32_0 : i32, i32
  }
  func.func @transform_7(%arg0: i32) -> (i32, i32) {
    %c0_i32 = arith.constant 0 : i32
    %c0_i32_0 = arith.constant 0 : i32
    %c0_i32_1 = arith.constant 0 : i32
    return %c0_i32, %c0_i32_0 : i32, i32
  }
  func.func @transform_8(%arg0: i32) -> (i32, i32) {
    %c0_i32 = arith.constant 0 : i32
    %c0_i32_0 = arith.constant 0 : i32
    %c0_i32_1 = arith.constant 0 : i32
    return %c0_i32, %c0_i32_0 : i32, i32
  }
  func.func @transform_9(%arg0: i32) -> (i32, i32) {
    %c0_i32 = arith.constant 0 : i32
    %c0_i32_0 = arith.constant 0 : i32
    %c0_i32_1 = arith.constant 0 : i32
    return %c0_i32, %c0_i32_0 : i32, i32
  }
  func.func @transform_10(%arg0: i32) -> (i32, i32) {
    %c0_i32 = arith.constant 0 : i32
    %c0_i32_0 = arith.constant 0 : i32
    %c0_i32_1 = arith.constant 0 : i32
    return %c0_i32, %c0_i32_0 : i32, i32
  }
  func.func @transform_11(%arg0: i32) -> (i32, i32) {
    %c0_i32 = arith.constant 0 : i32
    %c0_i32_0 = arith.constant 0 : i32
    %c0_i32_1 = arith.constant 0 : i32
    return %c0_i32, %c0_i32_0 : i32, i32
  }
  func.func @transform_12(%arg0: i32) -> (i32, i32) {
    %c0_i32 = arith.constant 0 : i32
    %c0_i32_0 = arith.constant 0 : i32
    %c0_i32_1 = arith.constant 0 : i32
    return %c0_i32, %c0_i32_0 : i32, i32
  }
  func.func @transform_13(%arg0: i32) -> (i32, i32) {
    %c0_i32 = arith.constant 0 : i32
    %c0_i32_0 = arith.constant 0 : i32
    %c0_i32_1 = arith.constant 0 : i32
    return %c0_i32, %c0_i32_0 : i32, i32
  }
}

module attributes {stable_mosaic.version = 11 : i64} {
  func.func @kernel(%arg0: i32, %arg1: memref<16x32xf32, #tpu.memory_space<vmem>>, %arg2: memref<16x32xf32, #tpu.memory_space<vmem>>, %arg3: memref<8x32xf32, #tpu.memory_space<vmem>>, %arg4: memref<2x8xf32, #tpu.memory_space<vmem>>, %arg5: memref<1x32x64xf32, #tpu.memory_space<vmem>>, %arg6: memref<1x1x64xf32, #tpu.memory_space<vmem>>, %arg7: memref<1x32x32xf32, #tpu.memory_space<vmem>>, %arg8: memref<1x1x32xf32, #tpu.memory_space<vmem>>, %arg9: memref<1x32x32xf32, #tpu.memory_space<vmem>>, %arg10: memref<1x1x32xf32, #tpu.memory_space<vmem>>, %arg11: memref<1x32x32xf32, #tpu.memory_space<vmem>>, %arg12: memref<1x1x32xf32, #tpu.memory_space<vmem>>, %arg13: memref<1x32x32xf32, #tpu.memory_space<vmem>>, %arg14: memref<1x1x32xf32, #tpu.memory_space<vmem>>, %arg15: memref<1x32x32xf32, #tpu.memory_space<vmem>>, %arg16: memref<1x1x32xf32, #tpu.memory_space<vmem>>, %arg17: memref<1x32x32xf32, #tpu.memory_space<vmem>>, %arg18: memref<1x1x32xf32, #tpu.memory_space<vmem>>, %arg19: memref<1x32x64xf32, #tpu.memory_space<vmem>>, %arg20: memref<1x1x64xf32, #tpu.memory_space<vmem>>, %arg21: memref<1x64x32xf32, #tpu.memory_space<vmem>>, %arg22: memref<1x1x32xf32, #tpu.memory_space<vmem>>, %arg23: memref<1x1x32xf32, #tpu.memory_space<vmem>>, %arg24: memref<1x1x32xf32, #tpu.memory_space<vmem>>, %arg25: memref<1x1x32xf32, #tpu.memory_space<vmem>>, %arg26: memref<1x1x32xf32, #tpu.memory_space<vmem>>, %arg27: memref<1x1x32xf32, #tpu.memory_space<vmem>>, %arg28: memref<1x1x32xf32, #tpu.memory_space<vmem>>, %arg29: memref<8x32xf32, #tpu.memory_space<vmem>>, %arg30: memref<1x8x8xf32, #tpu.memory_space<vmem>>, %arg31: memref<8x32xf32, #tpu.memory_space<vmem>>) attributes {dimension_semantics = [#tpu.dimension_semantics<arbitrary>], iteration_bounds = array<i64: 2>, scalar_prefetch = 0 : i64, scratch_operands = 1 : i64, tpu.core_type = #tpu.core_type<tc>, window_params = [{pipeline_mode = #tpu.pipeline_mode<synchronous>, transform_indices = @transform_0, window_bounds = array<i64: 16, 32>}, {pipeline_mode = #tpu.pipeline_mode<synchronous>, transform_indices = @transform_1, window_bounds = array<i64: 16, 32>}, {pipeline_mode = #tpu.pipeline_mode<synchronous>, transform_indices = @transform_2, window_bounds = array<i64: 8, 32>}, {pipeline_mode = #tpu.pipeline_mode<synchronous>, transform_indices = @transform_3, window_bounds = array<i64: 2, 8>}, {transform_indices = @transform_4, window_bounds = array<i64: 1, 32, 64>}, {transform_indices = @transform_5, window_bounds = array<i64: 1, 1, 64>}, {transform_indices = @transform_6, window_bounds = array<i64: 1, 32, 32>}, {transform_indices = @transform_7, window_bounds = array<i64: 1, 1, 32>}, {transform_indices = @transform_8, window_bounds = array<i64: 1, 32, 32>}, {transform_indices = @transform_9, window_bounds = array<i64: 1, 1, 32>}, {transform_indices = @transform_10, window_bounds = array<i64: 1, 32, 32>}, {transform_indices = @transform_11, window_bounds = array<i64: 1, 1, 32>}, {transform_indices = @transform_12, window_bounds = array<i64: 1, 32, 32>}, {transform_indices = @transform_13, window_bounds = array<i64: 1, 1, 32>}, {transform_indices = @transform_14, window_bounds = array<i64: 1, 32, 32>}, {transform_indices = @transform_15, window_bounds = array<i64: 1, 1, 32>}, {transform_indices = @transform_16, window_bounds = array<i64: 1, 32, 32>}, {transform_indices = @transform_17, window_bounds = array<i64: 1, 1, 32>}, {transform_indices = @transform_18, window_bounds = array<i64: 1, 32, 64>}, {transform_indices = @transform_19, window_bounds = array<i64: 1, 1, 64>}, {transform_indices = @transform_20, window_bounds = array<i64: 1, 64, 32>}, {transform_indices = @transform_21, window_bounds = array<i64: 1, 1, 32>}, {transform_indices = @transform_22, window_bounds = array<i64: 1, 1, 32>}, {transform_indices = @transform_23, window_bounds = array<i64: 1, 1, 32>}, {transform_indices = @transform_24, window_bounds = array<i64: 1, 1, 32>}, {transform_indices = @transform_25, window_bounds = array<i64: 1, 1, 32>}, {transform_indices = @transform_26, window_bounds = array<i64: 1, 1, 32>}, {transform_indices = @transform_27, window_bounds = array<i64: 1, 1, 32>}, {pipeline_mode = #tpu.pipeline_mode<synchronous>, transform_indices = @transform_28, window_bounds = array<i64: 8, 32>}, {transform_indices = @transform_29, window_bounds = array<i64: 1, 8, 8>}]} {
    %c0_i32 = arith.constant 0 : i32
    %0 = arith.cmpi eq, %arg0, %c0_i32 : i32
    %1 = arith.extui %0 : i1 to i32
    %c0_i32_0 = arith.constant 0 : i32
    %2 = arith.cmpi ne, %1, %c0_i32_0 : i32
    scf.if %2 {
      %cst_228 = arith.constant 0.000000e+00 : f32
      %466 = vector.broadcast %cst_228 : f32 to vector<8x32xf32>
      %c0_229 = arith.constant 0 : index
      %c0_230 = arith.constant 0 : index
      %467 = vector.load %arg29[%c0_229, %c0_230] : memref<8x32xf32, #tpu.memory_space<vmem>>, vector<8x32xf32>
      tpu.vector_store %arg29[%c0_229, %c0_230], %466 {strides = array<i32>} : memref<8x32xf32, #tpu.memory_space<vmem>>, vector<8x32xf32>,
    } else {
    }
    %c0 = arith.constant 0 : index
    %c0_1 = arith.constant 0 : index
    %3 = vector.load %arg29[%c0, %c0_1] : memref<8x32xf32, #tpu.memory_space<vmem>>, vector<8x32xf32>
    %c0_2 = arith.constant 0 : index
    %c0_3 = arith.constant 0 : index
    %4 = vector.load %arg1[%c0_2, %c0_3] : memref<16x32xf32, #tpu.memory_space<vmem>>, vector<16x32xf32>
    %c0_4 = arith.constant 0 : index
    %c0_5 = arith.constant 0 : index
    %5 = vector.load %arg2[%c0_4, %c0_5] : memref<16x32xf32, #tpu.memory_space<vmem>>, vector<16x32xf32>
    %c0_6 = arith.constant 0 : index
    %c0_7 = arith.constant 0 : index
    %6 = vector.load %arg3[%c0_6, %c0_7] : memref<8x32xf32, #tpu.memory_space<vmem>>, vector<8x32xf32>
    %c0_8 = arith.constant 0 : index
    %c0_9 = arith.constant 0 : index
    %7 = vector.load %arg4[%c0_8, %c0_9] : memref<2x8xf32, #tpu.memory_space<vmem>>, vector<2x8xf32>
    %8 = arith.addf %3, %6 : vector<8x32xf32>
    %c0_10 = arith.constant 0 : index
    %c0_11 = arith.constant 0 : index
    %c0_12 = arith.constant 0 : index
    %9 = vector.load %arg5[%c0_10, %c0_11, %c0_12] : memref<1x32x64xf32, #tpu.memory_space<vmem>>, vector<1x32x64xf32>
    %10 = vector.shape_cast %9 : vector<1x32x64xf32> to vector<32x64xf32>
    %cst = arith.constant dense<0.000000e+00> : vector<8x64xf32>
    %11 = tpu.matmul %8, %10, %cst {dimension_numbers = #tpu.dot_dimension_numbers<[1], [0], [0], [1], [0, 0, 1, 1], [], []>} : vector<8x32xf32>, vector<32x64xf32>, vector<8x64xf32> -> vector<8x64xf32>
    %c0_13 = arith.constant 0 : index
    %c0_14 = arith.constant 0 : index
    %c0_15 = arith.constant 0 : index
    %12 = vector.load %arg6[%c0_13, %c0_14, %c0_15] : memref<1x1x64xf32, #tpu.memory_space<vmem>>, vector<1x1x64xf32>
    %13 = vector.shape_cast %12 : vector<1x1x64xf32> to vector<1x64xf32>
    %14 = vector.broadcast %13 : vector<1x64xf32> to vector<8x64xf32>
    %15 = arith.addf %11, %14 : vector<8x64xf32>
    %c0_16 = arith.constant 0 : index
    %c0_17 = arith.constant 0 : index
    %c0_18 = arith.constant 0 : index
    %16 = vector.load %arg7[%c0_16, %c0_17, %c0_18] : memref<1x32x32xf32, #tpu.memory_space<vmem>>, vector<1x32x32xf32>
    %17 = vector.shape_cast %16 : vector<1x32x32xf32> to vector<32x32xf32>
    %cst_19 = arith.constant dense<0.000000e+00> : vector<8x32xf32>
    %18 = tpu.matmul %3, %17, %cst_19 {dimension_numbers = #tpu.dot_dimension_numbers<[1], [0], [0], [1], [0, 0, 1, 1], [], []>} : vector<8x32xf32>, vector<32x32xf32>, vector<8x32xf32> -> vector<8x32xf32>
    %c0_20 = arith.constant 0 : index
    %c0_21 = arith.constant 0 : index
    %c0_22 = arith.constant 0 : index
    %19 = vector.load %arg8[%c0_20, %c0_21, %c0_22] : memref<1x1x32xf32, #tpu.memory_space<vmem>>, vector<1x1x32xf32>
    %20 = vector.shape_cast %19 : vector<1x1x32xf32> to vector<1x32xf32>
    %21 = vector.broadcast %20 : vector<1x32xf32> to vector<8x32xf32>
    %22 = arith.addf %18, %21 : vector<8x32xf32>
    %23 = vector.extract_strided_slice %15 {offsets = [0, 0], sizes = [4, 8], strides = [1, 1]} : vector<8x64xf32> to vector<4x8xf32>
    %cst_23 = arith.constant 0.353553385 : f32
    %24 = vector.broadcast %cst_23 : f32 to vector<4x8xf32>
    %25 = arith.mulf %23, %24 : vector<4x8xf32>
    %26 = vector.extract_strided_slice %15 {offsets = [0, 32], sizes = [4, 8], strides = [1, 1]} : vector<8x64xf32> to vector<4x8xf32>
    %27 = vector.extract_strided_slice %22 {offsets = [0, 0], sizes = [4, 8], strides = [1, 1]} : vector<8x32xf32> to vector<4x8xf32>
    %cst_24 = arith.constant dense<0.000000e+00> : vector<4x4xf32>
    %28 = tpu.matmul %25, %26, %cst_24 {dimension_numbers = #tpu.dot_dimension_numbers<[1], [1], [0], [0], [0, 0, 1, 0], [], []>} : vector<4x8xf32>, vector<4x8xf32>, vector<4x4xf32> -> vector<4x4xf32>
    %cst_25 = arith.constant dense<0xFF800000> : vector<4xf32>
    %29 = vector.multi_reduction <maximumf>, %28, %cst_25 [1] : vector<4x4xf32> to vector<4xf32>
    %30 = vector.shape_cast %29 : vector<4xf32> to vector<4x1xf32>
    %31 = vector.broadcast %30 : vector<4x1xf32> to vector<4x4xf32>
    %32 = arith.subf %28, %31 : vector<4x4xf32>
    %33 = math.exp %32 : vector<4x4xf32>
    %cst_26 = arith.constant dense<0.000000e+00> : vector<4xf32>
    %34 = vector.multi_reduction <add>, %33, %cst_26 [1] : vector<4x4xf32> to vector<4xf32>
    %35 = vector.shape_cast %34 : vector<4xf32> to vector<4x1xf32>
    %36 = vector.broadcast %35 : vector<4x1xf32> to vector<4x4xf32>
    %37 = arith.divf %33, %36 : vector<4x4xf32>
    %cst_27 = arith.constant dense<0.000000e+00> : vector<4x8xf32>
    %38 = tpu.matmul %37, %27, %cst_27 {dimension_numbers = #tpu.dot_dimension_numbers<[1], [0], [0], [1], [0, 0, 1, 1], [], []>} : vector<4x4xf32>, vector<4x8xf32>, vector<4x8xf32> -> vector<4x8xf32>
    %c0_28 = arith.constant 0 : index
    %c0_29 = arith.constant 0 : index
    %39 = vector.load %arg31[%c0_28, %c0_29] : memref<8x32xf32, #tpu.memory_space<vmem>>, vector<4x8xf32>
    tpu.vector_store %arg31[%c0_28, %c0_29], %38 {strides = array<i32>} : memref<8x32xf32, #tpu.memory_space<vmem>>, vector<4x8xf32>,
    %40 = vector.extract_strided_slice %15 {offsets = [0, 8], sizes = [4, 8], strides = [1, 1]} : vector<8x64xf32> to vector<4x8xf32>
    %cst_30 = arith.constant 0.353553385 : f32
    %41 = vector.broadcast %cst_30 : f32 to vector<4x8xf32>
    %42 = arith.mulf %40, %41 : vector<4x8xf32>
    %43 = vector.extract_strided_slice %15 {offsets = [0, 40], sizes = [4, 8], strides = [1, 1]} : vector<8x64xf32> to vector<4x8xf32>
    %44 = vector.extract_strided_slice %22 {offsets = [0, 8], sizes = [4, 8], strides = [1, 1]} : vector<8x32xf32> to vector<4x8xf32>
    %cst_31 = arith.constant dense<0.000000e+00> : vector<4x4xf32>
    %45 = tpu.matmul %42, %43, %cst_31 {dimension_numbers = #tpu.dot_dimension_numbers<[1], [1], [0], [0], [0, 0, 1, 0], [], []>} : vector<4x8xf32>, vector<4x8xf32>, vector<4x4xf32> -> vector<4x4xf32>
    %cst_32 = arith.constant dense<0xFF800000> : vector<4xf32>
    %46 = vector.multi_reduction <maximumf>, %45, %cst_32 [1] : vector<4x4xf32> to vector<4xf32>
    %47 = vector.shape_cast %46 : vector<4xf32> to vector<4x1xf32>
    %48 = vector.broadcast %47 : vector<4x1xf32> to vector<4x4xf32>
    %49 = arith.subf %45, %48 : vector<4x4xf32>
    %50 = math.exp %49 : vector<4x4xf32>
    %cst_33 = arith.constant dense<0.000000e+00> : vector<4xf32>
    %51 = vector.multi_reduction <add>, %50, %cst_33 [1] : vector<4x4xf32> to vector<4xf32>
    %52 = vector.shape_cast %51 : vector<4xf32> to vector<4x1xf32>
    %53 = vector.broadcast %52 : vector<4x1xf32> to vector<4x4xf32>
    %54 = arith.divf %50, %53 : vector<4x4xf32>
    %cst_34 = arith.constant dense<0.000000e+00> : vector<4x8xf32>
    %55 = tpu.matmul %54, %44, %cst_34 {dimension_numbers = #tpu.dot_dimension_numbers<[1], [0], [0], [1], [0, 0, 1, 1], [], []>} : vector<4x4xf32>, vector<4x8xf32>, vector<4x8xf32> -> vector<4x8xf32>
    %c0_35 = arith.constant 0 : index
    %c8 = arith.constant 8 : index
    %56 = vector.load %arg31[%c0_35, %c8] : memref<8x32xf32, #tpu.memory_space<vmem>>, vector<4x8xf32>
    tpu.vector_store %arg31[%c0_35, %c8], %55 {strides = array<i32>} : memref<8x32xf32, #tpu.memory_space<vmem>>, vector<4x8xf32>,
    %57 = vector.extract_strided_slice %15 {offsets = [0, 16], sizes = [4, 8], strides = [1, 1]} : vector<8x64xf32> to vector<4x8xf32>
    %cst_36 = arith.constant 0.353553385 : f32
    %58 = vector.broadcast %cst_36 : f32 to vector<4x8xf32>
    %59 = arith.mulf %57, %58 : vector<4x8xf32>
    %60 = vector.extract_strided_slice %15 {offsets = [0, 48], sizes = [4, 8], strides = [1, 1]} : vector<8x64xf32> to vector<4x8xf32>
    %61 = vector.extract_strided_slice %22 {offsets = [0, 16], sizes = [4, 8], strides = [1, 1]} : vector<8x32xf32> to vector<4x8xf32>
    %cst_37 = arith.constant dense<0.000000e+00> : vector<4x4xf32>
    %62 = tpu.matmul %59, %60, %cst_37 {dimension_numbers = #tpu.dot_dimension_numbers<[1], [1], [0], [0], [0, 0, 1, 0], [], []>} : vector<4x8xf32>, vector<4x8xf32>, vector<4x4xf32> -> vector<4x4xf32>
    %cst_38 = arith.constant dense<0xFF800000> : vector<4xf32>
    %63 = vector.multi_reduction <maximumf>, %62, %cst_38 [1] : vector<4x4xf32> to vector<4xf32>
    %64 = vector.shape_cast %63 : vector<4xf32> to vector<4x1xf32>
    %65 = vector.broadcast %64 : vector<4x1xf32> to vector<4x4xf32>
    %66 = arith.subf %62, %65 : vector<4x4xf32>
    %67 = math.exp %66 : vector<4x4xf32>
    %cst_39 = arith.constant dense<0.000000e+00> : vector<4xf32>
    %68 = vector.multi_reduction <add>, %67, %cst_39 [1] : vector<4x4xf32> to vector<4xf32>
    %69 = vector.shape_cast %68 : vector<4xf32> to vector<4x1xf32>
    %70 = vector.broadcast %69 : vector<4x1xf32> to vector<4x4xf32>
    %71 = arith.divf %67, %70 : vector<4x4xf32>
    %cst_40 = arith.constant dense<0.000000e+00> : vector<4x8xf32>
    %72 = tpu.matmul %71, %61, %cst_40 {dimension_numbers = #tpu.dot_dimension_numbers<[1], [0], [0], [1], [0, 0, 1, 1], [], []>} : vector<4x4xf32>, vector<4x8xf32>, vector<4x8xf32> -> vector<4x8xf32>
    %c0_41 = arith.constant 0 : index
    %c16 = arith.constant 16 : index
    %73 = vector.load %arg31[%c0_41, %c16] : memref<8x32xf32, #tpu.memory_space<vmem>>, vector<4x8xf32>
    tpu.vector_store %arg31[%c0_41, %c16], %72 {strides = array<i32>} : memref<8x32xf32, #tpu.memory_space<vmem>>, vector<4x8xf32>,
    %74 = vector.extract_strided_slice %15 {offsets = [0, 24], sizes = [4, 8], strides = [1, 1]} : vector<8x64xf32> to vector<4x8xf32>
    %cst_42 = arith.constant 0.353553385 : f32
    %75 = vector.broadcast %cst_42 : f32 to vector<4x8xf32>
    %76 = arith.mulf %74, %75 : vector<4x8xf32>
    %77 = vector.extract_strided_slice %15 {offsets = [0, 56], sizes = [4, 8], strides = [1, 1]} : vector<8x64xf32> to vector<4x8xf32>
    %78 = vector.extract_strided_slice %22 {offsets = [0, 24], sizes = [4, 8], strides = [1, 1]} : vector<8x32xf32> to vector<4x8xf32>
    %cst_43 = arith.constant dense<0.000000e+00> : vector<4x4xf32>
    %79 = tpu.matmul %76, %77, %cst_43 {dimension_numbers = #tpu.dot_dimension_numbers<[1], [1], [0], [0], [0, 0, 1, 0], [], []>} : vector<4x8xf32>, vector<4x8xf32>, vector<4x4xf32> -> vector<4x4xf32>
    %cst_44 = arith.constant dense<0xFF800000> : vector<4xf32>
    %80 = vector.multi_reduction <maximumf>, %79, %cst_44 [1] : vector<4x4xf32> to vector<4xf32>
    %81 = vector.shape_cast %80 : vector<4xf32> to vector<4x1xf32>
    %82 = vector.broadcast %81 : vector<4x1xf32> to vector<4x4xf32>
    %83 = arith.subf %79, %82 : vector<4x4xf32>
    %84 = math.exp %83 : vector<4x4xf32>
    %cst_45 = arith.constant dense<0.000000e+00> : vector<4xf32>
    %85 = vector.multi_reduction <add>, %84, %cst_45 [1] : vector<4x4xf32> to vector<4xf32>
    %86 = vector.shape_cast %85 : vector<4xf32> to vector<4x1xf32>
    %87 = vector.broadcast %86 : vector<4x1xf32> to vector<4x4xf32>
    %88 = arith.divf %84, %87 : vector<4x4xf32>
    %cst_46 = arith.constant dense<0.000000e+00> : vector<4x8xf32>
    %89 = tpu.matmul %88, %78, %cst_46 {dimension_numbers = #tpu.dot_dimension_numbers<[1], [0], [0], [1], [0, 0, 1, 1], [], []>} : vector<4x4xf32>, vector<4x8xf32>, vector<4x8xf32> -> vector<4x8xf32>
    %c0_47 = arith.constant 0 : index
    %c24 = arith.constant 24 : index
    %90 = vector.load %arg31[%c0_47, %c24] : memref<8x32xf32, #tpu.memory_space<vmem>>, vector<4x8xf32>
    tpu.vector_store %arg31[%c0_47, %c24], %89 {strides = array<i32>} : memref<8x32xf32, #tpu.memory_space<vmem>>, vector<4x8xf32>,
    %91 = vector.extract_strided_slice %15 {offsets = [4, 0], sizes = [4, 8], strides = [1, 1]} : vector<8x64xf32> to vector<4x8xf32>
    %cst_48 = arith.constant 0.353553385 : f32
    %92 = vector.broadcast %cst_48 : f32 to vector<4x8xf32>
    %93 = arith.mulf %91, %92 : vector<4x8xf32>
    %94 = vector.extract_strided_slice %15 {offsets = [4, 32], sizes = [4, 8], strides = [1, 1]} : vector<8x64xf32> to vector<4x8xf32>
    %95 = vector.extract_strided_slice %22 {offsets = [4, 0], sizes = [4, 8], strides = [1, 1]} : vector<8x32xf32> to vector<4x8xf32>
    %cst_49 = arith.constant dense<0.000000e+00> : vector<4x4xf32>
    %96 = tpu.matmul %93, %94, %cst_49 {dimension_numbers = #tpu.dot_dimension_numbers<[1], [1], [0], [0], [0, 0, 1, 0], [], []>} : vector<4x8xf32>, vector<4x8xf32>, vector<4x4xf32> -> vector<4x4xf32>
    %cst_50 = arith.constant dense<0xFF800000> : vector<4xf32>
    %97 = vector.multi_reduction <maximumf>, %96, %cst_50 [1] : vector<4x4xf32> to vector<4xf32>
    %98 = vector.shape_cast %97 : vector<4xf32> to vector<4x1xf32>
    %99 = vector.broadcast %98 : vector<4x1xf32> to vector<4x4xf32>
    %100 = arith.subf %96, %99 : vector<4x4xf32>
    %101 = math.exp %100 : vector<4x4xf32>
    %cst_51 = arith.constant dense<0.000000e+00> : vector<4xf32>
    %102 = vector.multi_reduction <add>, %101, %cst_51 [1] : vector<4x4xf32> to vector<4xf32>
    %103 = vector.shape_cast %102 : vector<4xf32> to vector<4x1xf32>
    %104 = vector.broadcast %103 : vector<4x1xf32> to vector<4x4xf32>
    %105 = arith.divf %101, %104 : vector<4x4xf32>
    %cst_52 = arith.constant dense<0.000000e+00> : vector<4x8xf32>
    %106 = tpu.matmul %105, %95, %cst_52 {dimension_numbers = #tpu.dot_dimension_numbers<[1], [0], [0], [1], [0, 0, 1, 1], [], []>} : vector<4x4xf32>, vector<4x8xf32>, vector<4x8xf32> -> vector<4x8xf32>
    %c4 = arith.constant 4 : index
    %c0_53 = arith.constant 0 : index
    %107 = vector.load %arg31[%c4, %c0_53] : memref<8x32xf32, #tpu.memory_space<vmem>>, vector<4x8xf32>
    tpu.vector_store %arg31[%c4, %c0_53], %106 {strides = array<i32>} : memref<8x32xf32, #tpu.memory_space<vmem>>, vector<4x8xf32>,
    %108 = vector.extract_strided_slice %15 {offsets = [4, 8], sizes = [4, 8], strides = [1, 1]} : vector<8x64xf32> to vector<4x8xf32>
    %cst_54 = arith.constant 0.353553385 : f32
    %109 = vector.broadcast %cst_54 : f32 to vector<4x8xf32>
    %110 = arith.mulf %108, %109 : vector<4x8xf32>
    %111 = vector.extract_strided_slice %15 {offsets = [4, 40], sizes = [4, 8], strides = [1, 1]} : vector<8x64xf32> to vector<4x8xf32>
    %112 = vector.extract_strided_slice %22 {offsets = [4, 8], sizes = [4, 8], strides = [1, 1]} : vector<8x32xf32> to vector<4x8xf32>
    %cst_55 = arith.constant dense<0.000000e+00> : vector<4x4xf32>
    %113 = tpu.matmul %110, %111, %cst_55 {dimension_numbers = #tpu.dot_dimension_numbers<[1], [1], [0], [0], [0, 0, 1, 0], [], []>} : vector<4x8xf32>, vector<4x8xf32>, vector<4x4xf32> -> vector<4x4xf32>
    %cst_56 = arith.constant dense<0xFF800000> : vector<4xf32>
    %114 = vector.multi_reduction <maximumf>, %113, %cst_56 [1] : vector<4x4xf32> to vector<4xf32>
    %115 = vector.shape_cast %114 : vector<4xf32> to vector<4x1xf32>
    %116 = vector.broadcast %115 : vector<4x1xf32> to vector<4x4xf32>
    %117 = arith.subf %113, %116 : vector<4x4xf32>
    %118 = math.exp %117 : vector<4x4xf32>
    %cst_57 = arith.constant dense<0.000000e+00> : vector<4xf32>
    %119 = vector.multi_reduction <add>, %118, %cst_57 [1] : vector<4x4xf32> to vector<4xf32>
    %120 = vector.shape_cast %119 : vector<4xf32> to vector<4x1xf32>
    %121 = vector.broadcast %120 : vector<4x1xf32> to vector<4x4xf32>
    %122 = arith.divf %118, %121 : vector<4x4xf32>
    %cst_58 = arith.constant dense<0.000000e+00> : vector<4x8xf32>
    %123 = tpu.matmul %122, %112, %cst_58 {dimension_numbers = #tpu.dot_dimension_numbers<[1], [0], [0], [1], [0, 0, 1, 1], [], []>} : vector<4x4xf32>, vector<4x8xf32>, vector<4x8xf32> -> vector<4x8xf32>
    %c4_59 = arith.constant 4 : index
    %c8_60 = arith.constant 8 : index
    %124 = vector.load %arg31[%c4_59, %c8_60] : memref<8x32xf32, #tpu.memory_space<vmem>>, vector<4x8xf32>
    tpu.vector_store %arg31[%c4_59, %c8_60], %123 {strides = array<i32>} : memref<8x32xf32, #tpu.memory_space<vmem>>, vector<4x8xf32>,
    %125 = vector.extract_strided_slice %15 {offsets = [4, 16], sizes = [4, 8], strides = [1, 1]} : vector<8x64xf32> to vector<4x8xf32>
    %cst_61 = arith.constant 0.353553385 : f32
    %126 = vector.broadcast %cst_61 : f32 to vector<4x8xf32>
    %127 = arith.mulf %125, %126 : vector<4x8xf32>
    %128 = vector.extract_strided_slice %15 {offsets = [4, 48], sizes = [4, 8], strides = [1, 1]} : vector<8x64xf32> to vector<4x8xf32>
    %129 = vector.extract_strided_slice %22 {offsets = [4, 16], sizes = [4, 8], strides = [1, 1]} : vector<8x32xf32> to vector<4x8xf32>
    %cst_62 = arith.constant dense<0.000000e+00> : vector<4x4xf32>
    %130 = tpu.matmul %127, %128, %cst_62 {dimension_numbers = #tpu.dot_dimension_numbers<[1], [1], [0], [0], [0, 0, 1, 0], [], []>} : vector<4x8xf32>, vector<4x8xf32>, vector<4x4xf32> -> vector<4x4xf32>
    %cst_63 = arith.constant dense<0xFF800000> : vector<4xf32>
    %131 = vector.multi_reduction <maximumf>, %130, %cst_63 [1] : vector<4x4xf32> to vector<4xf32>
    %132 = vector.shape_cast %131 : vector<4xf32> to vector<4x1xf32>
    %133 = vector.broadcast %132 : vector<4x1xf32> to vector<4x4xf32>
    %134 = arith.subf %130, %133 : vector<4x4xf32>
    %135 = math.exp %134 : vector<4x4xf32>
    %cst_64 = arith.constant dense<0.000000e+00> : vector<4xf32>
    %136 = vector.multi_reduction <add>, %135, %cst_64 [1] : vector<4x4xf32> to vector<4xf32>
    %137 = vector.shape_cast %136 : vector<4xf32> to vector<4x1xf32>
    %138 = vector.broadcast %137 : vector<4x1xf32> to vector<4x4xf32>
    %139 = arith.divf %135, %138 : vector<4x4xf32>
    %cst_65 = arith.constant dense<0.000000e+00> : vector<4x8xf32>
    %140 = tpu.matmul %139, %129, %cst_65 {dimension_numbers = #tpu.dot_dimension_numbers<[1], [0], [0], [1], [0, 0, 1, 1], [], []>} : vector<4x4xf32>, vector<4x8xf32>, vector<4x8xf32> -> vector<4x8xf32>
    %c4_66 = arith.constant 4 : index
    %c16_67 = arith.constant 16 : index
    %141 = vector.load %arg31[%c4_66, %c16_67] : memref<8x32xf32, #tpu.memory_space<vmem>>, vector<4x8xf32>
    tpu.vector_store %arg31[%c4_66, %c16_67], %140 {strides = array<i32>} : memref<8x32xf32, #tpu.memory_space<vmem>>, vector<4x8xf32>,
    %142 = vector.extract_strided_slice %15 {offsets = [4, 24], sizes = [4, 8], strides = [1, 1]} : vector<8x64xf32> to vector<4x8xf32>
    %cst_68 = arith.constant 0.353553385 : f32
    %143 = vector.broadcast %cst_68 : f32 to vector<4x8xf32>
    %144 = arith.mulf %142, %143 : vector<4x8xf32>
    %145 = vector.extract_strided_slice %15 {offsets = [4, 56], sizes = [4, 8], strides = [1, 1]} : vector<8x64xf32> to vector<4x8xf32>
    %146 = vector.extract_strided_slice %22 {offsets = [4, 24], sizes = [4, 8], strides = [1, 1]} : vector<8x32xf32> to vector<4x8xf32>
    %cst_69 = arith.constant dense<0.000000e+00> : vector<4x4xf32>
    %147 = tpu.matmul %144, %145, %cst_69 {dimension_numbers = #tpu.dot_dimension_numbers<[1], [1], [0], [0], [0, 0, 1, 0], [], []>} : vector<4x8xf32>, vector<4x8xf32>, vector<4x4xf32> -> vector<4x4xf32>
    %cst_70 = arith.constant dense<0xFF800000> : vector<4xf32>
    %148 = vector.multi_reduction <maximumf>, %147, %cst_70 [1] : vector<4x4xf32> to vector<4xf32>
    %149 = vector.shape_cast %148 : vector<4xf32> to vector<4x1xf32>
    %150 = vector.broadcast %149 : vector<4x1xf32> to vector<4x4xf32>
    %151 = arith.subf %147, %150 : vector<4x4xf32>
    %152 = math.exp %151 : vector<4x4xf32>
    %cst_71 = arith.constant dense<0.000000e+00> : vector<4xf32>
    %153 = vector.multi_reduction <add>, %152, %cst_71 [1] : vector<4x4xf32> to vector<4xf32>
    %154 = vector.shape_cast %153 : vector<4xf32> to vector<4x1xf32>
    %155 = vector.broadcast %154 : vector<4x1xf32> to vector<4x4xf32>
    %156 = arith.divf %152, %155 : vector<4x4xf32>
    %cst_72 = arith.constant dense<0.000000e+00> : vector<4x8xf32>
    %157 = tpu.matmul %156, %146, %cst_72 {dimension_numbers = #tpu.dot_dimension_numbers<[1], [0], [0], [1], [0, 0, 1, 1], [], []>} : vector<4x4xf32>, vector<4x8xf32>, vector<4x8xf32> -> vector<4x8xf32>
    %c4_73 = arith.constant 4 : index
    %c24_74 = arith.constant 24 : index
    %158 = vector.load %arg31[%c4_73, %c24_74] : memref<8x32xf32, #tpu.memory_space<vmem>>, vector<4x8xf32>
    tpu.vector_store %arg31[%c4_73, %c24_74], %157 {strides = array<i32>} : memref<8x32xf32, #tpu.memory_space<vmem>>, vector<4x8xf32>,
    %c0_75 = arith.constant 0 : index
    %c0_76 = arith.constant 0 : index
    %159 = vector.load %arg31[%c0_75, %c0_76] : memref<8x32xf32, #tpu.memory_space<vmem>>, vector<8x32xf32>
    %c0_77 = arith.constant 0 : index
    %c0_78 = arith.constant 0 : index
    %c0_79 = arith.constant 0 : index
    %160 = vector.load %arg9[%c0_77, %c0_78, %c0_79] : memref<1x32x32xf32, #tpu.memory_space<vmem>>, vector<1x32x32xf32>
    %161 = vector.shape_cast %160 : vector<1x32x32xf32> to vector<32x32xf32>
    %cst_80 = arith.constant dense<0.000000e+00> : vector<8x32xf32>
    %162 = tpu.matmul %159, %161, %cst_80 {dimension_numbers = #tpu.dot_dimension_numbers<[1], [0], [0], [1], [0, 0, 1, 1], [], []>} : vector<8x32xf32>, vector<32x32xf32>, vector<8x32xf32> -> vector<8x32xf32>
    %c0_81 = arith.constant 0 : index
    %c0_82 = arith.constant 0 : index
    %c0_83 = arith.constant 0 : index
    %163 = vector.load %arg10[%c0_81, %c0_82, %c0_83] : memref<1x1x32xf32, #tpu.memory_space<vmem>>, vector<1x1x32xf32>
    %164 = vector.shape_cast %163 : vector<1x1x32xf32> to vector<1x32xf32>
    %165 = vector.broadcast %164 : vector<1x32xf32> to vector<8x32xf32>
    %166 = arith.addf %162, %165 : vector<8x32xf32>
    %167 = arith.addf %3, %166 : vector<8x32xf32>
    %c0_84 = arith.constant 0 : index
    %c0_85 = arith.constant 0 : index
    %c0_86 = arith.constant 0 : index
    %168 = vector.load %arg23[%c0_84, %c0_85, %c0_86] : memref<1x1x32xf32, #tpu.memory_space<vmem>>, vector<1x1x32xf32>
    %169 = vector.shape_cast %168 : vector<1x1x32xf32> to vector<1x32xf32>
    %c0_87 = arith.constant 0 : index
    %c0_88 = arith.constant 0 : index
    %c0_89 = arith.constant 0 : index
    %170 = vector.load %arg24[%c0_87, %c0_88, %c0_89] : memref<1x1x32xf32, #tpu.memory_space<vmem>>, vector<1x1x32xf32>
    %171 = vector.shape_cast %170 : vector<1x1x32xf32> to vector<1x32xf32>
    %cst_90 = arith.constant dense<0.000000e+00> : vector<8xf32>
    %172 = vector.multi_reduction <add>, %167, %cst_90 [1] : vector<8x32xf32> to vector<8xf32>
    %173 = vector.shape_cast %172 : vector<8xf32> to vector<8x1xf32>
    %cst_91 = arith.constant 3.200000e+01 : f32
    %174 = vector.broadcast %cst_91 : f32 to vector<8x1xf32>
    %175 = arith.divf %173, %174 : vector<8x1xf32>
    %176 = vector.broadcast %175 : vector<8x1xf32> to vector<8x32xf32>
    %177 = arith.subf %167, %176 : vector<8x32xf32>
    %178 = arith.mulf %177, %177 : vector<8x32xf32>
    %cst_92 = arith.constant dense<0.000000e+00> : vector<8xf32>
    %179 = vector.multi_reduction <add>, %178, %cst_92 [1] : vector<8x32xf32> to vector<8xf32>
    %180 = vector.shape_cast %179 : vector<8xf32> to vector<8x1xf32>
    %cst_93 = arith.constant 3.200000e+01 : f32
    %181 = vector.broadcast %cst_93 : f32 to vector<8x1xf32>
    %182 = arith.divf %180, %181 : vector<8x1xf32>
    %183 = vector.broadcast %175 : vector<8x1xf32> to vector<8x32xf32>
    %184 = arith.subf %167, %183 : vector<8x32xf32>
    %cst_94 = arith.constant 9.99999974E-6 : f32
    %185 = vector.broadcast %cst_94 : f32 to vector<8x1xf32>
    %186 = arith.addf %182, %185 : vector<8x1xf32>
    %187 = math.rsqrt %186 : vector<8x1xf32>
    %188 = vector.broadcast %187 : vector<8x1xf32> to vector<8x32xf32>
    %189 = arith.mulf %184, %188 : vector<8x32xf32>
    %190 = vector.broadcast %169 : vector<1x32xf32> to vector<8x32xf32>
    %191 = arith.mulf %189, %190 : vector<8x32xf32>
    %192 = vector.broadcast %171 : vector<1x32xf32> to vector<8x32xf32>
    %193 = arith.addf %191, %192 : vector<8x32xf32>
    %194 = arith.addf %193, %6 : vector<8x32xf32>
    %c0_95 = arith.constant 0 : index
    %c0_96 = arith.constant 0 : index
    %c0_97 = arith.constant 0 : index
    %195 = vector.load %arg11[%c0_95, %c0_96, %c0_97] : memref<1x32x32xf32, #tpu.memory_space<vmem>>, vector<1x32x32xf32>
    %196 = vector.shape_cast %195 : vector<1x32x32xf32> to vector<32x32xf32>
    %cst_98 = arith.constant dense<0.000000e+00> : vector<8x32xf32>
    %197 = tpu.matmul %194, %196, %cst_98 {dimension_numbers = #tpu.dot_dimension_numbers<[1], [0], [0], [1], [0, 0, 1, 1], [], []>} : vector<8x32xf32>, vector<32x32xf32>, vector<8x32xf32> -> vector<8x32xf32>
    %c0_99 = arith.constant 0 : index
    %c0_100 = arith.constant 0 : index
    %c0_101 = arith.constant 0 : index
    %198 = vector.load %arg12[%c0_99, %c0_100, %c0_101] : memref<1x1x32xf32, #tpu.memory_space<vmem>>, vector<1x1x32xf32>
    %199 = vector.shape_cast %198 : vector<1x1x32xf32> to vector<1x32xf32>
    %200 = vector.broadcast %199 : vector<1x32xf32> to vector<8x32xf32>
    %201 = arith.addf %197, %200 : vector<8x32xf32>
    %202 = arith.addf %4, %5 : vector<16x32xf32>
    %c0_102 = arith.constant 0 : index
    %c0_103 = arith.constant 0 : index
    %c0_104 = arith.constant 0 : index
    %203 = vector.load %arg13[%c0_102, %c0_103, %c0_104] : memref<1x32x32xf32, #tpu.memory_space<vmem>>, vector<1x32x32xf32>
    %204 = vector.shape_cast %203 : vector<1x32x32xf32> to vector<32x32xf32>
    %cst_105 = arith.constant dense<0.000000e+00> : vector<16x32xf32>
    %205 = tpu.matmul %202, %204, %cst_105 {dimension_numbers = #tpu.dot_dimension_numbers<[1], [0], [0], [1], [0, 0, 1, 1], [], []>} : vector<16x32xf32>, vector<32x32xf32>, vector<16x32xf32> -> vector<16x32xf32>
    %c0_106 = arith.constant 0 : index
    %c0_107 = arith.constant 0 : index
    %c0_108 = arith.constant 0 : index
    %206 = vector.load %arg14[%c0_106, %c0_107, %c0_108] : memref<1x1x32xf32, #tpu.memory_space<vmem>>, vector<1x1x32xf32>
    %207 = vector.shape_cast %206 : vector<1x1x32xf32> to vector<1x32xf32>
    %208 = vector.broadcast %207 : vector<1x32xf32> to vector<16x32xf32>
    %209 = arith.addf %205, %208 : vector<16x32xf32>
    %c0_109 = arith.constant 0 : index
    %c0_110 = arith.constant 0 : index
    %c0_111 = arith.constant 0 : index
    %210 = vector.load %arg15[%c0_109, %c0_110, %c0_111] : memref<1x32x32xf32, #tpu.memory_space<vmem>>, vector<1x32x32xf32>
    %211 = vector.shape_cast %210 : vector<1x32x32xf32> to vector<32x32xf32>
    %cst_112 = arith.constant dense<0.000000e+00> : vector<16x32xf32>
    %212 = tpu.matmul %4, %211, %cst_112 {dimension_numbers = #tpu.dot_dimension_numbers<[1], [0], [0], [1], [0, 0, 1, 1], [], []>} : vector<16x32xf32>, vector<32x32xf32>, vector<16x32xf32> -> vector<16x32xf32>
    %c0_113 = arith.constant 0 : index
    %c0_114 = arith.constant 0 : index
    %c0_115 = arith.constant 0 : index
    %213 = vector.load %arg16[%c0_113, %c0_114, %c0_115] : memref<1x1x32xf32, #tpu.memory_space<vmem>>, vector<1x1x32xf32>
    %214 = vector.shape_cast %213 : vector<1x1x32xf32> to vector<1x32xf32>
    %215 = vector.broadcast %214 : vector<1x32xf32> to vector<16x32xf32>
    %216 = arith.addf %212, %215 : vector<16x32xf32>
    %217 = vector.extract_strided_slice %7 {offsets = [0, 0], sizes = [1, 8], strides = [1, 1]} : vector<2x8xf32> to vector<1x8xf32>
    %218 = vector.extract_strided_slice %201 {offsets = [0, 0], sizes = [4, 8], strides = [1, 1]} : vector<8x32xf32> to vector<4x8xf32>
    %cst_116 = arith.constant 0.353553385 : f32
    %219 = vector.broadcast %cst_116 : f32 to vector<4x8xf32>
    %220 = arith.mulf %218, %219 : vector<4x8xf32>
    %221 = vector.extract_strided_slice %209 {offsets = [0, 0], sizes = [8, 8], strides = [1, 1]} : vector<16x32xf32> to vector<8x8xf32>
    %222 = vector.extract_strided_slice %216 {offsets = [0, 0], sizes = [8, 8], strides = [1, 1]} : vector<16x32xf32> to vector<8x8xf32>
    %cst_117 = arith.constant dense<0.000000e+00> : vector<4x8xf32>
    %223 = tpu.matmul %220, %221, %cst_117 {dimension_numbers = #tpu.dot_dimension_numbers<[1], [1], [0], [0], [0, 0, 1, 0], [], []>} : vector<4x8xf32>, vector<8x8xf32>, vector<4x8xf32> -> vector<4x8xf32>
    %224 = vector.broadcast %217 : vector<1x8xf32> to vector<4x8xf32>
    %225 = arith.addf %223, %224 : vector<4x8xf32>
    %cst_118 = arith.constant dense<0xFF800000> : vector<4xf32>
    %226 = vector.multi_reduction <maximumf>, %225, %cst_118 [1] : vector<4x8xf32> to vector<4xf32>
    %227 = vector.shape_cast %226 : vector<4xf32> to vector<4x1xf32>
    %228 = vector.broadcast %227 : vector<4x1xf32> to vector<4x8xf32>
    %229 = arith.subf %225, %228 : vector<4x8xf32>
    %230 = math.exp %229 : vector<4x8xf32>
    %cst_119 = arith.constant dense<0.000000e+00> : vector<4xf32>
    %231 = vector.multi_reduction <add>, %230, %cst_119 [1] : vector<4x8xf32> to vector<4xf32>
    %232 = vector.shape_cast %231 : vector<4xf32> to vector<4x1xf32>
    %233 = vector.broadcast %232 : vector<4x1xf32> to vector<4x8xf32>
    %234 = arith.divf %230, %233 : vector<4x8xf32>
    %cst_120 = arith.constant dense<0.000000e+00> : vector<4x8xf32>
    %235 = tpu.matmul %234, %222, %cst_120 {dimension_numbers = #tpu.dot_dimension_numbers<[1], [0], [0], [1], [0, 0, 1, 1], [], []>} : vector<4x8xf32>, vector<8x8xf32>, vector<4x8xf32> -> vector<4x8xf32>
    %c0_121 = arith.constant 0 : index
    %c0_122 = arith.constant 0 : index
    %236 = vector.load %arg31[%c0_121, %c0_122] : memref<8x32xf32, #tpu.memory_space<vmem>>, vector<4x8xf32>
    tpu.vector_store %arg31[%c0_121, %c0_122], %235 {strides = array<i32>} : memref<8x32xf32, #tpu.memory_space<vmem>>, vector<4x8xf32>,
    %237 = vector.extract_strided_slice %201 {offsets = [0, 8], sizes = [4, 8], strides = [1, 1]} : vector<8x32xf32> to vector<4x8xf32>
    %cst_123 = arith.constant 0.353553385 : f32
    %238 = vector.broadcast %cst_123 : f32 to vector<4x8xf32>
    %239 = arith.mulf %237, %238 : vector<4x8xf32>
    %240 = vector.extract_strided_slice %209 {offsets = [0, 8], sizes = [8, 8], strides = [1, 1]} : vector<16x32xf32> to vector<8x8xf32>
    %241 = vector.extract_strided_slice %216 {offsets = [0, 8], sizes = [8, 8], strides = [1, 1]} : vector<16x32xf32> to vector<8x8xf32>
    %cst_124 = arith.constant dense<0.000000e+00> : vector<4x8xf32>
    %242 = tpu.matmul %239, %240, %cst_124 {dimension_numbers = #tpu.dot_dimension_numbers<[1], [1], [0], [0], [0, 0, 1, 0], [], []>} : vector<4x8xf32>, vector<8x8xf32>, vector<4x8xf32> -> vector<4x8xf32>
    %243 = vector.broadcast %217 : vector<1x8xf32> to vector<4x8xf32>
    %244 = arith.addf %242, %243 : vector<4x8xf32>
    %cst_125 = arith.constant dense<0xFF800000> : vector<4xf32>
    %245 = vector.multi_reduction <maximumf>, %244, %cst_125 [1] : vector<4x8xf32> to vector<4xf32>
    %246 = vector.shape_cast %245 : vector<4xf32> to vector<4x1xf32>
    %247 = vector.broadcast %246 : vector<4x1xf32> to vector<4x8xf32>
    %248 = arith.subf %244, %247 : vector<4x8xf32>
    %249 = math.exp %248 : vector<4x8xf32>
    %cst_126 = arith.constant dense<0.000000e+00> : vector<4xf32>
    %250 = vector.multi_reduction <add>, %249, %cst_126 [1] : vector<4x8xf32> to vector<4xf32>
    %251 = vector.shape_cast %250 : vector<4xf32> to vector<4x1xf32>
    %252 = vector.broadcast %251 : vector<4x1xf32> to vector<4x8xf32>
    %253 = arith.divf %249, %252 : vector<4x8xf32>
    %cst_127 = arith.constant dense<0.000000e+00> : vector<4x8xf32>
    %254 = tpu.matmul %253, %241, %cst_127 {dimension_numbers = #tpu.dot_dimension_numbers<[1], [0], [0], [1], [0, 0, 1, 1], [], []>} : vector<4x8xf32>, vector<8x8xf32>, vector<4x8xf32> -> vector<4x8xf32>
    %c0_128 = arith.constant 0 : index
    %c8_129 = arith.constant 8 : index
    %255 = vector.load %arg31[%c0_128, %c8_129] : memref<8x32xf32, #tpu.memory_space<vmem>>, vector<4x8xf32>
    tpu.vector_store %arg31[%c0_128, %c8_129], %254 {strides = array<i32>} : memref<8x32xf32, #tpu.memory_space<vmem>>, vector<4x8xf32>,
    %256 = arith.addf %234, %253 : vector<4x8xf32>
    %257 = vector.extract_strided_slice %201 {offsets = [0, 16], sizes = [4, 8], strides = [1, 1]} : vector<8x32xf32> to vector<4x8xf32>
    %cst_130 = arith.constant 0.353553385 : f32
    %258 = vector.broadcast %cst_130 : f32 to vector<4x8xf32>
    %259 = arith.mulf %257, %258 : vector<4x8xf32>
    %260 = vector.extract_strided_slice %209 {offsets = [0, 16], sizes = [8, 8], strides = [1, 1]} : vector<16x32xf32> to vector<8x8xf32>
    %261 = vector.extract_strided_slice %216 {offsets = [0, 16], sizes = [8, 8], strides = [1, 1]} : vector<16x32xf32> to vector<8x8xf32>
    %cst_131 = arith.constant dense<0.000000e+00> : vector<4x8xf32>
    %262 = tpu.matmul %259, %260, %cst_131 {dimension_numbers = #tpu.dot_dimension_numbers<[1], [1], [0], [0], [0, 0, 1, 0], [], []>} : vector<4x8xf32>, vector<8x8xf32>, vector<4x8xf32> -> vector<4x8xf32>
    %263 = vector.broadcast %217 : vector<1x8xf32> to vector<4x8xf32>
    %264 = arith.addf %262, %263 : vector<4x8xf32>
    %cst_132 = arith.constant dense<0xFF800000> : vector<4xf32>
    %265 = vector.multi_reduction <maximumf>, %264, %cst_132 [1] : vector<4x8xf32> to vector<4xf32>
    %266 = vector.shape_cast %265 : vector<4xf32> to vector<4x1xf32>
    %267 = vector.broadcast %266 : vector<4x1xf32> to vector<4x8xf32>
    %268 = arith.subf %264, %267 : vector<4x8xf32>
    %269 = math.exp %268 : vector<4x8xf32>
    %cst_133 = arith.constant dense<0.000000e+00> : vector<4xf32>
    %270 = vector.multi_reduction <add>, %269, %cst_133 [1] : vector<4x8xf32> to vector<4xf32>
    %271 = vector.shape_cast %270 : vector<4xf32> to vector<4x1xf32>
    %272 = vector.broadcast %271 : vector<4x1xf32> to vector<4x8xf32>
    %273 = arith.divf %269, %272 : vector<4x8xf32>
    %cst_134 = arith.constant dense<0.000000e+00> : vector<4x8xf32>
    %274 = tpu.matmul %273, %261, %cst_134 {dimension_numbers = #tpu.dot_dimension_numbers<[1], [0], [0], [1], [0, 0, 1, 1], [], []>} : vector<4x8xf32>, vector<8x8xf32>, vector<4x8xf32> -> vector<4x8xf32>
    %c0_135 = arith.constant 0 : index
    %c16_136 = arith.constant 16 : index
    %275 = vector.load %arg31[%c0_135, %c16_136] : memref<8x32xf32, #tpu.memory_space<vmem>>, vector<4x8xf32>
    tpu.vector_store %arg31[%c0_135, %c16_136], %274 {strides = array<i32>} : memref<8x32xf32, #tpu.memory_space<vmem>>, vector<4x8xf32>,
    %276 = arith.addf %256, %273 : vector<4x8xf32>
    %277 = vector.extract_strided_slice %201 {offsets = [0, 24], sizes = [4, 8], strides = [1, 1]} : vector<8x32xf32> to vector<4x8xf32>
    %cst_137 = arith.constant 0.353553385 : f32
    %278 = vector.broadcast %cst_137 : f32 to vector<4x8xf32>
    %279 = arith.mulf %277, %278 : vector<4x8xf32>
    %280 = vector.extract_strided_slice %209 {offsets = [0, 24], sizes = [8, 8], strides = [1, 1]} : vector<16x32xf32> to vector<8x8xf32>
    %281 = vector.extract_strided_slice %216 {offsets = [0, 24], sizes = [8, 8], strides = [1, 1]} : vector<16x32xf32> to vector<8x8xf32>
    %cst_138 = arith.constant dense<0.000000e+00> : vector<4x8xf32>
    %282 = tpu.matmul %279, %280, %cst_138 {dimension_numbers = #tpu.dot_dimension_numbers<[1], [1], [0], [0], [0, 0, 1, 0], [], []>} : vector<4x8xf32>, vector<8x8xf32>, vector<4x8xf32> -> vector<4x8xf32>
    %283 = vector.broadcast %217 : vector<1x8xf32> to vector<4x8xf32>
    %284 = arith.addf %282, %283 : vector<4x8xf32>
    %cst_139 = arith.constant dense<0xFF800000> : vector<4xf32>
    %285 = vector.multi_reduction <maximumf>, %284, %cst_139 [1] : vector<4x8xf32> to vector<4xf32>
    %286 = vector.shape_cast %285 : vector<4xf32> to vector<4x1xf32>
    %287 = vector.broadcast %286 : vector<4x1xf32> to vector<4x8xf32>
    %288 = arith.subf %284, %287 : vector<4x8xf32>
    %289 = math.exp %288 : vector<4x8xf32>
    %cst_140 = arith.constant dense<0.000000e+00> : vector<4xf32>
    %290 = vector.multi_reduction <add>, %289, %cst_140 [1] : vector<4x8xf32> to vector<4xf32>
    %291 = vector.shape_cast %290 : vector<4xf32> to vector<4x1xf32>
    %292 = vector.broadcast %291 : vector<4x1xf32> to vector<4x8xf32>
    %293 = arith.divf %289, %292 : vector<4x8xf32>
    %cst_141 = arith.constant dense<0.000000e+00> : vector<4x8xf32>
    %294 = tpu.matmul %293, %281, %cst_141 {dimension_numbers = #tpu.dot_dimension_numbers<[1], [0], [0], [1], [0, 0, 1, 1], [], []>} : vector<4x8xf32>, vector<8x8xf32>, vector<4x8xf32> -> vector<4x8xf32>
    %c0_142 = arith.constant 0 : index
    %c24_143 = arith.constant 24 : index
    %295 = vector.load %arg31[%c0_142, %c24_143] : memref<8x32xf32, #tpu.memory_space<vmem>>, vector<4x8xf32>
    tpu.vector_store %arg31[%c0_142, %c24_143], %294 {strides = array<i32>} : memref<8x32xf32, #tpu.memory_space<vmem>>, vector<4x8xf32>,
    %296 = arith.addf %276, %293 : vector<4x8xf32>
    %cst_144 = arith.constant 2.500000e-01 : f32
    %297 = vector.broadcast %cst_144 : f32 to vector<4x8xf32>
    %298 = arith.mulf %296, %297 : vector<4x8xf32>
    %c0_145 = arith.constant 0 : index
    %c0_146 = arith.constant 0 : index
    %c0_147 = arith.constant 0 : index
    %299 = vector.load %arg30[%c0_145, %c0_146, %c0_147] : memref<1x8x8xf32, #tpu.memory_space<vmem>>, vector<1x4x8xf32>
    %300 = vector.shape_cast %299 : vector<1x4x8xf32> to vector<4x8xf32>
    %301 = vector.shape_cast %298 : vector<4x8xf32> to vector<1x4x8xf32>
    tpu.vector_store %arg30[%c0_145, %c0_146, %c0_147], %301 {strides = array<i32>} : memref<1x8x8xf32, #tpu.memory_space<vmem>>, vector<1x4x8xf32>,
    %302 = vector.extract_strided_slice %7 {offsets = [1, 0], sizes = [1, 8], strides = [1, 1]} : vector<2x8xf32> to vector<1x8xf32>
    %303 = vector.extract_strided_slice %201 {offsets = [4, 0], sizes = [4, 8], strides = [1, 1]} : vector<8x32xf32> to vector<4x8xf32>
    %cst_148 = arith.constant 0.353553385 : f32
    %304 = vector.broadcast %cst_148 : f32 to vector<4x8xf32>
    %305 = arith.mulf %303, %304 : vector<4x8xf32>
    %306 = vector.extract_strided_slice %209 {offsets = [8, 0], sizes = [8, 8], strides = [1, 1]} : vector<16x32xf32> to vector<8x8xf32>
    %307 = vector.extract_strided_slice %216 {offsets = [8, 0], sizes = [8, 8], strides = [1, 1]} : vector<16x32xf32> to vector<8x8xf32>
    %cst_149 = arith.constant dense<0.000000e+00> : vector<4x8xf32>
    %308 = tpu.matmul %305, %306, %cst_149 {dimension_numbers = #tpu.dot_dimension_numbers<[1], [1], [0], [0], [0, 0, 1, 0], [], []>} : vector<4x8xf32>, vector<8x8xf32>, vector<4x8xf32> -> vector<4x8xf32>
    %309 = vector.broadcast %302 : vector<1x8xf32> to vector<4x8xf32>
    %310 = arith.addf %308, %309 : vector<4x8xf32>
    %cst_150 = arith.constant dense<0xFF800000> : vector<4xf32>
    %311 = vector.multi_reduction <maximumf>, %310, %cst_150 [1] : vector<4x8xf32> to vector<4xf32>
    %312 = vector.shape_cast %311 : vector<4xf32> to vector<4x1xf32>
    %313 = vector.broadcast %312 : vector<4x1xf32> to vector<4x8xf32>
    %314 = arith.subf %310, %313 : vector<4x8xf32>
    %315 = math.exp %314 : vector<4x8xf32>
    %cst_151 = arith.constant dense<0.000000e+00> : vector<4xf32>
    %316 = vector.multi_reduction <add>, %315, %cst_151 [1] : vector<4x8xf32> to vector<4xf32>
    %317 = vector.shape_cast %316 : vector<4xf32> to vector<4x1xf32>
    %318 = vector.broadcast %317 : vector<4x1xf32> to vector<4x8xf32>
    %319 = arith.divf %315, %318 : vector<4x8xf32>
    %cst_152 = arith.constant dense<0.000000e+00> : vector<4x8xf32>
    %320 = tpu.matmul %319, %307, %cst_152 {dimension_numbers = #tpu.dot_dimension_numbers<[1], [0], [0], [1], [0, 0, 1, 1], [], []>} : vector<4x8xf32>, vector<8x8xf32>, vector<4x8xf32> -> vector<4x8xf32>
    %c4_153 = arith.constant 4 : index
    %c0_154 = arith.constant 0 : index
    %321 = vector.load %arg31[%c4_153, %c0_154] : memref<8x32xf32, #tpu.memory_space<vmem>>, vector<4x8xf32>
    tpu.vector_store %arg31[%c4_153, %c0_154], %320 {strides = array<i32>} : memref<8x32xf32, #tpu.memory_space<vmem>>, vector<4x8xf32>,
    %322 = vector.extract_strided_slice %201 {offsets = [4, 8], sizes = [4, 8], strides = [1, 1]} : vector<8x32xf32> to vector<4x8xf32>
    %cst_155 = arith.constant 0.353553385 : f32
    %323 = vector.broadcast %cst_155 : f32 to vector<4x8xf32>
    %324 = arith.mulf %322, %323 : vector<4x8xf32>
    %325 = vector.extract_strided_slice %209 {offsets = [8, 8], sizes = [8, 8], strides = [1, 1]} : vector<16x32xf32> to vector<8x8xf32>
    %326 = vector.extract_strided_slice %216 {offsets = [8, 8], sizes = [8, 8], strides = [1, 1]} : vector<16x32xf32> to vector<8x8xf32>
    %cst_156 = arith.constant dense<0.000000e+00> : vector<4x8xf32>
    %327 = tpu.matmul %324, %325, %cst_156 {dimension_numbers = #tpu.dot_dimension_numbers<[1], [1], [0], [0], [0, 0, 1, 0], [], []>} : vector<4x8xf32>, vector<8x8xf32>, vector<4x8xf32> -> vector<4x8xf32>
    %328 = vector.broadcast %302 : vector<1x8xf32> to vector<4x8xf32>
    %329 = arith.addf %327, %328 : vector<4x8xf32>
    %cst_157 = arith.constant dense<0xFF800000> : vector<4xf32>
    %330 = vector.multi_reduction <maximumf>, %329, %cst_157 [1] : vector<4x8xf32> to vector<4xf32>
    %331 = vector.shape_cast %330 : vector<4xf32> to vector<4x1xf32>
    %332 = vector.broadcast %331 : vector<4x1xf32> to vector<4x8xf32>
    %333 = arith.subf %329, %332 : vector<4x8xf32>
    %334 = math.exp %333 : vector<4x8xf32>
    %cst_158 = arith.constant dense<0.000000e+00> : vector<4xf32>
    %335 = vector.multi_reduction <add>, %334, %cst_158 [1] : vector<4x8xf32> to vector<4xf32>
    %336 = vector.shape_cast %335 : vector<4xf32> to vector<4x1xf32>
    %337 = vector.broadcast %336 : vector<4x1xf32> to vector<4x8xf32>
    %338 = arith.divf %334, %337 : vector<4x8xf32>
    %cst_159 = arith.constant dense<0.000000e+00> : vector<4x8xf32>
    %339 = tpu.matmul %338, %326, %cst_159 {dimension_numbers = #tpu.dot_dimension_numbers<[1], [0], [0], [1], [0, 0, 1, 1], [], []>} : vector<4x8xf32>, vector<8x8xf32>, vector<4x8xf32> -> vector<4x8xf32>
    %c4_160 = arith.constant 4 : index
    %c8_161 = arith.constant 8 : index
    %340 = vector.load %arg31[%c4_160, %c8_161] : memref<8x32xf32, #tpu.memory_space<vmem>>, vector<4x8xf32>
    tpu.vector_store %arg31[%c4_160, %c8_161], %339 {strides = array<i32>} : memref<8x32xf32, #tpu.memory_space<vmem>>, vector<4x8xf32>,
    %341 = arith.addf %319, %338 : vector<4x8xf32>
    %342 = vector.extract_strided_slice %201 {offsets = [4, 16], sizes = [4, 8], strides = [1, 1]} : vector<8x32xf32> to vector<4x8xf32>
    %cst_162 = arith.constant 0.353553385 : f32
    %343 = vector.broadcast %cst_162 : f32 to vector<4x8xf32>
    %344 = arith.mulf %342, %343 : vector<4x8xf32>
    %345 = vector.extract_strided_slice %209 {offsets = [8, 16], sizes = [8, 8], strides = [1, 1]} : vector<16x32xf32> to vector<8x8xf32>
    %346 = vector.extract_strided_slice %216 {offsets = [8, 16], sizes = [8, 8], strides = [1, 1]} : vector<16x32xf32> to vector<8x8xf32>
    %cst_163 = arith.constant dense<0.000000e+00> : vector<4x8xf32>
    %347 = tpu.matmul %344, %345, %cst_163 {dimension_numbers = #tpu.dot_dimension_numbers<[1], [1], [0], [0], [0, 0, 1, 0], [], []>} : vector<4x8xf32>, vector<8x8xf32>, vector<4x8xf32> -> vector<4x8xf32>
    %348 = vector.broadcast %302 : vector<1x8xf32> to vector<4x8xf32>
    %349 = arith.addf %347, %348 : vector<4x8xf32>
    %cst_164 = arith.constant dense<0xFF800000> : vector<4xf32>
    %350 = vector.multi_reduction <maximumf>, %349, %cst_164 [1] : vector<4x8xf32> to vector<4xf32>
    %351 = vector.shape_cast %350 : vector<4xf32> to vector<4x1xf32>
    %352 = vector.broadcast %351 : vector<4x1xf32> to vector<4x8xf32>
    %353 = arith.subf %349, %352 : vector<4x8xf32>
    %354 = math.exp %353 : vector<4x8xf32>
    %cst_165 = arith.constant dense<0.000000e+00> : vector<4xf32>
    %355 = vector.multi_reduction <add>, %354, %cst_165 [1] : vector<4x8xf32> to vector<4xf32>
    %356 = vector.shape_cast %355 : vector<4xf32> to vector<4x1xf32>
    %357 = vector.broadcast %356 : vector<4x1xf32> to vector<4x8xf32>
    %358 = arith.divf %354, %357 : vector<4x8xf32>
    %cst_166 = arith.constant dense<0.000000e+00> : vector<4x8xf32>
    %359 = tpu.matmul %358, %346, %cst_166 {dimension_numbers = #tpu.dot_dimension_numbers<[1], [0], [0], [1], [0, 0, 1, 1], [], []>} : vector<4x8xf32>, vector<8x8xf32>, vector<4x8xf32> -> vector<4x8xf32>
    %c4_167 = arith.constant 4 : index
    %c16_168 = arith.constant 16 : index
    %360 = vector.load %arg31[%c4_167, %c16_168] : memref<8x32xf32, #tpu.memory_space<vmem>>, vector<4x8xf32>
    tpu.vector_store %arg31[%c4_167, %c16_168], %359 {strides = array<i32>} : memref<8x32xf32, #tpu.memory_space<vmem>>, vector<4x8xf32>,
    %361 = arith.addf %341, %358 : vector<4x8xf32>
    %362 = vector.extract_strided_slice %201 {offsets = [4, 24], sizes = [4, 8], strides = [1, 1]} : vector<8x32xf32> to vector<4x8xf32>
    %cst_169 = arith.constant 0.353553385 : f32
    %363 = vector.broadcast %cst_169 : f32 to vector<4x8xf32>
    %364 = arith.mulf %362, %363 : vector<4x8xf32>
    %365 = vector.extract_strided_slice %209 {offsets = [8, 24], sizes = [8, 8], strides = [1, 1]} : vector<16x32xf32> to vector<8x8xf32>
    %366 = vector.extract_strided_slice %216 {offsets = [8, 24], sizes = [8, 8], strides = [1, 1]} : vector<16x32xf32> to vector<8x8xf32>
    %cst_170 = arith.constant dense<0.000000e+00> : vector<4x8xf32>
    %367 = tpu.matmul %364, %365, %cst_170 {dimension_numbers = #tpu.dot_dimension_numbers<[1], [1], [0], [0], [0, 0, 1, 0], [], []>} : vector<4x8xf32>, vector<8x8xf32>, vector<4x8xf32> -> vector<4x8xf32>
    %368 = vector.broadcast %302 : vector<1x8xf32> to vector<4x8xf32>
    %369 = arith.addf %367, %368 : vector<4x8xf32>
    %cst_171 = arith.constant dense<0xFF800000> : vector<4xf32>
    %370 = vector.multi_reduction <maximumf>, %369, %cst_171 [1] : vector<4x8xf32> to vector<4xf32>
    %371 = vector.shape_cast %370 : vector<4xf32> to vector<4x1xf32>
    %372 = vector.broadcast %371 : vector<4x1xf32> to vector<4x8xf32>
    %373 = arith.subf %369, %372 : vector<4x8xf32>
    %374 = math.exp %373 : vector<4x8xf32>
    %cst_172 = arith.constant dense<0.000000e+00> : vector<4xf32>
    %375 = vector.multi_reduction <add>, %374, %cst_172 [1] : vector<4x8xf32> to vector<4xf32>
    %376 = vector.shape_cast %375 : vector<4xf32> to vector<4x1xf32>
    %377 = vector.broadcast %376 : vector<4x1xf32> to vector<4x8xf32>
    %378 = arith.divf %374, %377 : vector<4x8xf32>
    %cst_173 = arith.constant dense<0.000000e+00> : vector<4x8xf32>
    %379 = tpu.matmul %378, %366, %cst_173 {dimension_numbers = #tpu.dot_dimension_numbers<[1], [0], [0], [1], [0, 0, 1, 1], [], []>} : vector<4x8xf32>, vector<8x8xf32>, vector<4x8xf32> -> vector<4x8xf32>
    %c4_174 = arith.constant 4 : index
    %c24_175 = arith.constant 24 : index
    %380 = vector.load %arg31[%c4_174, %c24_175] : memref<8x32xf32, #tpu.memory_space<vmem>>, vector<4x8xf32>
    tpu.vector_store %arg31[%c4_174, %c24_175], %379 {strides = array<i32>} : memref<8x32xf32, #tpu.memory_space<vmem>>, vector<4x8xf32>,
    %381 = arith.addf %361, %378 : vector<4x8xf32>
    %cst_176 = arith.constant 2.500000e-01 : f32
    %382 = vector.broadcast %cst_176 : f32 to vector<4x8xf32>
    %383 = arith.mulf %381, %382 : vector<4x8xf32>
    %c0_177 = arith.constant 0 : index
    %c4_178 = arith.constant 4 : index
    %c0_179 = arith.constant 0 : index
    %384 = vector.load %arg30[%c0_177, %c4_178, %c0_179] : memref<1x8x8xf32, #tpu.memory_space<vmem>>, vector<1x4x8xf32>
    %385 = vector.shape_cast %384 : vector<1x4x8xf32> to vector<4x8xf32>
    %386 = vector.shape_cast %383 : vector<4x8xf32> to vector<1x4x8xf32>
    tpu.vector_store %arg30[%c0_177, %c4_178, %c0_179], %386 {strides = array<i32>} : memref<1x8x8xf32, #tpu.memory_space<vmem>>, vector<1x4x8xf32>,
    %c0_180 = arith.constant 0 : index
    %c0_181 = arith.constant 0 : index
    %387 = vector.load %arg31[%c0_180, %c0_181] : memref<8x32xf32, #tpu.memory_space<vmem>>, vector<8x32xf32>
    %c0_182 = arith.constant 0 : index
    %c0_183 = arith.constant 0 : index
    %c0_184 = arith.constant 0 : index
    %388 = vector.load %arg17[%c0_182, %c0_183, %c0_184] : memref<1x32x32xf32, #tpu.memory_space<vmem>>, vector<1x32x32xf32>
    %389 = vector.shape_cast %388 : vector<1x32x32xf32> to vector<32x32xf32>
    %cst_185 = arith.constant dense<0.000000e+00> : vector<8x32xf32>
    %390 = tpu.matmul %387, %389, %cst_185 {dimension_numbers = #tpu.dot_dimension_numbers<[1], [0], [0], [1], [0, 0, 1, 1], [], []>} : vector<8x32xf32>, vector<32x32xf32>, vector<8x32xf32> -> vector<8x32xf32>
    %c0_186 = arith.constant 0 : index
    %c0_187 = arith.constant 0 : index
    %c0_188 = arith.constant 0 : index
    %391 = vector.load %arg18[%c0_186, %c0_187, %c0_188] : memref<1x1x32xf32, #tpu.memory_space<vmem>>, vector<1x1x32xf32>
    %392 = vector.shape_cast %391 : vector<1x1x32xf32> to vector<1x32xf32>
    %393 = vector.broadcast %392 : vector<1x32xf32> to vector<8x32xf32>
    %394 = arith.addf %390, %393 : vector<8x32xf32>
    %395 = arith.addf %193, %394 : vector<8x32xf32>
    %c0_189 = arith.constant 0 : index
    %c0_190 = arith.constant 0 : index
    %c0_191 = arith.constant 0 : index
    %396 = vector.load %arg25[%c0_189, %c0_190, %c0_191] : memref<1x1x32xf32, #tpu.memory_space<vmem>>, vector<1x1x32xf32>
    %397 = vector.shape_cast %396 : vector<1x1x32xf32> to vector<1x32xf32>
    %c0_192 = arith.constant 0 : index
    %c0_193 = arith.constant 0 : index
    %c0_194 = arith.constant 0 : index
    %398 = vector.load %arg26[%c0_192, %c0_193, %c0_194] : memref<1x1x32xf32, #tpu.memory_space<vmem>>, vector<1x1x32xf32>
    %399 = vector.shape_cast %398 : vector<1x1x32xf32> to vector<1x32xf32>
    %cst_195 = arith.constant dense<0.000000e+00> : vector<8xf32>
    %400 = vector.multi_reduction <add>, %395, %cst_195 [1] : vector<8x32xf32> to vector<8xf32>
    %401 = vector.shape_cast %400 : vector<8xf32> to vector<8x1xf32>
    %cst_196 = arith.constant 3.200000e+01 : f32
    %402 = vector.broadcast %cst_196 : f32 to vector<8x1xf32>
    %403 = arith.divf %401, %402 : vector<8x1xf32>
    %404 = vector.broadcast %403 : vector<8x1xf32> to vector<8x32xf32>
    %405 = arith.subf %395, %404 : vector<8x32xf32>
    %406 = arith.mulf %405, %405 : vector<8x32xf32>
    %cst_197 = arith.constant dense<0.000000e+00> : vector<8xf32>
    %407 = vector.multi_reduction <add>, %406, %cst_197 [1] : vector<8x32xf32> to vector<8xf32>
    %408 = vector.shape_cast %407 : vector<8xf32> to vector<8x1xf32>
    %cst_198 = arith.constant 3.200000e+01 : f32
    %409 = vector.broadcast %cst_198 : f32 to vector<8x1xf32>
    %410 = arith.divf %408, %409 : vector<8x1xf32>
    %411 = vector.broadcast %403 : vector<8x1xf32> to vector<8x32xf32>
    %412 = arith.subf %395, %411 : vector<8x32xf32>
    %cst_199 = arith.constant 9.99999974E-6 : f32
    %413 = vector.broadcast %cst_199 : f32 to vector<8x1xf32>
    %414 = arith.addf %410, %413 : vector<8x1xf32>
    %415 = math.rsqrt %414 : vector<8x1xf32>
    %416 = vector.broadcast %415 : vector<8x1xf32> to vector<8x32xf32>
    %417 = arith.mulf %412, %416 : vector<8x32xf32>
    %418 = vector.broadcast %397 : vector<1x32xf32> to vector<8x32xf32>
    %419 = arith.mulf %417, %418 : vector<8x32xf32>
    %420 = vector.broadcast %399 : vector<1x32xf32> to vector<8x32xf32>
    %421 = arith.addf %419, %420 : vector<8x32xf32>
    %c0_200 = arith.constant 0 : index
    %c0_201 = arith.constant 0 : index
    %c0_202 = arith.constant 0 : index
    %422 = vector.load %arg19[%c0_200, %c0_201, %c0_202] : memref<1x32x64xf32, #tpu.memory_space<vmem>>, vector<1x32x64xf32>
    %423 = vector.shape_cast %422 : vector<1x32x64xf32> to vector<32x64xf32>
    %cst_203 = arith.constant dense<0.000000e+00> : vector<8x64xf32>
    %424 = tpu.matmul %421, %423, %cst_203 {dimension_numbers = #tpu.dot_dimension_numbers<[1], [0], [0], [1], [0, 0, 1, 1], [], []>} : vector<8x32xf32>, vector<32x64xf32>, vector<8x64xf32> -> vector<8x64xf32>
    %c0_204 = arith.constant 0 : index
    %c0_205 = arith.constant 0 : index
    %c0_206 = arith.constant 0 : index
    %425 = vector.load %arg20[%c0_204, %c0_205, %c0_206] : memref<1x1x64xf32, #tpu.memory_space<vmem>>, vector<1x1x64xf32>
    %426 = vector.shape_cast %425 : vector<1x1x64xf32> to vector<1x64xf32>
    %427 = vector.broadcast %426 : vector<1x64xf32> to vector<8x64xf32>
    %428 = arith.addf %424, %427 : vector<8x64xf32>
    %cst_207 = arith.constant 0.000000e+00 : f32
    %429 = vector.broadcast %cst_207 : f32 to vector<8x64xf32>
    %430 = arith.maximumf %428, %429 : vector<8x64xf32>
    %c0_208 = arith.constant 0 : index
    %c0_209 = arith.constant 0 : index
    %c0_210 = arith.constant 0 : index
    %431 = vector.load %arg21[%c0_208, %c0_209, %c0_210] : memref<1x64x32xf32, #tpu.memory_space<vmem>>, vector<1x64x32xf32>
    %432 = vector.shape_cast %431 : vector<1x64x32xf32> to vector<64x32xf32>
    %cst_211 = arith.constant dense<0.000000e+00> : vector<8x32xf32>
    %433 = tpu.matmul %430, %432, %cst_211 {dimension_numbers = #tpu.dot_dimension_numbers<[1], [0], [0], [1], [0, 0, 1, 1], [], []>} : vector<8x64xf32>, vector<64x32xf32>, vector<8x32xf32> -> vector<8x32xf32>
    %c0_212 = arith.constant 0 : index
    %c0_213 = arith.constant 0 : index
    %c0_214 = arith.constant 0 : index
    %434 = vector.load %arg22[%c0_212, %c0_213, %c0_214] : memref<1x1x32xf32, #tpu.memory_space<vmem>>, vector<1x1x32xf32>
    %435 = vector.shape_cast %434 : vector<1x1x32xf32> to vector<1x32xf32>
    %436 = vector.broadcast %435 : vector<1x32xf32> to vector<8x32xf32>
    %437 = arith.addf %433, %436 : vector<8x32xf32>
    %438 = arith.addf %421, %437 : vector<8x32xf32>
    %c0_215 = arith.constant 0 : index
    %c0_216 = arith.constant 0 : index
    %c0_217 = arith.constant 0 : index
    %439 = vector.load %arg27[%c0_215, %c0_216, %c0_217] : memref<1x1x32xf32, #tpu.memory_space<vmem>>, vector<1x1x32xf32>
    %440 = vector.shape_cast %439 : vector<1x1x32xf32> to vector<1x32xf32>
    %c0_218 = arith.constant 0 : index
    %c0_219 = arith.constant 0 : index
    %c0_220 = arith.constant 0 : index
    %441 = vector.load %arg28[%c0_218, %c0_219, %c0_220] : memref<1x1x32xf32, #tpu.memory_space<vmem>>, vector<1x1x32xf32>
    %442 = vector.shape_cast %441 : vector<1x1x32xf32> to vector<1x32xf32>
    %cst_221 = arith.constant dense<0.000000e+00> : vector<8xf32>
    %443 = vector.multi_reduction <add>, %438, %cst_221 [1] : vector<8x32xf32> to vector<8xf32>
    %444 = vector.shape_cast %443 : vector<8xf32> to vector<8x1xf32>
    %cst_222 = arith.constant 3.200000e+01 : f32
    %445 = vector.broadcast %cst_222 : f32 to vector<8x1xf32>
    %446 = arith.divf %444, %445 : vector<8x1xf32>
    %447 = vector.broadcast %446 : vector<8x1xf32> to vector<8x32xf32>
    %448 = arith.subf %438, %447 : vector<8x32xf32>
    %449 = arith.mulf %448, %448 : vector<8x32xf32>
    %cst_223 = arith.constant dense<0.000000e+00> : vector<8xf32>
    %450 = vector.multi_reduction <add>, %449, %cst_223 [1] : vector<8x32xf32> to vector<8xf32>
    %451 = vector.shape_cast %450 : vector<8xf32> to vector<8x1xf32>
    %cst_224 = arith.constant 3.200000e+01 : f32
    %452 = vector.broadcast %cst_224 : f32 to vector<8x1xf32>
    %453 = arith.divf %451, %452 : vector<8x1xf32>
    %454 = vector.broadcast %446 : vector<8x1xf32> to vector<8x32xf32>
    %455 = arith.subf %438, %454 : vector<8x32xf32>
    %cst_225 = arith.constant 9.99999974E-6 : f32
    %456 = vector.broadcast %cst_225 : f32 to vector<8x1xf32>
    %457 = arith.addf %453, %456 : vector<8x1xf32>
    %458 = math.rsqrt %457 : vector<8x1xf32>
    %459 = vector.broadcast %458 : vector<8x1xf32> to vector<8x32xf32>
    %460 = arith.mulf %455, %459 : vector<8x32xf32>
    %461 = vector.broadcast %440 : vector<1x32xf32> to vector<8x32xf32>
    %462 = arith.mulf %460, %461 : vector<8x32xf32>
    %463 = vector.broadcast %442 : vector<1x32xf32> to vector<8x32xf32>
    %464 = arith.addf %462, %463 : vector<8x32xf32>
    %c0_226 = arith.constant 0 : index
    %c0_227 = arith.constant 0 : index
    %465 = vector.load %arg29[%c0_226, %c0_227] : memref<8x32xf32, #tpu.memory_space<vmem>>, vector<8x32xf32>
    tpu.vector_store %arg29[%c0_226, %c0_227], %464 {strides = array<i32>} : memref<8x32xf32, #tpu.memory_space<vmem>>, vector<8x32xf32>,
    return
  }
  func.func @transform_0(%arg0: i32) -> (i32, i32) {
    %c0_i32 = arith.constant 0 : i32
    %c0_i32_0 = arith.constant 0 : i32
    %c0_i32_1 = arith.constant 0 : i32
    return %c0_i32, %c0_i32_0 : i32, i32
  }
  func.func @transform_1(%arg0: i32) -> (i32, i32) {
    %c0_i32 = arith.constant 0 : i32
    %c0_i32_0 = arith.constant 0 : i32
    %c0_i32_1 = arith.constant 0 : i32
    return %c0_i32, %c0_i32_0 : i32, i32
  }
  func.func @transform_2(%arg0: i32) -> (i32, i32) {
    %c0_i32 = arith.constant 0 : i32
    %c0_i32_0 = arith.constant 0 : i32
    %c0_i32_1 = arith.constant 0 : i32
    return %c0_i32, %c0_i32_0 : i32, i32
  }
  func.func @transform_3(%arg0: i32) -> (i32, i32) {
    %c0_i32 = arith.constant 0 : i32
    %c0_i32_0 = arith.constant 0 : i32
    %c0_i32_1 = arith.constant 0 : i32
    return %c0_i32, %c0_i32_0 : i32, i32
  }
  func.func @transform_4(%arg0: i32) -> (i32, i32, i32) {
    %c0_i32 = arith.constant 0 : i32
    %c0_i32_0 = arith.constant 0 : i32
    %c0_i32_1 = arith.constant 0 : i32
    return %arg0, %c0_i32, %c0_i32_0 : i32, i32, i32
  }
  func.func @transform_5(%arg0: i32) -> (i32, i32, i32) {
    %c0_i32 = arith.constant 0 : i32
    %c0_i32_0 = arith.constant 0 : i32
    %c0_i32_1 = arith.constant 0 : i32
    return %arg0, %c0_i32, %c0_i32_0 : i32, i32, i32
  }
  func.func @transform_6(%arg0: i32) -> (i32, i32, i32) {
    %c0_i32 = arith.constant 0 : i32
    %c0_i32_0 = arith.constant 0 : i32
    %c0_i32_1 = arith.constant 0 : i32
    return %arg0, %c0_i32, %c0_i32_0 : i32, i32, i32
  }
  func.func @transform_7(%arg0: i32) -> (i32, i32, i32) {
    %c0_i32 = arith.constant 0 : i32
    %c0_i32_0 = arith.constant 0 : i32
    %c0_i32_1 = arith.constant 0 : i32
    return %arg0, %c0_i32, %c0_i32_0 : i32, i32, i32
  }
  func.func @transform_8(%arg0: i32) -> (i32, i32, i32) {
    %c0_i32 = arith.constant 0 : i32
    %c0_i32_0 = arith.constant 0 : i32
    %c0_i32_1 = arith.constant 0 : i32
    return %arg0, %c0_i32, %c0_i32_0 : i32, i32, i32
  }
  func.func @transform_9(%arg0: i32) -> (i32, i32, i32) {
    %c0_i32 = arith.constant 0 : i32
    %c0_i32_0 = arith.constant 0 : i32
    %c0_i32_1 = arith.constant 0 : i32
    return %arg0, %c0_i32, %c0_i32_0 : i32, i32, i32
  }
  func.func @transform_10(%arg0: i32) -> (i32, i32, i32) {
    %c0_i32 = arith.constant 0 : i32
    %c0_i32_0 = arith.constant 0 : i32
    %c0_i32_1 = arith.constant 0 : i32
    return %arg0, %c0_i32, %c0_i32_0 : i32, i32, i32
  }
  func.func @transform_11(%arg0: i32) -> (i32, i32, i32) {
    %c0_i32 = arith.constant 0 : i32
    %c0_i32_0 = arith.constant 0 : i32
    %c0_i32_1 = arith.constant 0 : i32
    return %arg0, %c0_i32, %c0_i32_0 : i32, i32, i32
  }
  func.func @transform_12(%arg0: i32) -> (i32, i32, i32) {
    %c0_i32 = arith.constant 0 : i32
    %c0_i32_0 = arith.constant 0 : i32
    %c0_i32_1 = arith.constant 0 : i32
    return %arg0, %c0_i32, %c0_i32_0 : i32, i32, i32
  }
  func.func @transform_13(%arg0: i32) -> (i32, i32, i32) {
    %c0_i32 = arith.constant 0 : i32
    %c0_i32_0 = arith.constant 0 : i32
    %c0_i32_1 = arith.constant 0 : i32
    return %arg0, %c0_i32, %c0_i32_0 : i32, i32, i32
  }
  func.func @transform_14(%arg0: i32) -> (i32, i32, i32) {
    %c0_i32 = arith.constant 0 : i32
    %c0_i32_0 = arith.constant 0 : i32
    %c0_i32_1 = arith.constant 0 : i32
    return %arg0, %c0_i32, %c0_i32_0 : i32, i32, i32
  }
  func.func @transform_15(%arg0: i32) -> (i32, i32, i32) {
    %c0_i32 = arith.constant 0 : i32
    %c0_i32_0 = arith.constant 0 : i32
    %c0_i32_1 = arith.constant 0 : i32
    return %arg0, %c0_i32, %c0_i32_0 : i32, i32, i32
  }
  func.func @transform_16(%arg0: i32) -> (i32, i32, i32) {
    %c0_i32 = arith.constant 0 : i32
    %c0_i32_0 = arith.constant 0 : i32
    %c0_i32_1 = arith.constant 0 : i32
    return %arg0, %c0_i32, %c0_i32_0 : i32, i32, i32
  }
  func.func @transform_17(%arg0: i32) -> (i32, i32, i32) {
    %c0_i32 = arith.constant 0 : i32
    %c0_i32_0 = arith.constant 0 : i32
    %c0_i32_1 = arith.constant 0 : i32
    return %arg0, %c0_i32, %c0_i32_0 : i32, i32, i32
  }
  func.func @transform_18(%arg0: i32) -> (i32, i32, i32) {
    %c0_i32 = arith.constant 0 : i32
    %c0_i32_0 = arith.constant 0 : i32
    %c0_i32_1 = arith.constant 0 : i32
    return %arg0, %c0_i32, %c0_i32_0 : i32, i32, i32
  }
  func.func @transform_19(%arg0: i32) -> (i32, i32, i32) {
    %c0_i32 = arith.constant 0 : i32
    %c0_i32_0 = arith.constant 0 : i32
    %c0_i32_1 = arith.constant 0 : i32
    return %arg0, %c0_i32, %c0_i32_0 : i32, i32, i32
  }
  func.func @transform_20(%arg0: i32) -> (i32, i32, i32) {
    %c0_i32 = arith.constant 0 : i32
    %c0_i32_0 = arith.constant 0 : i32
    %c0_i32_1 = arith.constant 0 : i32
    return %arg0, %c0_i32, %c0_i32_0 : i32, i32, i32
  }
  func.func @transform_21(%arg0: i32) -> (i32, i32, i32) {
    %c0_i32 = arith.constant 0 : i32
    %c0_i32_0 = arith.constant 0 : i32
    %c0_i32_1 = arith.constant 0 : i32
    return %arg0, %c0_i32, %c0_i32_0 : i32, i32, i32
  }
  func.func @transform_22(%arg0: i32) -> (i32, i32, i32) {
    %c0_i32 = arith.constant 0 : i32
    %c0_i32_0 = arith.constant 0 : i32
    %c0_i32_1 = arith.constant 0 : i32
    return %arg0, %c0_i32, %c0_i32_0 : i32, i32, i32
  }
  func.func @transform_23(%arg0: i32) -> (i32, i32, i32) {
    %c0_i32 = arith.constant 0 : i32
    %c0_i32_0 = arith.constant 0 : i32
    %c0_i32_1 = arith.constant 0 : i32
    return %arg0, %c0_i32, %c0_i32_0 : i32, i32, i32
  }
  func.func @transform_24(%arg0: i32) -> (i32, i32, i32) {
    %c0_i32 = arith.constant 0 : i32
    %c0_i32_0 = arith.constant 0 : i32
    %c0_i32_1 = arith.constant 0 : i32
    return %arg0, %c0_i32, %c0_i32_0 : i32, i32, i32
  }
  func.func @transform_25(%arg0: i32) -> (i32, i32, i32) {
    %c0_i32 = arith.constant 0 : i32
    %c0_i32_0 = arith.constant 0 : i32
    %c0_i32_1 = arith.constant 0 : i32
    return %arg0, %c0_i32, %c0_i32_0 : i32, i32, i32
  }
  func.func @transform_26(%arg0: i32) -> (i32, i32, i32) {
    %c0_i32 = arith.constant 0 : i32
    %c0_i32_0 = arith.constant 0 : i32
    %c0_i32_1 = arith.constant 0 : i32
    return %arg0, %c0_i32, %c0_i32_0 : i32, i32, i32
  }
  func.func @transform_27(%arg0: i32) -> (i32, i32, i32) {
    %c0_i32 = arith.constant 0 : i32
    %c0_i32_0 = arith.constant 0 : i32
    %c0_i32_1 = arith.constant 0 : i32
    return %arg0, %c0_i32, %c0_i32_0 : i32, i32, i32
  }
  func.func @transform_28(%arg0: i32) -> (i32, i32) {
    %c0_i32 = arith.constant 0 : i32
    %c0_i32_0 = arith.constant 0 : i32
    %c0_i32_1 = arith.constant 0 : i32
    return %c0_i32, %c0_i32_0 : i32, i32
  }
  func.func @transform_29(%arg0: i32) -> (i32, i32, i32) {
    %c0_i32 = arith.constant 0 : i32
    %c0_i32_0 = arith.constant 0 : i32
    %c0_i32_1 = arith.constant 0 : i32
    return %arg0, %c0_i32, %c0_i32_0 : i32, i32, i32
  }
}

</mosaic_0001>

<bundles_post_ra>
// kernel: _lambda_.5
= control target key start
LH: loop header
LB: loop body
LE: loop exit
PB: predicated region body
PF: predicated region fallthrough
CT: control target
= control target key end

     0   :  { %v640_v0 = vmov 0.0|0.0   ;;  %vm641_vm0 = vmmov 0   ;;  %v642_v4 = vmov 0.0   ;;  %vm57_vm1 = vcmask 261120   ;;  %s820_s2 = inlined_call_operand.vmem [shape: f32[32,2], index: 2, kind: input, shape index: {}]   ;;  %s821_s4 = inlined_call_operand.vmem [shape: f32[32,1], index: 4, kind: input, shape index: {}]   ;;  %s822_s6 = inlined_call_operand.vmem [shape: f32[32,32], index: 6, kind: input, shape index: {}]   ;;  %s823_s1 = inlined_call_operand.vmem [shape: f32[8,32], index: 1, kind: input, shape index: {}]   ;;  %s824_s0 = inlined_call_operand.vmem [shape: f32[8,32], index: 0, kind: input, shape index: {}]   ;;  %s825_s8 = inlined_call_operand.vmem [shape: f32[32,32], index: 8, kind: input, shape index: {}]   ;;  %s826_s5 = inlined_call_operand.<no memory space> [shape: f32[1,1], index: 5, kind: input, shape index: {}]   ;;  %s827_s10 = inlined_call_operand.vmem [shape: f32[32,2], index: 10, kind: input, shape index: {}]   ;;  %s828_s7 = inlined_call_operand.vmem [shape: f32[1,32], index: 7, kind: input, shape index: {}]   ;;  %s829_s12 = inlined_call_operand.vmem [shape: f32[8,1], index: 12, kind: output, shape index: {0}]   ;;  %s830_s9 = inlined_call_operand.vmem [shape: f32[1,32], index: 9, kind: input, shape index: {}]   ;;  %s831_s3 = inlined_call_operand.vmem [shape: f32[1,2], index: 3, kind: input, shape index: {}]   ;;  %s832_s11 = inlined_call_operand.vmem [shape: f32[1,2], index: 11, kind: input, shape index: {}]   ;;  %s833_s13 = inlined_call_operand.vmem [shape: f32[8,2], index: 13, kind: output, shape index: {1}]  }
   0x1   :  { %595 = vmatprep.subr.bf16.mxu0 %v640_v0  ;;  %v46_v1 = vld [vmem:[%s820_s2] sm:$0xff]  ;;  %v47_v2 = vld [vmem:[%s820_s2 + $0x8] sm:$0xff]  ;;  %v48_v3 = vld [vmem:[%s820_s2 + $0x10] sm:$0xff]  ;;  %548 = vmatprep.mubr.msk.f32.mxu0 %vm641_vm0, %v642_v4  ;;  %v19_v28 = vstv %s826_s5  ;;  %vm492_vm2 = vcmask 7168   ;;  %vm494_vm3 = vcmask 15360  }
   0x2   :  { %v596_v5 = vpack.c.bf16 %v47_v2, %v46_v1  ;;  %v49_v6 = vld [vmem:[%s820_s2 + $0x18] sm:$0xff]  ;;  %601 = vmatprep.subr.bf16.mxu1 %v640_v0  ;;  %559 = vmatprep.mubr.msk.f32.mxu1 %vm641_vm0, %v642_v4  ;;  %v148_v8 = vld [vmem:[%s821_s4] sm:$0xff]  ;;  %v149_v9 = vld [vmem:[%s821_s4 + $0x8] sm:$0xff]  ;;  %20 = vst [vmem:[#allocation2] sm:$0x1] %v19_v28 }
   0x3   :  { %v599_v7 = vpack.c.bf16 %v49_v6, %v48_v3  ;;  %v232_v10 = vld [vmem:[%s822_s6] sm:$0xff]  ;;  %v233_v11 = vld [vmem:[%s822_s6 + $0x8] sm:$0xff]  ;;  %v602_v12 = vpack.c.bf16 %v149_v9, %v148_v8  ;;  %v234_v15 = vld [vmem:[%s822_s6 + $0x10] sm:$0xff] }
   0x4   :  { %597 = vmatpush3.bf16.msra.mxu0 %v596_v5  ;;  %v45_v13 = vld [vmem:[%s823_s1] sm:$0xff]  ;;  %v608_v14 = vpack.c.bf16 %v233_v11, %v232_v10  ;;  %v235_v16 = vld [vmem:[%s822_s6 + $0x18] sm:$0xff]  ;;  %v150_v19 = vld [vmem:[%s821_s4 + $0x10] sm:$0xff] }
   0x5   :  { %598 = vmatprep.subr.bf16.mxu0 %v640_v0  ;;  %603 = vmatpush3.bf16.msra.mxu1 %v602_v12  ;;  %v611_v17 = vpack.c.bf16 %v235_v16, %v234_v15  ;;  %v147_v18 = vld [vmem:[%s824_s0] sm:$0xff]  ;;  %v151_v20 = vld [vmem:[%s821_s4 + $0x18] sm:$0xff]  ;;  %v315_v23 = vld [vmem:[%s825_s8 + $0x8] sm:$0xff] }
   0x6   :  { %604 = vmatprep.subr.bf16.mxu1 %v640_v0  ;;  %v605_v21 = vpack.c.bf16 %v151_v20, %v150_v19  ;;  %v314_v22 = vld [vmem:[%s825_s8] sm:$0xff]  ;;  %v316_v25 = vld [vmem:[%s825_s8 + $0x10] sm:$0xff]  ;;  %v317_v26 = vld [vmem:[%s825_s8 + $0x18] sm:$0xff] }
   0x7   :  { %v614_v24 = vpack.c.bf16 %v315_v23, %v314_v22  ;;  %v617_v27 = vpack.c.bf16 %v317_v26, %v316_v25  ;;  %v399_v29 = vld [vmem:[%s827_s10] sm:$0xff]  ;;  %v400_v30 = vld [vmem:[%s827_s10 + $0x8] sm:$0xff]  ;;  %v401_v43 = vld [vmem:[%s827_s10 + $0x10] sm:$0xff] }
   0x8   :  { %600 = vmatpush3.bf16.msra.mxu0 %v599_v7  ;;  %v620_v31 = vpack.c.bf16 %v400_v30, %v399_v29  ;;  %v508_v34 = vld [vmem:[%s828_s7] ss:$0 sm:$0xff]  ;;  %v402_v44 = vld [vmem:[%s827_s10 + $0x18] sm:$0xff] }
   0x9   :  { %607 = vmatprep.subr.bf16.mxu0 %v640_v0  ;;  %606 = vmatpush3.bf16.msra.mxu1 %v605_v21  ;;  %v506_v39 = vld [vmem:[#allocation2] ss:$0 sm:$0xff]  ;;  %v623_v45 = vpack.c.bf16 %v402_v44, %v401_v43 }
   0xa   :  { %613 = vmatprep.subr.bf16.mxu1 %v640_v0  ;;  %v510_v46 = vld [vmem:[%s830_s9] ss:$0 sm:$0xff] }
   0xb   :  { %549 = vmatmul.mubr.msk.f32.vlgmr.msra.gmra.mrb[0].mxu0 %vm57_vm1, %v45_v13  ;;  %v504_v51 = vld [vmem:[%s831_s3] ss:$0 sm:$0xff] }
   0xc   :  { %609 = vmatpush3.bf16.msra.mxu0 %v608_v14  ;;  %570 = vmatprep.mubr.msk.f32.mxu0 %vm641_vm0, %v642_v4  ;;  %v512_v3 = vld [vmem:[%s832_s11] ss:$0 sm:$0xff] }
   0xd   :  { %610 = vmatprep.subr.bf16.mxu0 %v640_v0  ;;  %560 = vmatmul.mubr.msk.f32.vlgmr.msra.gmra.mrb[0].mxu1 %vm57_vm1, %v147_v18 }
   0xe   :  { %615 = vmatpush3.bf16.msra.mxu1 %v614_v24  ;;  %581 = vmatprep.mubr.msk.f32.mxu1 %vm641_vm0, %v642_v4 }
   0xf   :  { %616 = vmatprep.subr.bf16.mxu1 %v640_v0 }
  0x10   :  { %612 = vmatpush3.bf16.msra.mxu0 %v611_v17 }
  0x11   :  { %619 = vmatprep.subr.bf16.mxu0 %v640_v0 }
  0x12   :  { %618 = vmatpush3.bf16.msra.mxu1 %v617_v27 }
  0x13   :  { %571 = vmatmul.mubr.msk.f32.vlgmr.msra.gmra.mrb[2].mxu0 %vm57_vm1, %v147_v18 }
  0x14   :  { %592 = vmatprep.mubr.msk.f32.mxu0 %vm641_vm0, %v642_v4  ;;  %621 = vmatpush3.bf16.msra.mxu0 %v620_v31 }
  0x15   :  { %622 = vmatprep.subr.bf16.mxu0 %v640_v0 }
  0x18   :  { %624 = vmatpush3.bf16.msra.mxu0 %v623_v45 }
  0xde   :  { %v127_v32 = vpop.f32.mrb[0].mxu0 }
  0xdf   :  { %v550_v33 = vpop.f32.mrb[1].mxu0  ;;  %v128_v52 = vadd.f32 %v504_v51, %v127_v32 }
  0xe0   :  { %v228_v40 = vpop.f32.mrb[0].mxu1 }
  0xe1   :  { %v229_v41 = vadd.f32 %v506_v39, %v228_v40  ;;  %v561_v42 = vpop.f32.mrb[1].mxu1  ;;  %v131_v53 = vsub.f32 0.0, %v128_v52 }
  0xe3   :  { %493 = vst.msk [vmem:[%s829_s12] sm:$0xff] %vm492_vm2, %v229_v41  ;;  %v132_v54 = vmul.f32 1.442695, %v131_v53 }
  0xe5   :  { %628 = vpow2.f32 %v132_v54 }
  0xe6   :  { %v309_v35 = vpop.f32.mrb[2].mxu0 }
  0xe7   :  { %v310_v36 = vadd.f32 %v508_v34, %v309_v35  ;;  %v572_v37 = vpop.f32.mrb[3].mxu0 }
  0xe9   :  { %v313_v38 = vmax.f32 %v310_v36, 0.0 }
  0xeb   :  { %582 = vmatmul.mubr.msk.f32.vlgmr.msra.gmra.mrb[2].mxu1 %vm57_vm1, %v313_v38 }
  0xef   :  { %v629_v55 = vpop.eup %628 }
  0xf0   :  { %v134_v56 = vadd.f32 1.0, %v629_v55 }
  0xf2   :  { %630 = vrcp.f32 %v134_v56 }
  0xfc   :  { %v631_v57 = vpop.eup %630 }
  0xfd   :  { %v137_v58 = vmax.f32 %v631_v57, 0.0 }
  0xff   :  { %v138_v59 = vmin.f32 %v137_v58, 1.0 }
 0x101   :  { %v142_v60 = vsub.f32 1.0, %v138_v59  ;;  %v139_v61 = vmax.f32 %v138_v59, 1e-05 }
 0x103   :  { %v143_v62 = vmax.f32 %v142_v60, 1e-05  ;;  %632 = vlog2.f32 %v139_v61 }
 0x105   :  { %634 = vlog2.f32 %v143_v62 }
 0x10d   :  { %v633_v63 = vpop.eup %632 }
 0x10e   :  { %v141_v1 = vmul.f32 0.6931472, %v633_v63 }
 0x10f   :  { %v635_v0 = vpop.eup %634 }
 0x110   :  { %v145_v2 = vmul.f32 0.6931472, %v635_v0 }
 0x112   :  { %v146_v5 = vsub.f32 %v141_v1, %v145_v2 }
 0x1be   :  { %v394_v47 = vpop.f32.mrb[2].mxu1 }
 0x1bf   :  { %v395_v48 = vadd.f32 %v510_v46, %v394_v47  ;;  %v583_v49 = vpop.f32.mrb[3].mxu1 }
 0x1c1   :  { %v398_v50 = vmax.f32 %v395_v48, 0.0 }
 0x1c3   :  { %593 = vmatmul.mubr.msk.f32.vlgmr.msra.gmra.mrb[4].mxu0 %vm57_vm1, %v398_v50 }
 0x296   :  { %v479_v4 = vpop.f32.mrb[4].mxu0 }
 0x297   :  { %v480_v6 = vadd.f32 %v512_v3, %v479_v4  ;;  %v594_v7 = vpop.f32.mrb[5].mxu0 }
 0x299   :  { %v483_v8 = vadd.f32 %v480_v6, %v146_v5 }
 0x29b   :  { %v484_v9 = vsub.f32 0.0, %v483_v8 }
 0x29d   :  { %v485_v10 = vmul.f32 1.442695, %v484_v9 }
 0x29f   :  { %636 = vpow2.f32 %v485_v10 }
 0x2a9   :  { %v637_v11 = vpop.eup %636 }
 0x2aa   :  { %v487_v12 = vadd.f32 1.0, %v637_v11 }
 0x2ac   :  { %638 = vrcp.f32 %v487_v12 }
 0x2b6   :  { %v639_v13 = vpop.eup %638 }
 0x2b7   :  { %v514_v14 = vadd.f32 -0.5, %v639_v13 }
 0x2b9   :  { %v491_v15 = vmul.f32 20.0, %v514_v14 }
 0x2bb   :  { %495 = vst.msk [vmem:[%s833_s13] sm:$0xff] %vm494_vm3, %v491_v15 }

// kernel: _lambda_.3
= control target key start
LH: loop header
LB: loop body
LE: loop exit
PB: predicated region body
PF: predicated region fallthrough
CT: control target
= control target key end

     0   :  { %s3842_s0 = inlined_call_operand.vmem [shape: f32[16,2], index: 0, kind: input, shape index: {}]   ;;  %s3843_s1 = inlined_call_operand.vmem [shape: f32[2,32], index: 1, kind: input, shape index: {}]   ;;  %s3844_s2 = inlined_call_operand.vmem [shape: f32[1,32], index: 2, kind: input, shape index: {}]   ;;  %s3845_s3 = inlined_call_operand.vmem [shape: f32[16,32], index: 3, kind: input, shape index: {}]   ;;  %s3846_s4 = inlined_call_operand.vmem [shape: f32[2,8], index: 4, kind: input, shape index: {}]   ;;  %s3847_s5 = inlined_call_operand.vmem [shape: f32[2,32,64], index: 5, kind: input, shape index: {}]   ;;  %s3848_s6 = inlined_call_operand.vmem [shape: f32[2,1,64], index: 6, kind: input, shape index: {}]   ;;  %s3849_s7 = inlined_call_operand.vmem [shape: f32[2,32,32], index: 7, kind: input, shape index: {}]   ;;  %s3850_s8 = inlined_call_operand.vmem [shape: f32[2,1,32], index: 8, kind: input, shape index: {}]   ;;  %s3851_s9 = inlined_call_operand.vmem [shape: f32[2,32,32], index: 9, kind: input, shape index: {}]   ;;  %s3852_s10 = inlined_call_operand.vmem [shape: f32[2,1,32], index: 10, kind: input, shape index: {}]   ;;  %s3853_s11 = inlined_call_operand.vmem [shape: f32[2,32,64], index: 11, kind: input, shape index: {}]   ;;  %s3854_s12 = inlined_call_operand.vmem [shape: f32[2,1,64], index: 12, kind: input, shape index: {}]   ;;  %s3855_s13 = inlined_call_operand.vmem [shape: f32[2,64,32], index: 13, kind: input, shape index: {}]   ;;  %s3856_s14 = inlined_call_operand.vmem [shape: f32[2,1,32], index: 14, kind: input, shape index: {}]   ;;  %s3857_s15 = inlined_call_operand.vmem [shape: f32[2,1,32], index: 15, kind: input, shape index: {}]   ;;  %s3858_s16 = inlined_call_operand.vmem [shape: f32[2,1,32], index: 16, kind: input, shape index: {}]   ;;  %s3859_s17 = inlined_call_operand.vmem [shape: f32[2,1,32], index: 17, kind: input, shape index: {}]   ;;  %s3860_s18 = inlined_call_operand.vmem [shape: f32[2,1,32], index: 18, kind: input, shape index: {}]   ;;  %s3861_s19 = inlined_call_operand.vmem [shape: f32[16,32], index: 19, kind: output, shape index: {}]  }
   0x1   :  { %3867 = sst [smem:[#allocation4_spill]] %s3842_s0  ;;  %s3504_s0 = smov 0  }
   0x2   :  { %3868 = sst [smem:[#allocation5_spill]] %s3843_s1 }
   0x3   :  { %3869 = sst [smem:[#allocation6_spill]] %s3844_s2 }
   0x4   :  { %3870 = sst [smem:[#allocation7_spill]] %s3845_s3 }
   0x5   :  { %3871 = sst [smem:[#allocation8_spill]] %s3846_s4 }
   0x6   :  { %3872 = sst [smem:[#allocation9_spill]] %s3847_s5 }
   0x7   :  { %3873 = sst [smem:[#allocation10_spill]] %s3849_s7 }
   0x8   :  { %3874 = sst [smem:[#allocation11_spill]] %s3851_s9 }
   0x9   :  { %3875 = sst [smem:[#allocation12_spill]] %s3853_s11 }
   0xa   :  { %3876 = sst [smem:[#allocation13_spill]] %s3854_s12 }
   0xb   :  { %3877 = sst [smem:[#allocation14_spill]] %s3860_s18 }
   0xc   :  { %3878 = sst [smem:[#allocation15_spill]] %s3861_s19 }
   0xd LB: > { %3879 = sst [smem:[#allocation3_spill]] %s3390_s0  ;;  %s2990_s30 = sadd.s32 4294967295, %s3390_s0   ;;  %s3390_s0 = sphi %s3504_s0, %s29_s0  }
   0xe   : > { %p2993_p0 = scmp.ge.s32.totalorder %s3390_s0, 1  ;;  %p644_p1 = scmp.lt.s32.totalorder %s3390_s0, 3 }
  0x10   : > { %p645_p2 = pnand %p2993_p0, %p644_p1 }
  0x11   : > { %p742_p3 = scmp.lt.s32.totalorder (!%p645_p2), %s2990_s30, 1  ;;  %s3880_s5 = sld [smem:[#allocation9_spill]] (!%p645_p2) }
  0x12   : > { %648 = sbr.rel (%p645_p2) target bundleno = 2861 (0xb2d), region = 96  ;;  %s3881_s7 = sld [smem:[#allocation10_spill]] (!%p645_p2) }
  0x13   : > { %s3882_s9 = sld [smem:[#allocation11_spill]] (!%p645_p2)  ;;  %s3883_s11 = sld [smem:[#allocation12_spill]] (!%p645_p2) }
  0x14   : > { %p3004_p4 = scmp.ne.s32.totalorder (!%p645_p2), %s2990_s30, 0 }
  0x19   : > { %s3512_s20 = scalar_select %p742_p3, %s2990_s30, 1 }
  0x1a   : > { %s3886_s1 = sld [smem:[#allocation5_spill]] (!%p3004_p4)  ;;  %vm817_vm0 = vcmask (!%p3004_p4), 1041408   ;;  %s3887_s2 = sld [smem:[#allocation4_spill]] (!%p3004_p4)  ;;  %vm810_vm1 = vcmask (!%p3004_p4), 15360   ;;  %vm896_vm2 = vcmask (!%p3004_p4), 261120  }
  0x1b   : > { %s3054_s21 = sshll.u32 %s3512_s20, 5  ;;  %s3058_s28 = sshll.u32 %s3512_s20, 6 }
  0x1c   : > { %s3522_s25 = scalar_lea.vmem %s3880_s5, %s3054_s21  ;;  %s3527_s27 = scalar_lea.vmem %s3881_s7, %s3054_s21 }
  0x1d   : > { %s3536_s18 = scalar_lea.vmem %s3882_s9, %s3054_s21  ;;  %s3545_s5 = scalar_lea.vmem %s3883_s11, %s3054_s21 }
  0x1e   : > { %s3555_s4 = scalar_lea.vmem %s3855_s13, %s3058_s28  ;;  %s787_s11 = scalar_lea.vmem %s3858_s16, %s3512_s20 }
  0x1f   : > { %s790_s7 = scalar_lea.vmem %s3859_s17, %s3512_s20  ;;  %s3885_s28 = sld [smem:[#allocation14_spill]] }
  0x20   : > { %797 = sbr.rel (%p3004_p4) target bundleno = 253 (0xfd), region = 100  ;;  %v802_v0 = vld [vmem:[%s3886_s1] sm:$0x3] (!%p3004_p4)  ;;  %v799_v2 = vld [vmem:[%s3887_s2 + $0x8] sm:$0xff] (!%p3004_p4)  ;;  %s3888_s3 = sld [smem:[#allocation6_spill]] (!%p3004_p4) }
  0x21   : > { %v798_v1 = vld [vmem:[%s3887_s2] sm:$0xff] (!%p3004_p4)  ;;  %3128 = vmatprep.subr.msk.mxu0 (!%p3004_p4), %vm817_vm0, %v802_v0  ;;  %v801_v4 = vmul.f32 (!%p3004_p4), 0.05, %v799_v2  ;;  %s3889_s0 = sld [smem:[#allocation15_spill]] (!%p3004_p4) }
  0x22   : > { %v800_v3 = vmul.f32 (!%p3004_p4), 0.05, %v798_v1  ;;  %3129 = vmatpush3.msk.msra.mxu0 (!%p3004_p4), %vm817_vm0, %v802_v0 }
  0x24   : > { %3130 = vmatprep.mubr.msk.f32.mxu0 (!%p3004_p4), %vm810_vm1, %v800_v3 }
  0x25   : > { %s793_s29 = scalar_lea.vmem %s3885_s28, %s3512_s20  ;;  %3131 = vmatmul.mubr.msk.f32.vlgmr.msra.gmra.mrb[0].mxu0 (!%p3004_p4), %vm810_vm1, %v801_v4 }
  0x26   : > { %v3005_v5 = vld [vmem:[%s3888_s3] ss:$0 sm:$0xff] (!%p3004_p4) }
  0xf8   : > { %v3132_v6 = vpop.f32.mrb[0].mxu0 }
  0xf9   : > { %v893_v7 = vadd.f32 %v3132_v6, %v3005_v5  ;;  %v887_v8 = vpop.f32.mrb[1].mxu0 }
  0xfa   : > { %v888_v9 = vadd.f32 %v3005_v5, %v887_v8 }
  0xfb   : > { %898 = vst.msk [vmem:[%s3889_s0 + $0x8] sm:$0xff] %vm896_vm2, %v893_v7 }
  0xfc   : > { %897 = vst.msk [vmem:[%s3889_s0] sm:$0xff] %vm896_vm2, %v888_v9 }
  0xfd PF: > { %v906_v10 = vld [vmem:[%s3522_s25] sm:$0xff]  ;;  %v907_v11 = vld [vmem:[%s3522_s25 + $0x8] sm:$0xff]  ;;  %v908_v12 = vld [vmem:[%s3522_s25 + $0x10] sm:$0xff]  ;;  %s3890_s22 = sld [smem:[#allocation15_spill]]  ;;  %vm917_vm3 = vcmask 261120   ;;  %v3392_v22 = vmov 0.0   ;;  %s3892_s28 = scalar_lea.vmem %s3848_s6, %s3512_s20  ;;  %v1092_v55 = vlaneseq }
  0xfe   : > { %v3276_v13 = vpack.c.bf16 %v907_v11, %v906_v10  ;;  %v909_v14 = vld [vmem:[%s3522_s25 + $0x18] sm:$0xff]  ;;  %s3891_s12 = sld [smem:[#allocation7_spill]]  ;;  %3155 = vmatprep.subr.mxu0 %v3392_v22  ;;  %vm3393_vm4 = vmmov 0   ;;  %v3009_v23 = vld [vmem:[%s3892_s28] ss:$0 sm:$0xff]  ;;  %s3394_s9 = smov 96  }
  0xff   : > { %v3280_v17 = vpack.c.bf16 %v909_v14, %v908_v12  ;;  %3157 = vmatprep.mubr.msk.f32.mxu0 %vm3393_vm4, %v3392_v22  ;;  %s3395_s19 = smov 120   ;;  %s3396_s23 = smov 88   ;;  %v999_v30 = vld [vmem:[%s3527_s27] sm:$0xff]  ;;  %v1000_v31 = vld [vmem:[%s3527_s27 + $0x8] sm:$0xff]  ;;  %v1001_v32 = vld [vmem:[%s3527_s27 + $0x10] sm:$0xff]  ;;  %vm1099_vm5 = vcmask 64512  }
 0x100   : > { %3277 = vmatprep.subr.bf16.mxu1 %v3276_v13  ;;  %s3397_s21 = smov 80   ;;  %s3398_s24 = smov 112   ;;  %v3284_v33 = vpack.c.bf16 %v1000_v31, %v999_v30  ;;  %v1002_v34 = vld [vmem:[%s3527_s27 + $0x18] sm:$0xff]  ;;  %v1093_v56 = vshrl.u32 %v1092_v55, 7  ;;  %vm1430_vm6 = vcmask 130112   ;;  %vm1601_vm7 = vcmask 195712  }
 0x101   : > { %3279 = vmatpush3.bf16.msra.mxu1 %v3276_v13  ;;  %s3399_s30 = smov 72   ;;  %s3400_s25 = smov 104   ;;  %v3288_v35 = vpack.c.bf16 %v1002_v34, %v1001_v32  ;;  %vm1772_vm8 = vcmask 261312   ;;  %vm2703_vm9 = vcmask 523264  }
 0x102   : > { %3281 = vmatprep.subr.bf16.mxu1 %v3280_v17  ;;  %s3893_s1 = scalar_lea.vmem %s3850_s8, %s3512_s20  ;;  %v1094_v57 = vsub.s32 0, %v1093_v56  ;;  %s3894_s28 = sld [smem:[#allocation8_spill]]  ;;  %v1777_v7 = vsub.s32 1, %v1093_v56 }
 0x103   : > { %v3602_v15 = vld [vmem:[%s3890_s22] sm:$0xff]  ;;  %v3612_v19 = vld [vmem:[%s3890_s22 + $0x8] sm:$0xff]  ;;  %s3897_s0 = sld [smem:[#allocation13_spill]] }
 0x104   : > { %v901_v16 = vld [vmem:[%s3891_s12] sm:$0xff]  ;;  %v902_v20 = vld [vmem:[%s3891_s12 + $0x8] sm:$0xff] }
 0x105   : > { %v904_v18 = vadd.f32 %v901_v16, %v3602_v15  ;;  %v905_v21 = vadd.f32 %v902_v20, %v3612_v19  ;;  %3283 = vmatpush3.bf16.msra.mxu1 %v3280_v17  ;;  %v3012_v50 = vld [vmem:[%s3893_s1] ss:$0 sm:$0xff] }
 0x106   : > { %3285 = vmatprep.subr.bf16.mxu1 %v3284_v33 }
 0x107   : > { %3141 = vmatprep.mubr.msk.f32.mxu1 %vm917_vm3, %v904_v18 }
 0x108   : > { %3142 = vmatmul.mubr.msk.f32.vlgmr.msra.gmra.mrb[0].mxu1 %vm917_vm3, %v905_v21  ;;  %v903_v58 = vld [vmem:[%s3894_s28] sm:$0x3] }
 0x109   : > { %3152 = vmatprep.mubr.msk.f32.mxu1 %vm917_vm3, %v3602_v15  ;;  %3287 = vmatpush3.bf16.msra.mxu1 %v3284_v33  ;;  %v1095_v59 = vrot.slane %v903_v58, %v1094_v57  ;;  %v1778_v12 = vrot.slane %v903_v58, %v1777_v7 }
 0x10a   : > { %3289 = vmatprep.subr.bf16.mxu1 %v3288_v35 }
 0x10d   : > { %3291 = vmatpush3.bf16.msra.mxu1 %v3288_v35 }
 0x10e   : > { %3160 = vmatprep.subr.mxu1 %v3392_v22 }
 0x110   : > { %3153 = vmatmul.mubr.msk.f32.vlgmr.msra.gmra.mrb[2].mxu1 %vm917_vm3, %v3612_v19 }
 0x111   : > { %3162 = vmatprep.mubr.msk.f32.mxu1 %vm3393_vm4, %v3392_v22 }
 0x1db   : > { %v3143_v24 = vpop.f32.mrb[0].mxu1 }
 0x1dc   : > { %v990_v25 = vpop.f32.mrb[1].mxu1  ;;  %v996_v28 = vadd.f32 %v3143_v24, %v3009_v23 }
 0x1dd   : > { %v991_v26 = vadd.f32 %v3009_v23, %v990_v25 }
 0x1de   : > { %v1774_v29 = vmul.f32 0.35355338, %v996_v28 }
 0x1df   : > { %1097 = vrot.lane.b32.xlu0 %v991_v26, %s3394_s9  ;;  %v1091_v27 = vmul.f32 0.35355338, %v991_v26 }
 0x1e1   : > { %1260 = vrot.lane.b32.xlu1 %v1091_v27, %s3395_s19 }
 0x1e3   : > { %1262 = vrot.lane.b32.xlu0 %v991_v26, %s3396_s23  ;;  %v3154_v51 = vpop.f32.mrb[2].mxu1 }
 0x1e4   : > { %v3686_v52 = vadd.f32 %v3154_v51, %v3012_v50  ;;  %v1082_v53 = vpop.f32.mrb[3].mxu1 }
 0x1e5   : > { %1434 = vrot.lane.b32.xlu1 %v991_v26, %s3397_s21  ;;  %v3688_v54 = vadd.f32 %v3012_v50, %v1082_v53 }
 0x1e7   : > { %1432 = vrot.lane.b32.xlu0 %v1091_v27, %s3398_s24  ;;  %3161 = vmatpush3.msra.mxu1 %v3688_v54 }
 0x1e8   : > { %3170 = vmatprep.subr.mxu1 %v3392_v22 }
 0x1e9   : > { %1605 = vrot.lane.b32.xlu1 %v991_v26, %s3399_s30 }
 0x1eb   : > { %1603 = vrot.lane.b32.xlu0 %v1091_v27, %s3400_s25 }
 0x1ed   : > { %1780 = vrot.lane.b32.xlu1 %v996_v28, %s3394_s9  ;;  %s3401_s9 = smov 8  }
 0x1ef   : > { %1944 = vrot.lane.b32.xlu0 %v996_v28, %s3396_s23  ;;  %s3403_s23 = smov 24  }
 0x1f1   : > { %1942 = vrot.lane.b32.xlu1 %v1774_v29, %s3395_s19 }
 0x1f3   : > { %2115 = vrot.lane.b32.xlu0 %v996_v28, %s3397_s21 }
 0x1f5   : > { %2113 = vrot.lane.b32.xlu1 %v1774_v29, %s3398_s24 }
 0x1f7   : > { %2285 = vrot.lane.b32.xlu0 %v996_v28, %s3399_s30 }
 0x1f9   : > { %2283 = vrot.lane.b32.xlu1 %v1774_v29, %s3400_s25 }
 0x251   : > { %v1098_v36 = vpop.permute.xlu0 %1097 }
 0x252   : > { %3156 = vmatpush3.xpose.msk.msra.mxu0 %vm1099_vm5, %v1098_v36 }
 0x253   : > { %v1261_v37 = vpop.permute.xlu1 %1260  ;;  %3165 = vmatprep.subr.mxu0 %v3392_v22 }
 0x255   : > { %v1263_v38 = vpop.permute.xlu0 %1262  ;;  %3158 = vmatmul.mubr.msk.f32.vlgmr.msra.gmra.mrb[0].mxu0 %vm1099_vm5, %v1091_v27 }
 0x256   : > { %3166 = vmatpush3.xpose.msk.msra.mxu0 %vm1099_vm5, %v1263_v38  ;;  %3167 = vmatprep.mubr.msk.f32.mxu0 %vm3393_vm4, %v3392_v22 }
 0x257   : > { %v1435_v39 = vpop.permute.xlu1 %1434  ;;  %3175 = vmatprep.subr.mxu0 %v3392_v22 }
 0x259   : > { %v1433_v40 = vpop.permute.xlu0 %1432  ;;  %3168 = vmatmul.mubr.msk.f32.vlgmr.msra.gmra.mrb[2].mxu0 %vm1099_vm5, %v1261_v37 }
 0x25a   : > { %3176 = vmatpush3.xpose.msk.msra.mxu0 %vm1099_vm5, %v1435_v39  ;;  %3177 = vmatprep.mubr.msk.f32.mxu0 %vm3393_vm4, %v3392_v22 }
 0x25b   : > { %v1606_v41 = vpop.permute.xlu1 %1605  ;;  %3185 = vmatprep.subr.mxu0 %v3392_v22 }
 0x25d   : > { %v1604_v42 = vpop.permute.xlu0 %1603  ;;  %3178 = vmatmul.mubr.msk.f32.vlgmr.msra.gmra.mrb[4].mxu0 %vm1099_vm5, %v1433_v40 }
 0x25e   : > { %3186 = vmatpush3.xpose.msk.msra.mxu0 %vm1099_vm5, %v1606_v41  ;;  %3187 = vmatprep.mubr.msk.f32.mxu0 %vm3393_vm4, %v3392_v22 }
 0x25f   : > { %v1781_v43 = vpop.permute.xlu1 %1780  ;;  %3195 = vmatprep.subr.mxu0 %v3392_v22 }
 0x261   : > { %v1945_v44 = vpop.permute.xlu0 %1944  ;;  %3188 = vmatmul.mubr.msk.f32.vlgmr.msra.gmra.mrb[6].mxu0 %vm1099_vm5, %v1604_v42 }
 0x262   : > { %3196 = vmatpush3.xpose.msk.msra.mxu0 %vm1099_vm5, %v1781_v43  ;;  %3197 = vmatprep.mubr.msk.f32.mxu0 %vm3393_vm4, %v3392_v22 }
 0x263   : > { %3205 = vmatprep.subr.mxu0 %v3392_v22  ;;  %v1943_v45 = vpop.permute.xlu1 %1942 }
 0x265   : > { %3198 = vmatmul.mubr.msk.f32.vlgmr.msra.gmra.mrb[8].mxu0 %vm1099_vm5, %v1774_v29  ;;  %v2116_v46 = vpop.permute.xlu0 %2115 }
 0x266   : > { %3206 = vmatpush3.xpose.msk.msra.mxu0 %vm1099_vm5, %v1945_v44  ;;  %3207 = vmatprep.mubr.msk.f32.mxu0 %vm3393_vm4, %v3392_v22 }
 0x267   : > { %3215 = vmatprep.subr.mxu0 %v3392_v22  ;;  %v2114_v47 = vpop.permute.xlu1 %2113 }
 0x269   : > { %3208 = vmatmul.mubr.msk.f32.vlgmr.msra.gmra.mrb[10].mxu0 %vm1099_vm5, %v1943_v45  ;;  %v2286_v48 = vpop.permute.xlu0 %2285 }
 0x26a   : > { %3216 = vmatpush3.xpose.msk.msra.mxu0 %vm1099_vm5, %v2116_v46  ;;  %3217 = vmatprep.mubr.msk.f32.mxu0 %vm3393_vm4, %v3392_v22 }
 0x26b   : > { %3225 = vmatprep.subr.mxu0 %v3392_v22  ;;  %v2284_v49 = vpop.permute.xlu1 %2283 }
 0x26d   : > { %3218 = vmatmul.mubr.msk.f32.vlgmr.msra.gmra.mrb[12].mxu0 %vm1099_vm5, %v2114_v47 }
 0x26e   : > { %3226 = vmatpush3.xpose.msk.msra.mxu0 %vm1099_vm5, %v2286_v48  ;;  %3227 = vmatprep.mubr.msk.f32.mxu0 %vm3393_vm4, %v3392_v22 }
 0x271   : > { %3228 = vmatmul.mubr.msk.f32.vlgmr.msra.gmra.mrb[14].mxu0 %vm1099_vm5, %v2284_v49 }
 0x328   : > { %v1171_v60 = vpop.f32.mrb[0].mxu0 }
 0x329   : > { %v1172_v61 = vadd.f32 %v1171_v60, %v1095_v59  ;;  %v3159_v62 = vpop.f32.mrb[1].mxu0 }
 0x32b   : > { %v1175_v63 = vsel %vm1099_vm5, %v1172_v61, -inf }
 0x32c   : > { %1176 = vmax.xlane.f32.xlu0 %v1175_v63  ;;  %v1334_v0 = vpop.f32.mrb[2].mxu0 }
 0x32d   : > { %v1335_v1 = vadd.f32 %v1334_v0, %v1095_v59  ;;  %v3169_v2 = vpop.f32.mrb[3].mxu0 }
 0x32f   : > { %v1338_v3 = vsel %vm1099_vm5, %v1335_v1, -inf }
 0x330   : > { %1339 = vmax.xlane.f32.xlu1 %v1338_v3  ;;  %v1506_v4 = vpop.f32.mrb[4].mxu0 }
 0x331   : > { %v1507_v5 = vadd.f32 %v1506_v4, %v1095_v59  ;;  %v3179_v6 = vpop.f32.mrb[5].mxu0 }
 0x333   : > { %v1510_v8 = vsel %vm1099_vm5, %v1507_v5, -inf }
 0x334   : > { %1511 = vmax.xlane.f32.xlu0 %v1510_v8  ;;  %v1677_v9 = vpop.f32.mrb[6].mxu0 }
 0x335   : > { %v1678_v10 = vadd.f32 %v1677_v9, %v1095_v59  ;;  %v3189_v11 = vpop.f32.mrb[7].mxu0 }
 0x337   : > { %v1681_v13 = vsel %vm1099_vm5, %v1678_v10, -inf }
 0x338   : > { %1682 = vmax.xlane.f32.xlu0 %v1681_v13  ;;  %v1853_v14 = vpop.f32.mrb[8].mxu0 }
 0x339   : > { %v3699_v16 = vadd.f32 %v1853_v14, %v1778_v12  ;;  %v3199_v17 = vpop.f32.mrb[9].mxu0 }
 0x33b   : > { %v1857_v18 = vsel %vm1099_vm5, %v3699_v16, -inf }
 0x33c   : > { %1858 = vmax.xlane.f32.xlu1 %v1857_v18  ;;  %v2016_v20 = vpop.f32.mrb[10].mxu0 }
 0x33d   : > { %v2017_v21 = vadd.f32 %v2016_v20, %v1778_v12  ;;  %v3209_v23 = vpop.f32.mrb[11].mxu0 }
 0x33f   : > { %v2020_v24 = vsel %vm1099_vm5, %v2017_v21, -inf }
 0x340   : > { %2021 = vmax.xlane.f32.xlu0 %v2020_v24  ;;  %v2187_v25 = vpop.f32.mrb[12].mxu0 }
 0x341   : > { %v2188_v26 = vadd.f32 %v2187_v25, %v1778_v12  ;;  %v3219_v27 = vpop.f32.mrb[13].mxu0 }
 0x343   : > { %v2191_v28 = vsel %vm1099_vm5, %v2188_v26, -inf }
 0x344   : > { %2192 = vmax.xlane.f32.xlu1 %v2191_v28  ;;  %v2357_v29 = vpop.f32.mrb[14].mxu0 }
 0x345   : > { %v2358_v30 = vadd.f32 %v2357_v29, %v1778_v12  ;;  %v3229_v31 = vpop.f32.mrb[15].mxu0 }
 0x347   : > { %v2361_v32 = vsel %vm1099_vm5, %v2358_v30, -inf }
 0x348   : > { %2362 = vmax.xlane.f32.xlu0 %v2361_v32 }
 0x355   : > { %1350 = vrot.lane.b32.xlu1 %v3688_v54, %s3395_s19 }
 0x3b9   : > { %v1177_v33 = vpop.xlane.xlu0 %1176 }
 0x3ba   : > { %v1178_v34 = vsub.f32 %v1172_v61, %v1177_v33 }
 0x3bc   : > { %v1179_v35 = vmul.f32 1.442695, %v1178_v34 }
 0x3bd   : > { %v1340_v36 = vpop.xlane.xlu1 %1339 }
 0x3be   : > { %3344 = vpow2.f32 %v1179_v35  ;;  %v1341_v37 = vsub.f32 %v1335_v1, %v1340_v36 }
 0x3c0   : > { %v1342_v38 = vmul.f32 1.442695, %v1341_v37 }
 0x3c1   : > { %v1512_v43 = vpop.xlane.xlu0 %1511 }
 0x3c2   : > { %3346 = vpow2.f32 %v1342_v38  ;;  %v1513_v44 = vsub.f32 %v1507_v5, %v1512_v43 }
 0x3c4   : > { %v1514_v46 = vmul.f32 1.442695, %v1513_v44 }
 0x3c5   : > { %v1683_v45 = vpop.xlane.xlu0 %1682 }
 0x3c6   : > { %v1684_v47 = vsub.f32 %v1678_v10, %v1683_v45  ;;  %3348 = vpow2.f32 %v1514_v46 }
 0x3c8   : > { %v3345_v39 = vpop.eup %3344  ;;  %v1685_v49 = vmul.f32 1.442695, %v1684_v47 }
 0x3c9   : > { %v1181_v40 = vsel %vm1099_vm5, %v3345_v39, 0.0  ;;  %v1859_v0 = vpop.xlane.xlu1 %1858 }
 0x3ca   : > { %1182 = vadd.xlane.f32.xlu1 %v1181_v40  ;;  %3350 = vpow2.f32 %v1685_v49  ;;  %v1860_v1 = vsub.f32 %v3699_v16, %v1859_v0  ;;  %v2455_v49 = vld [vmem:[%s3536_s18] sm:$0xff] }
 0x3cc   : > { %v3347_v41 = vpop.eup %3346  ;;  %v1861_v3 = vmul.f32 1.442695, %v1860_v1 }
 0x3cd   : > { %v1344_v42 = vsel %vm1099_vm5, %v3347_v41, 0.0  ;;  %v2022_v48 = vpop.xlane.xlu0 %2021 }
 0x3ce   : > { %1345 = vadd.xlane.f32.xlu0 %v1344_v42  ;;  %v2023_v50 = vsub.f32 %v2017_v21, %v2022_v48 }
 0x3d0   : > { %v2024_v53 = vmul.f32 1.442695, %v2023_v50  ;;  %v3349_v57 = vpop.eup %3348  ;;  %v2456_v50 = vld [vmem:[%s3536_s18 + $0x8] sm:$0xff] }
 0x3d1   : > { %v1516_v58 = vsel %vm1099_vm5, %v3349_v57, 0.0  ;;  %v2193_v2 = vpop.xlane.xlu1 %2192 }
 0x3d2   : > { %3352 = vpow2.f32 %v2024_v53  ;;  %v2194_v4 = vsub.f32 %v2188_v26, %v2193_v2 }
 0x3d4   : > { %v3351_v59 = vpop.eup %3350  ;;  %v2195_v5 = vmul.f32 1.442695, %v2194_v4 }
 0x3d5   : > { %v2363_v51 = vpop.xlane.xlu0 %2362  ;;  %v1351_v10 = vpop.permute.xlu1 %1350 }
 0x3d6   : > { %v2364_v55 = vsub.f32 %v2358_v30, %v2363_v51  ;;  %v3292_v51 = vpack.c.bf16 %v2456_v50, %v2455_v49  ;;  %v3043_v50 = vld [vmem:[%s787_s11] ss:$0 sm:$0xff]  ;;  %s3898_s11 = scalar_lea.vmem %s3897_s0, %s3512_s20 }
 0x3d8   : > { %v2365_v56 = vmul.f32 1.442695, %v2364_v55  ;;  %v2457_v55 = vld [vmem:[%s3536_s18 + $0x10] sm:$0xff]  ;;  %3293 = vmatprep.subr.bf16.mxu0 %v3292_v51 }
 0x3d9   : > { %3295 = vmatpush3.bf16.msra.mxu0 %v3292_v51 }
 0x3da   : > { %3354 = vpow2.f32 %v2365_v56  ;;  %v2458_v56 = vld [vmem:[%s3536_s18 + $0x18] sm:$0xff] }
 0x3db   : > { %1692 = vrot.lane.b32.xlu1 %v3688_v54, %s3400_s25  ;;  %3356 = vpow2.f32 %v1861_v3 }
 0x3dc   : > { %v3716_v60 = vpop.eup %3352  ;;  %3358 = vpow2.f32 %v2195_v5 }
 0x3dd   : > { %v2026_v61 = vsel %vm1099_vm5, %v3716_v60, 0.0 }
 0x3e4   : > { %1521 = vrot.lane.b32.xlu0 %v3688_v54, %s3398_s24  ;;  %v1687_v54 = vsel %vm1099_vm5, %v3351_v59, 0.0  ;;  %v3720_v62 = vpop.eup %3354 }
 0x3e5   : > { %v2367_v63 = vsel %vm1099_vm5, %v3720_v62, 0.0  ;;  %v3357_v6 = vpop.eup %3356 }
 0x3e6   : > { %v1863_v7 = vsel %vm1099_vm5, %v3357_v6, 0.0  ;;  %v3359_v8 = vpop.eup %3358 }
 0x3e7   : > { %v2197_v9 = vsel %vm1099_vm5, %v3359_v8, 0.0 }
 0x3ff   : > { %1517 = vadd.xlane.f32.xlu1 %v1516_v58  ;;  %v3296_v58 = vpack.c.bf16 %v2458_v56, %v2457_v55 }
 0x401   : > { %3297 = vmatprep.subr.bf16.mxu0 %v3296_v58 }
 0x402   : > { %3299 = vmatpush3.bf16.msra.mxu0 %v3296_v58 }
 0x403   : > { %1688 = vadd.xlane.f32.xlu0 %v1687_v54 }
 0x407   : > { %2027 = vadd.xlane.f32.xlu0 %v2026_v61 }
 0x40b   : > { %2368 = vadd.xlane.f32.xlu0 %v2367_v63 }
 0x410   : > { %2032 = vrot.lane.b32.xlu1 %v3686_v52, %s3395_s19  ;;  %s3402_s19 = smov 16  }
 0x421   : > { %2202 = vrot.lane.b32.xlu0 %v3686_v52, %s3398_s24  ;;  %s3895_s24 = scalar_lea.vmem %s3852_s10, %s3512_s20 }
 0x434   : > { %1864 = vadd.xlane.f32.xlu1 %v1863_v7 }
 0x438   : > { %2198 = vadd.xlane.f32.xlu1 %v2197_v9 }
 0x449   : > { %2372 = vrot.lane.b32.xlu1 %v3686_v52, %s3400_s25  ;;  %s3896_s25 = scalar_lea.vmem %s3857_s15, %s3512_s20 }
 0x457   : > { %v1183_v11 = vpop.xlane.xlu1 %1182 }
 0x458   : > { %3360 = vrcp.f32 %v1183_v11 }
 0x45b   : > { %v1346_v12 = vpop.xlane.xlu0 %1345  ;;  %v1693_v20 = vpop.permute.xlu1 %1692 }
 0x45c   : > { %3362 = vrcp.f32 %v1346_v12 }
 0x45f   : > { %v1522_v18 = vpop.permute.xlu0 %1521 }
 0x462   : > { %v3361_v13 = vpop.eup %3360 }
 0x463   : > { %v1185_v14 = vmul.f32 %v3361_v13, %v3345_v39 }
 0x465   : > { %3163 = vmatmul.mubr.msk.f32.vlgmr.msra.gmra.mrb[4].mxu1 %vm1099_vm5, %v1185_v14 }
 0x466   : > { %v3363_v16 = vpop.eup %3362  ;;  %3171 = vmatpush3.msra.mxu1 %v1351_v10  ;;  %3172 = vmatprep.mubr.msk.f32.mxu1 %vm3393_vm4, %v3392_v22 }
 0x467   : > { %v1348_v17 = vmul.f32 %v3363_v16, %v3347_v41  ;;  %3180 = vmatprep.subr.mxu1 %v3392_v22 }
 0x469   : > { %3173 = vmatmul.mubr.msk.f32.vlgmr.msra.gmra.mrb[6].mxu1 %vm1099_vm5, %v1348_v17 }
 0x46a   : > { %3181 = vmatpush3.msra.mxu1 %v1522_v18  ;;  %3182 = vmatprep.mubr.msk.f32.mxu1 %vm3393_vm4, %v3392_v22 }
 0x46b   : > { %3190 = vmatprep.subr.mxu1 %v3392_v22 }
 0x48c   : > { %v1518_v21 = vpop.xlane.xlu1 %1517 }
 0x48d   : > { %3364 = vrcp.f32 %v1518_v21 }
 0x490   : > { %v1689_v23 = vpop.xlane.xlu0 %1688  ;;  %v2033_v28 = vpop.permute.xlu1 %2032 }
 0x491   : > { %3366 = vrcp.f32 %v1689_v23 }
 0x494   : > { %v2028_v29 = vpop.xlane.xlu0 %2027 }
 0x497   : > { %v3365_v24 = vpop.eup %3364 }
 0x498   : > { %v1520_v25 = vmul.f32 %v3365_v24, %v3349_v57  ;;  %v2369_v32 = vpop.xlane.xlu0 %2368 }
 0x49a   : > { %3183 = vmatmul.mubr.msk.f32.vlgmr.msra.gmra.mrb[8].mxu1 %vm1099_vm5, %v1520_v25 }
 0x49b   : > { %v3367_v26 = vpop.eup %3366  ;;  %3191 = vmatpush3.msra.mxu1 %v1693_v20  ;;  %3192 = vmatprep.mubr.msk.f32.mxu1 %vm3393_vm4, %v3392_v22 }
 0x49c   : > { %v1691_v27 = vmul.f32 %v3367_v26, %v3351_v59  ;;  %3200 = vmatprep.subr.mxu1 %v3392_v22  ;;  %v2203_v37 = vpop.permute.xlu0 %2202 }
 0x49e   : > { %3193 = vmatmul.mubr.msk.f32.vlgmr.msra.gmra.mrb[10].mxu1 %vm1099_vm5, %v1691_v27 }
 0x49f   : > { %3201 = vmatpush3.msra.mxu1 %v3686_v52  ;;  %3202 = vmatprep.mubr.msk.f32.mxu1 %vm3393_vm4, %v3392_v22 }
 0x4a0   : > { %3210 = vmatprep.subr.mxu1 %v3392_v22 }
 0x4c1   : > { %v1865_v30 = vpop.xlane.xlu1 %1864 }
 0x4c2   : > { %3368 = vrcp.f32 %v1865_v30 }
 0x4c3   : > { %3370 = vrcp.f32 %v2028_v29  ;;  %v2595_v29 = vld [vmem:[%s3545_s5 + $0x8] sm:$0xff] }
 0x4c5   : > { %v2199_v31 = vpop.xlane.xlu1 %2198 }
 0x4c6   : > { %3372 = vrcp.f32 %v2199_v31  ;;  %v2596_v31 = vld [vmem:[%s3545_s5 + $0x10] sm:$0xff] }
 0x4c7   : > { %3374 = vrcp.f32 %v2369_v32  ;;  %v2597_v32 = vld [vmem:[%s3545_s5 + $0x18] sm:$0xff] }
 0x4c9   : > { %v2373_v40 = vpop.permute.xlu1 %2372 }
 0x4cc   : > { %v3369_v33 = vpop.eup %3368 }
 0x4cd   : > { %v1867_v34 = vmul.f32 %v3369_v33, %v3357_v6  ;;  %v3371_v35 = vpop.eup %3370  ;;  %v3304_v33 = vpack.c.bf16 %v2597_v32, %v2596_v31  ;;  %v3050_v31 = vld [vmem:[%s790_s7] ss:$0 sm:$0xff] }
 0x4ce   : > { %v2030_v52 = vmul.f32 %v3371_v35, %v3716_v60  ;;  %v2689_v35 = vld [vmem:[%s3555_s4 + $0x8] sm:$0xff] }
 0x4cf   : > { %3203 = vmatmul.mubr.msk.f32.vlgmr.msra.gmra.mrb[12].mxu1 %vm1099_vm5, %v1867_v34  ;;  %v2688_v34 = vld [vmem:[%s3555_s4] sm:$0xff] }
 0x4d0   : > { %3211 = vmatpush3.msra.mxu1 %v2033_v28  ;;  %3212 = vmatprep.mubr.msk.f32.mxu1 %vm3393_vm4, %v3392_v22  ;;  %v3373_v36 = vpop.eup %3372  ;;  %v2594_v28 = vld [vmem:[%s3545_s5] sm:$0xff] }
 0x4d1   : > { %3220 = vmatprep.subr.mxu1 %v3392_v22  ;;  %v2201_v38 = vmul.f32 %v3373_v36, %v3359_v8  ;;  %v3375_v39 = vpop.eup %3374  ;;  %v3039_v8 = vld [vmem:[%s3895_s24] ss:$0 sm:$0xff]  ;;  %v3300_v30 = vpack.c.bf16 %v2595_v29, %v2594_v28  ;;  %v3308_v36 = vpack.c.bf16 %v2689_v35, %v2688_v34 }
 0x4d2   : > { %v2371_v41 = vmul.f32 %v3375_v39, %v3720_v62  ;;  %v2692_v39 = vld [vmem:[%s3555_s4 + $0x20] sm:$0xff] }
 0x4d3   : > { %3213 = vmatmul.mubr.msk.f32.vlgmr.msra.gmra.mrb[14].mxu1 %vm1099_vm5, %v2030_v52  ;;  %v2690_v52 = vld [vmem:[%s3555_s4 + $0x10] sm:$0xff]  ;;  %3309 = vmatprep.subr.bf16.mxu0 %v3308_v36  ;;  %v3051_v34 = vld [vmem:[%s793_s29] ss:$0 sm:$0xff] }
 0x4d4   : > { %3221 = vmatpush3.msra.mxu1 %v2203_v37  ;;  %3222 = vmatprep.mubr.msk.f32.mxu1 %vm3393_vm4, %v3392_v22  ;;  %v2691_v37 = vld [vmem:[%s3555_s4 + $0x18] sm:$0xff] }
 0x4d5   : > { %3230 = vmatprep.subr.mxu1 %v3392_v22 }
 0x4d7   : > { %3223 = vmatmul.mubr.msk.f32.vlgmr.msra.gmra.mrb[16].mxu1 %vm1099_vm5, %v2201_v38  ;;  %v3312_v38 = vpack.c.bf16 %v2691_v37, %v2690_v52 }
 0x4d8   : > { %3231 = vmatpush3.msra.mxu1 %v2373_v40  ;;  %3232 = vmatprep.mubr.msk.f32.mxu1 %vm3393_vm4, %v3392_v22  ;;  %v2693_v40 = vld [vmem:[%s3555_s4 + $0x28] sm:$0xff] }
 0x4d9   : > { %3301 = vmatprep.subr.bf16.mxu1 %v3300_v30 }
 0x4db   : > { %3233 = vmatmul.mubr.msk.f32.vlgmr.msra.gmra.mrb[18].mxu1 %vm1099_vm5, %v2371_v41  ;;  %v3316_v41 = vpack.c.bf16 %v2693_v40, %v2692_v39 }
 0x4dc   : > { %3303 = vmatpush3.bf16.msra.mxu1 %v3300_v30 }
 0x4dd   : > { %3305 = vmatprep.subr.bf16.mxu1 %v3304_v33 }
 0x4e0   : > { %3307 = vmatpush3.bf16.msra.mxu1 %v3304_v33 }
 0x538   : > { %v1255_v42 = vpop.f32.mrb[4].mxu1 }
 0x539   : > { %1259 = vst.msk [vmem:[#allocation2] sm:$0xff] %vm1099_vm5, %v1255_v42  ;;  %v3164_v43 = vpop.f32.mrb[5].mxu1 }
 0x53c   : > { %v1422_v44 = vpop.f32.mrb[6].mxu1 }
 0x53d   : > { %1427 = vrot.lane.b32.xlu0 %v1422_v44, %s3401_s9  ;;  %v3174_v45 = vpop.f32.mrb[7].mxu1 }
 0x56d   : > { %v1593_v46 = vpop.f32.mrb[8].mxu1 }
 0x56e   : > { %1598 = vrot.lane.b32.xlu1 %v1593_v46, %s3402_s19  ;;  %v3184_v22 = vpop.f32.mrb[9].mxu1 }
 0x571   : > { %v1764_v47 = vpop.f32.mrb[10].mxu1 }
 0x572   : > { %1769 = vrot.lane.b32.xlu1 %v1764_v47, %s3403_s23  ;;  %v3194_v48 = vpop.f32.mrb[11].mxu1 }
 0x573   : > { %v3042_v48 = vld [vmem:[%s3896_s25] ss:$0 sm:$0xff] }
 0x5a2   : > { %v1937_v53 = vpop.f32.mrb[12].mxu1 }
 0x5a3   : > { %1941 = vst.msk [vmem:[#allocation2 + $0x8] sm:$0xff] %vm1099_vm5, %v1937_v53  ;;  %v3204_v57 = vpop.f32.mrb[13].mxu1 }
 0x5a6   : > { %v2104_v59 = vpop.f32.mrb[14].mxu1 }
 0x5a7   : > { %2109 = vrot.lane.b32.xlu0 %v2104_v59, %s3401_s9  ;;  %v3214_v54 = vpop.f32.mrb[15].mxu1  ;;  %v2694_v59 = vld [vmem:[%s3555_s4 + $0x30] sm:$0xff] }
 0x5a8   : > { %v2695_v54 = vld [vmem:[%s3555_s4 + $0x38] sm:$0xff]  ;;  %s3899_s4 = scalar_lea.vmem %s3856_s14, %s3512_s20 }
 0x5aa   : > { %v2274_v60 = vpop.f32.mrb[16].mxu1 }
 0x5ab   : > { %2279 = vrot.lane.b32.xlu0 %v2274_v60, %s3402_s19  ;;  %v3224_v61 = vpop.f32.mrb[17].mxu1  ;;  %v3320_v60 = vpack.c.bf16 %v2695_v54, %v2694_v59 }
 0x5ac   : > { %v3044_v61 = vld [vmem:[%s3898_s11] ss:$0 sm:$0xff] }
 0x5ae   : > { %v2444_v62 = vpop.f32.mrb[18].mxu1 }
 0x5af   : > { %2449 = vrot.lane.b32.xlu1 %v2444_v62, %s3403_s23  ;;  %v3234_v63 = vpop.f32.mrb[19].mxu1  ;;  %v1428_v0 = vpop.permute.xlu0 %1427 }
 0x5b0   : > { %1431 = vst.msk [vmem:[#allocation2] sm:$0xff] %vm1430_vm6, %v1428_v0 }
 0x5e0   : > { %v1599_v1 = vpop.permute.xlu1 %1598 }
 0x5e1   : > { %1602 = vst.msk [vmem:[#allocation2] sm:$0xff] %vm1601_vm7, %v1599_v1 }
 0x5e4   : > { %v1770_v2 = vpop.permute.xlu1 %1769 }
 0x5e5   : > { %1773 = vst.msk [vmem:[#allocation2] sm:$0xff] %vm1772_vm8, %v1770_v2 }
 0x5ec   : > { %v2453_v3 = vld [vmem:[#allocation2] sm:$0xff] }
 0x5ed   : > { %3243 = vmatprep.mubr.msk.f32.mxu0 %vm917_vm3, %v2453_v3 }
 0x619   : > { %v2110_v4 = vpop.permute.xlu0 %2109 }
 0x61a   : > { %2112 = vst.msk [vmem:[#allocation2 + $0x8] sm:$0xff] %vm1430_vm6, %v2110_v4  ;;  %v3047_v4 = vld [vmem:[%s3899_s4] ss:$0 sm:$0xff] }
 0x61d   : > { %v2280_v5 = vpop.permute.xlu0 %2279 }
 0x61e   : > { %2282 = vst.msk [vmem:[#allocation2 + $0x8] sm:$0xff] %vm1601_vm7, %v2280_v5 }
 0x621   : > { %v2450_v6 = vpop.permute.xlu1 %2449 }
 0x622   : > { %2452 = vst.msk [vmem:[#allocation2 + $0x8] sm:$0xff] %vm1772_vm8, %v2450_v6 }
 0x629   : > { %v2454_v7 = vld [vmem:[#allocation2 + $0x8] sm:$0xff] }
 0x62a   : > { %3244 = vmatmul.mubr.msk.f32.vlgmr.msra.gmra.mrb[16].mxu0 %vm917_vm3, %v2454_v7 }
 0x62b   : > { %3311 = vmatpush3.bf16.msra.mxu0 %v3308_v36 }
 0x62c   : > { %3313 = vmatprep.subr.bf16.mxu0 %v3312_v38 }
 0x62f   : > { %3315 = vmatpush3.bf16.msra.mxu0 %v3312_v38 }
 0x630   : > { %3317 = vmatprep.subr.bf16.mxu0 %v3316_v41 }
 0x633   : > { %3319 = vmatpush3.bf16.msra.mxu0 %v3316_v41 }
 0x634   : > { %3321 = vmatprep.subr.bf16.mxu0 %v3320_v60 }
 0x637   : > { %3323 = vmatpush3.bf16.msra.mxu0 %v3320_v60 }
 0x6fd   : > { %v3245_v9 = vpop.f32.mrb[16].mxu0 }
 0x6fe   : > { %v2544_v10 = vadd.f32 %v3245_v9, %v3039_v8  ;;  %v2538_v11 = vpop.f32.mrb[17].mxu0 }
 0x6ff   : > { %v2539_v12 = vadd.f32 %v3039_v8, %v2538_v11 }
 0x700   : > { %v2548_v13 = vadd.f32 %v2544_v10, %v3612_v19 }
 0x701   : > { %v2547_v14 = vadd.f32 %v2539_v12, %v3602_v15 }
 0x702   : > { %v2554_v16 = vsel %vm917_vm3, %v2548_v13, 0.0 }
 0x703   : > { %2555 = vadd.xlane.f32.xlu1 %v2554_v16  ;;  %v2551_v17 = vsel %vm917_vm3, %v2547_v14, 0.0 }
 0x704   : > { %2552 = vadd.xlane.f32.xlu0 %v2551_v17 }
 0x790   : > { %v2556_v18 = vpop.xlane.xlu1 %2555 }
 0x791   : > { %v2559_v20 = vmul.f32 0.03125, %v2556_v18  ;;  %v2553_v21 = vpop.xlane.xlu0 %2552 }
 0x792   : > { %v2558_v23 = vmul.f32 0.03125, %v2553_v21 }
 0x793   : > { %v2561_v24 = vsub.f32 %v2548_v13, %v2559_v20 }
 0x794   : > { %v2560_v25 = vsub.f32 %v2547_v14, %v2558_v23 }
 0x795   : > { %v2563_v19 = vmul.f32 %v2561_v24, %v2561_v24 }
 0x796   : > { %v2562_v26 = vmul.f32 %v2560_v25, %v2560_v25 }
 0x797   : > { %v2567_v27 = vsel %vm917_vm3, %v2563_v19, 0.0 }
 0x798   : > { %v2564_v15 = vsel %vm917_vm3, %v2562_v26, 0.0 }
 0x799   : > { %2565 = vadd.xlane.f32.xlu0 %v2564_v15 }
 0x79d   : > { %2568 = vadd.xlane.f32.xlu0 %v2567_v27 }
 0x826   : > { %v2566_v42 = vpop.xlane.xlu0 %2565 }
 0x827   : > { %v2570_v43 = vmul.f32 0.03125, %v2566_v42 }
 0x829   : > { %v2572_v44 = vadd.f32 1e-05, %v2570_v43 }
 0x82a   : > { %v2569_v45 = vpop.xlane.xlu0 %2568 }
 0x82b   : > { %3376 = vrsqrt.f32 %v2572_v44  ;;  %v2571_v46 = vmul.f32 0.03125, %v2569_v45 }
 0x82d   : > { %v2573_v22 = vadd.f32 1e-05, %v2571_v46 }
 0x82f   : > { %3378 = vrsqrt.f32 %v2573_v22 }
 0x835   : > { %v3377_v47 = vpop.eup %3376 }
 0x836   : > { %v2576_v49 = vmul.f32 %v3377_v47, %v2560_v25 }
 0x838   : > { %v2584_v51 = vmul.f32 %v3042_v48, %v2576_v49 }
 0x839   : > { %v3379_v53 = vpop.eup %3378 }
 0x83a   : > { %v2577_v55 = vmul.f32 %v3379_v53, %v2561_v24  ;;  %v2592_v56 = vadd.f32 %v3043_v50, %v2584_v51 }
 0x83c   : > { %v2585_v57 = vmul.f32 %v3042_v48, %v2577_v55  ;;  %3254 = vmatprep.mubr.msk.f32.mxu1 %vm917_vm3, %v2592_v56 }
 0x83e   : > { %v2593_v58 = vadd.f32 %v3043_v50, %v2585_v57 }
 0x840   : > { %3255 = vmatmul.mubr.msk.f32.vlgmr.msra.gmra.mrb[20].mxu1 %vm917_vm3, %v2593_v58 }
 0x913   : > { %v3256_v62 = vpop.f32.mrb[20].mxu1 }
 0x914   : > { %v2683_v63 = vadd.f32 %v3256_v62, %v3044_v61  ;;  %v2677_v0 = vpop.f32.mrb[21].mxu1 }
 0x915   : > { %v2678_v1 = vadd.f32 %v3044_v61, %v2677_v0 }
 0x916   : > { %v2687_v3 = vmax.f32 %v2683_v63, 0.0 }
 0x917   : > { %v2686_v2 = vmax.f32 %v2678_v1, 0.0 }
 0x919   : > { %3273 = vmatprep.mubr.msk.f32.mxu0 %vm2703_vm9, %v2686_v2 }
 0x91a   : > { %3274 = vmatmul.mubr.msk.f32.vlgmr.msra.gmra.mrb[18].mxu0 %vm2703_vm9, %v2687_v3 }
 0x9ed   : > { %v3275_v5 = vpop.f32.mrb[18].mxu0 }
 0x9ee   : > { %v2782_v6 = vadd.f32 %v3275_v5, %v3047_v4  ;;  %v2776_v7 = vpop.f32.mrb[19].mxu0 }
 0x9ef   : > { %v2777_v8 = vadd.f32 %v3047_v4, %v2776_v7 }
 0x9f0   : > { %v2786_v9 = vadd.f32 %v2782_v6, %v2593_v58 }
 0x9f1   : > { %v2785_v10 = vadd.f32 %v2777_v8, %v2592_v56 }
 0x9f2   : > { %v2792_v11 = vsel %vm917_vm3, %v2786_v9, 0.0 }
 0x9f3   : > { %2793 = vadd.xlane.f32.xlu0 %v2792_v11  ;;  %v2789_v12 = vsel %vm917_vm3, %v2785_v10, 0.0 }
 0x9f4   : > { %2790 = vadd.xlane.f32.xlu1 %v2789_v12 }
 0xa80   : > { %v2794_v13 = vpop.xlane.xlu0 %2793 }
 0xa81   : > { %v2796_v14 = vmul.f32 0.03125, %v2794_v13  ;;  %v2791_v16 = vpop.xlane.xlu1 %2790 }
 0xa82   : > { %v2795_v17 = vmul.f32 0.03125, %v2791_v16 }
 0xa83   : > { %v2798_v18 = vsub.f32 %v2786_v9, %v2796_v14 }
 0xa84   : > { %v2797_v20 = vsub.f32 %v2785_v10, %v2795_v17 }
 0xa85   : > { %v2800_v21 = vmul.f32 %v2798_v18, %v2798_v18 }
 0xa86   : > { %v2799_v23 = vmul.f32 %v2797_v20, %v2797_v20 }
 0xa87   : > { %v2804_v24 = vsel %vm917_vm3, %v2800_v21, 0.0 }
 0xa88   : > { %2805 = vadd.xlane.f32.xlu0 %v2804_v24  ;;  %v2801_v25 = vsel %vm917_vm3, %v2799_v23, 0.0 }
 0xa89   : > { %2802 = vadd.xlane.f32.xlu1 %v2801_v25 }
 0xb15   : > { %v2806_v26 = vpop.xlane.xlu0 %2805 }
 0xb16   : > { %v2808_v15 = vmul.f32 0.03125, %v2806_v26  ;;  %v2803_v19 = vpop.xlane.xlu1 %2802 }
 0xb17   : > { %v2807_v27 = vmul.f32 0.03125, %v2803_v19 }
 0xb18   : > { %v2810_v28 = vadd.f32 1e-05, %v2808_v15 }
 0xb19   : > { %v2809_v29 = vadd.f32 1e-05, %v2807_v27 }
 0xb1a   : > { %3380 = vrsqrt.f32 %v2810_v28 }
 0xb1b   : > { %3382 = vrsqrt.f32 %v2809_v29 }
 0xb24   : > { %v3381_v30 = vpop.eup %3380 }
 0xb25   : > { %v3383_v32 = vpop.eup %3382  ;;  %v2814_v33 = vmul.f32 %v3381_v30, %v2798_v18 }
 0xb26   : > { %v2813_v35 = vmul.f32 %v3383_v32, %v2797_v20 }
 0xb27   : > { %v2822_v52 = vmul.f32 %v3050_v31, %v2814_v33 }
 0xb28   : > { %v2821_v36 = vmul.f32 %v3050_v31, %v2813_v35 }
 0xb29   : > { %v2830_v37 = vadd.f32 %v3051_v34, %v2822_v52 }
 0xb2a   : > { %v2829_v38 = vadd.f32 %v3051_v34, %v2821_v36 }
 0xb2b   : > { %2832 = vst.msk [vmem:[%s3890_s22 + $0x8] sm:$0xff] %vm917_vm3, %v2830_v37 }
 0xb2c   : > { %2831 = vst.msk [vmem:[%s3890_s22] sm:$0xff] %vm917_vm3, %v2829_v38 }
 0xb2d PF: > { %s3901_s27 = sld [smem:[#allocation3_spill]] }
 0xb33   : > { %s29_s0 = sadd.s32 1, %s3901_s27  }
 0xb34   : > { %p26_p5 = scmp.ge.s32.totalorder %s29_s0, 4  }
 0xb36   :  { %28 = sbr.rel (!%p26_p5) target bundleno = 13 (0xd), region = 165 }

// kernel: _lambda_.4
= control target key start
LH: loop header
LB: loop body
LE: loop exit
PB: predicated region body
PF: predicated region fallthrough
CT: control target
= control target key end

     0   :  { %s5901_s6 = smov 1   ;;  %s5902_s10 = smov 2   ;;  %s6649_s0 = inlined_call_operand.smem [shape: u32[30], index: -1, kind: input, shape index: {}] }
   0x1   :  { %s5952_s5 = sld [smem:[%s6649_s0]]   ;;  %s5903_s14 = smov 3  }
   0x2   :  { %s5957_s9 = sld [smem:[%s6649_s0 + %s5901_s6]]   ;;  %s5904_s18 = smov 4  }
   0x3   :  { %s5962_s13 = sld [smem:[%s6649_s0 + %s5902_s10]]   ;;  %s5905_s22 = smov 5  }
   0x4   :  { %s5967_s17 = sld [smem:[%s6649_s0 + %s5903_s14]]   ;;  %s5906_s26 = smov 6  }
   0x5   :  { %s5972_s21 = sld [smem:[%s6649_s0 + %s5904_s18]]   ;;  %s5907_s30 = smov 7  }
   0x6   :  { %s5977_s25 = sld [smem:[%s6649_s0 + %s5905_s22]]   ;;  %s5908_s4 = smov 8  }
   0x7   :  { %6661 = sst [smem:[#allocation3_spill]] %s5952_s5  ;;  %s5909_s10 = smov 9  }
   0x8   :  { %6662 = sst [smem:[#allocation4_spill]] %s5957_s9  ;;  %s5910_s15 = smov 10  }
   0x9   :  { %6663 = sst [smem:[#allocation5_spill]] %s5962_s13  ;;  %s5911_s20 = smov 11  }
   0xa   :  { %6664 = sst [smem:[#allocation6_spill]] %s5967_s17  ;;  %s5913_s1 = smov 13  }
   0xb   :  { %6665 = sst [smem:[#allocation7_spill]] %s5972_s21  ;;  %s5914_s7 = smov 14  }
   0xc   :  { %6666 = sst [smem:[#allocation8_spill]] %s5977_s25  ;;  %s5916_s22 = smov 16  }
   0xd   :  { %s5982_s29 = sld [smem:[%s6649_s0 + %s5906_s26]]   ;;  %s5912_s26 = smov 12  }
   0xe   :  { %s5987_s3 = sld [smem:[%s6649_s0 + %s5907_s30]]   ;;  %s5917_s28 = smov 17  }
   0xf   :  { %s5992_s8 = sld [smem:[%s6649_s0 + %s5908_s4]]  }
  0x10   :  { %s5997_s14 = sld [smem:[%s6649_s0 + %s5909_s10]]  }
  0x11   :  { %s6002_s19 = sld [smem:[%s6649_s0 + %s5910_s15]]   ;;  %s5915_s15 = smov 15  }
  0x12   :  { %s6007_s24 = sld [smem:[%s6649_s0 + %s5911_s20]]  }
  0x13   :  { %6667 = sst [smem:[#allocation9_spill]] %s5982_s29 }
  0x14   :  { %6668 = sst [smem:[#allocation10_spill]] %s5987_s3 }
  0x15   :  { %6669 = sst [smem:[#allocation11_spill]] %s5992_s8 }
  0x16   :  { %6670 = sst [smem:[#allocation12_spill]] %s5997_s14 }
  0x17   :  { %6671 = sst [smem:[#allocation13_spill]] %s6002_s19 }
  0x18   :  { %6672 = sst [smem:[#allocation14_spill]] %s6007_s24 }
  0x19   :  { %s6012_s30 = sld [smem:[%s6649_s0 + %s5912_s26]]  }
  0x1a   :  { %s6017_s6 = sld [smem:[%s6649_s0 + %s5913_s1]]  }
  0x1b   :  { %s6022_s12 = sld [smem:[%s6649_s0 + %s5914_s7]]   ;;  %s5918_s7 = smov 18  }
  0x1c   :  { %s6027_s20 = sld [smem:[%s6649_s0 + %s5915_s15]]   ;;  %s5919_s15 = smov 19  }
  0x1d   :  { %s6032_s27 = sld [smem:[%s6649_s0 + %s5916_s22]]   ;;  %s5920_s22 = smov 20  }
  0x1e   :  { %s6037_s4 = sld [smem:[%s6649_s0 + %s5917_s28]]   ;;  %s5921_s28 = smov 21  }
  0x1f   :  { %6673 = sst [smem:[#allocation15_spill]] %s6012_s30 }
  0x20   :  { %6674 = sst [smem:[#allocation16_spill]] %s6017_s6 }
  0x21   :  { %6675 = sst [smem:[#allocation17_spill]] %s6022_s12 }
  0x22   :  { %6676 = sst [smem:[#allocation18_spill]] %s6027_s20 }
  0x23   :  { %s6042_s17 = sld [smem:[%s6649_s0 + %s5918_s7]]   ;;  %s5922_s7 = smov 22  }
  0x24   :  { %s6047_s9 = sld [smem:[%s6649_s0 + %s5919_s15]]   ;;  %s5923_s15 = smov 23  }
  0x25   :  { %s6052_s5 = sld [smem:[%s6649_s0 + %s5920_s22]]   ;;  %s5924_s22 = smov 24  }
  0x26   :  { %s6057_s13 = sld [smem:[%s6649_s0 + %s5921_s28]]   ;;  %s5925_s28 = smov 25  }
  0x29   :  { %6677 = sst [smem:[#allocation19_spill]] %s6042_s17 }
  0x2a   :  { %6678 = sst [smem:[#allocation20_spill]] %s6047_s9 }
  0x2b   :  { %6679 = sst [smem:[#allocation21_spill]] %s6052_s5 }
  0x2c   :  { %6680 = sst [smem:[#allocation22_spill]] %s6057_s13 }
  0x2d   :  { %s6062_s17 = sld [smem:[%s6649_s0 + %s5922_s7]]   ;;  %s5926_s7 = smov 26  }
  0x2e   :  { %s6067_s9 = sld [smem:[%s6649_s0 + %s5923_s15]]   ;;  %s5927_s15 = smov 27  }
  0x2f   :  { %s6072_s5 = sld [smem:[%s6649_s0 + %s5924_s22]]   ;;  %s5928_s22 = smov 28  }
  0x30   :  { %s6077_s13 = sld [smem:[%s6649_s0 + %s5925_s28]]   ;;  %s5929_s28 = smov 29  }
  0x33   :  { %6681 = sst [smem:[#allocation23_spill]] %s6062_s17 }
  0x34   :  { %6682 = sst [smem:[#allocation24_spill]] %s6067_s9 }
  0x35   :  { %6683 = sst [smem:[#allocation25_spill]] %s6072_s5 }
  0x36   :  { %6684 = sst [smem:[#allocation26_spill]] %s6077_s13 }
  0x37   :  { %s6082_s17 = sld [smem:[%s6649_s0 + %s5926_s7]]   ;;  %s6099_s7 = smov 0  }
  0x38   :  { %s6087_s9 = sld [smem:[%s6649_s0 + %s5927_s15]]  }
  0x39   :  { %s6092_s5 = sld [smem:[%s6649_s0 + %s5928_s22]]  }
  0x3a   :  { %s6097_s13 = sld [smem:[%s6649_s0 + %s5929_s28]]  }
  0x3e   :  { %6685 = sst [smem:[#allocation27_spill]] %s6087_s9 }
  0x3f   :  { %6686 = sst [smem:[#allocation28_spill]] %s6092_s5 }
  0x40   :  { %6687 = sst [smem:[#allocation29_spill]] %s6097_s13 }
  0x41 LB: > { %6688 = sst [smem:[#allocation30_spill]] %s5899_s7  ;;  %s6105_s10 = sadd.s32 4294967295, %s5899_s7   ;;  %s5899_s7 = sphi %s6099_s7, %s70_s7  }
  0x42   : > { %6689 = sst [smem:[#allocation31_spill]] %s6105_s10  ;;  %p5212_p0 = scmp.ge.s32.totalorder %s5899_s7, 1 }
  0x43   : > { %p1015_p1 = scmp.lt.s32.totalorder %s5899_s7, 3 }
  0x45   : > { %p1016_p2 = pnand %p5212_p0, %p1015_p1 }
  0x47   : > { %1019 = sbr.rel (%p1016_p2) target bundleno = 4513 (0x11a1), region = 132 }
  0x4e   : > { %s6691_s21 = sld [smem:[#allocation7_spill]]  ;;  %s6692_s29 = sld [smem:[#allocation9_spill]] }
  0x4f   : > { %s6694_s8 = sld [smem:[#allocation11_spill]]  ;;  %s6696_s19 = sld [smem:[#allocation13_spill]] }
  0x50   : > { %s6698_s30 = sld [smem:[#allocation15_spill]]  ;;  %s6700_s12 = sld [smem:[#allocation17_spill]] }
  0x51   : > { %p1175_p3 = scmp.lt.s32.totalorder %s6105_s10, 1  ;;  %s6702_s11 = sld [smem:[#allocation19_spill]] }
  0x52   : > { %s6703_s16 = sld [smem:[#allocation20_spill]]  ;;  %s6705_s23 = sld [smem:[#allocation21_spill]] }
  0x53   : > { %s6111_s0 = scalar_select %p1175_p3, %s6105_s10, 1 }
  0x54   : > { %s6707_s28 = sld [smem:[#allocation22_spill]]  ;;  %s6708_s2 = sld [smem:[#allocation23_spill]] }
  0x55   : > { %s5317_s15 = sshll.u32 %s6111_s0, 5  ;;  %s6710_s5 = sld [smem:[#allocation24_spill]] }
  0x56   : > { %s6117_s22 = scalar_lea.vmem %s6691_s21, %s5317_s15  ;;  %s6120_s26 = scalar_lea.vmem %s6692_s29, %s5317_s15 }
  0x57   : > { %6704 = sst [smem:[#allocation32_spill]] %s6117_s22  ;;  %s6125_s7 = scalar_lea.vmem %s6694_s8, %s5317_s15 }
  0x58   : > { %6706 = sst [smem:[#allocation33_spill]] %s6120_s26  ;;  %s6130_s9 = scalar_lea.vmem %s6696_s19, %s5317_s15 }
  0x59   : > { %6709 = sst [smem:[#allocation34_spill]] %s6125_s7  ;;  %s6711_s13 = sld [smem:[#allocation25_spill]] }
  0x5a   : > { %6712 = sst [smem:[#allocation35_spill]] %s6130_s9  ;;  %s6713_s18 = sld [smem:[#allocation26_spill]] }
  0x5b   : > { %s6135_s29 = scalar_lea.vmem %s6698_s30, %s5317_s15  ;;  %s6715_s1 = sld [smem:[#allocation27_spill]] }
  0x5c   : > { %6714 = sst [smem:[#allocation36_spill]] %s6135_s29  ;;  %s6140_s8 = scalar_lea.vmem %s6700_s12, %s5317_s15 }
  0x5d   : > { %6716 = sst [smem:[#allocation37_spill]] %s6140_s8  ;;  %s6145_s10 = scalar_lea.vmem %s6032_s27, %s5317_s15 }
  0x5e   : > { %s6717_s7 = sld [smem:[#allocation29_spill]]  ;;  %s1230_s14 = scalar_lea.vmem %s6037_s4, %s6111_s0 }
  0x5f   : > { %s6150_s19 = scalar_lea.vmem %s6702_s11, %s5317_s15  ;;  %s1238_s9 = scalar_lea.vmem %s6703_s16, %s6111_s0 }
  0x60   : > { %s5325_s25 = sshll.u32 %s6111_s0, 6  ;;  %s1246_s24 = scalar_lea.vmem %s6707_s28, %s6111_s0 }
  0x61   : > { %s6156_s21 = scalar_lea.vmem %s6705_s23, %s5325_s25  ;;  %s1249_s30 = scalar_lea.vmem %s6708_s2, %s6111_s0 }
  0x62   : > { %s1252_s29 = scalar_lea.vmem %s6710_s5, %s6111_s0  ;;  %s1255_s22 = scalar_lea.vmem %s6711_s13, %s6111_s0 }
  0x63   : > { %s1258_s3 = scalar_lea.vmem %s6713_s18, %s6111_s0  ;;  %s1261_s6 = scalar_lea.vmem %s6082_s17, %s6111_s0 }
  0x64   : > { %s1264_s12 = scalar_lea.vmem %s6715_s1, %s6111_s0  ;;  %s5231_s8 = sshll.u32 %s6111_s0, 3 }
  0x65   : > { %s6174_s20 = scalar_lea.vmem %s6717_s7, %s5231_s8  ;;  %s6718_s26 = sld [smem:[#allocation31_spill]] }
  0x6b   : > { %p5232_p4 = scmp.ne.s32.totalorder %s6718_s26, 0 }
  0x6c   : > { %vm1273_vm0 = vcmask (!%p5232_p4), 261120   ;;  %s6719_s11 = sld [smem:[#allocation28_spill]] (!%p5232_p4)  ;;  %v5930_v0 = vmov (!%p5232_p4), 0.0  }
  0x6d   : > { %1272 = sbr.rel (%p5232_p4) target bundleno = 116 (0x74), region = 136 }
  0x72   : > { %1274 = vst.msk [vmem:[%s6719_s11] sm:$0xff] (!%p5232_p4), %vm1273_vm0, %v5930_v0 }
  0x74 PF: > { %s6720_s25 = sld [smem:[#allocation32_spill]]  ;;  %s6721_s5 = sld [smem:[#allocation28_spill]]  ;;  %v5931_v4 = vmov 0.0|0.0   ;;  %vm5932_vm1 = vmmov 0   ;;  %v5933_v7 = vmov 0.0   ;;  %vm1294_vm2 = vcmask 261120  }
  0x75   : > { %s6722_s13 = sld [smem:[#allocation5_spill]]  ;;  %5708 = vmatprep.subr.bf16.mxu1 %v5931_v4  ;;  %s6723_s8 = sld [smem:[#allocation8_spill]]  ;;  %5449 = vmatprep.mubr.msk.f32.mxu1 %vm5932_vm1, %v5933_v7  ;;  %vm1456_vm3 = vcmask 64512   ;;  %vm1548_vm4 = vcmask 1043456   ;;  %vm1532_vm5 = vcmask 27648   ;;  %vm1544_vm6 = vcmask 31744  }
  0x76   : > { %5463 = vmatprep.subr.mxu0 %v5933_v7  ;;  %5465 = vmatprep.mubr.msk.f32.mxu0 %vm5932_vm1, %v5933_v7  ;;  %s5934_s15 = smov 96   ;;  %s5935_s16 = smov 120   ;;  %vm1622_vm7 = vcmask 60416   ;;  %vm1794_vm8 = vcmask 126016   ;;  %vm1966_vm9 = vcmask 191616   ;;  %vm2138_vm10 = vcmask 257216  }
  0x77   : > { %s6725_s18 = sld [smem:[#allocation33_spill]]  ;;  %s5936_s23 = smov 88   ;;  %vm4784_vm11 = vcmask 523264  }
  0x78   : > { %s5937_s26 = smov 80   ;;  %s5938_s28 = smov 112  }
  0x79   : > { %s5939_s1 = smov 72   ;;  %s5940_s2 = smov 104  }
  0x7a   : > { %v1283_v1 = vld [vmem:[%s6720_s25] sm:$0xff]  ;;  %v1284_v2 = vld [vmem:[%s6720_s25 + $0x8] sm:$0xff]  ;;  %v1285_v3 = vld [vmem:[%s6720_s25 + $0x10] sm:$0xff]  ;;  %s6726_s11 = sld [smem:[#allocation10_spill]] }
  0x7b   : > { %v5709_v5 = vpack.c.bf16 %v1284_v2, %v1283_v1  ;;  %v1286_v6 = vld [vmem:[%s6720_s25 + $0x18] sm:$0xff]  ;;  %v6189_v9 = vld [vmem:[%s6721_s5] sm:$0xff]  ;;  %s6724_s7 = scalar_lea.vmem %s6723_s8, %s6111_s0  ;;  %s5941_s8 = smov 8  }
  0x7c   : > { %v5712_v8 = vpack.c.bf16 %v1286_v6, %v1285_v3  ;;  %v6192_v10 = vld [vmem:[%s6722_s13] sm:$0xff]  ;;  %s6728_s13 = sld [smem:[#allocation34_spill]] }
  0x7d   : > { %5710 = vmatpush3.bf16.msra.mxu1 %v5709_v5  ;;  %v1282_v11 = vadd.f32 %v6192_v10, %v6189_v9  ;;  %v5233_v12 = vld [vmem:[%s6724_s7] ss:$0 sm:$0xff]  ;;  %v1369_v20 = vld [vmem:[%s6725_s18 + $0x8] sm:$0xff]  ;;  %v1370_v21 = vld [vmem:[%s6725_s18 + $0x10] sm:$0xff]  ;;  %s5942_s7 = smov 16  }
  0x7e   : > { %5711 = vmatprep.subr.bf16.mxu1 %v5931_v4  ;;  %v1368_v19 = vld [vmem:[%s6725_s18] sm:$0xff]  ;;  %v1371_v23 = vld [vmem:[%s6725_s18 + $0x18] sm:$0xff]  ;;  %s6729_s18 = sld [smem:[#allocation12_spill]] }
  0x7f   : > { %v5715_v22 = vpack.c.bf16 %v1369_v20, %v1368_v19  ;;  %v5718_v24 = vpack.c.bf16 %v1371_v23, %v1370_v21 }
  0x80   : > { %s6727_s25 = scalar_lea.vmem %s6726_s11, %s6111_s0 }
  0x81   : > { %5713 = vmatpush3.bf16.msra.mxu1 %v5712_v8  ;;  %v5235_v39 = vld [vmem:[%s6727_s25] ss:$0 sm:$0xff]  ;;  %s6734_s25 = sld [smem:[#allocation35_spill]] }
  0x82   : > { %5714 = vmatprep.subr.bf16.mxu1 %v5931_v4 }
  0x84   : > { %5450 = vmatmul.mubr.msk.f32.vlgmr.msra.gmra.mrb[0].mxu1 %vm1294_vm2, %v1282_v11  ;;  %s6733_s11 = scalar_lea.vmem %s6729_s18, %s6111_s0 }
  0x85   : > { %5460 = vmatprep.mubr.msk.f32.mxu1 %vm5932_vm1, %v5933_v7  ;;  %5716 = vmatpush3.bf16.msra.mxu1 %v5715_v22 }
  0x86   : > { %5717 = vmatprep.subr.bf16.mxu1 %v5931_v4 }
  0x89   : > { %5719 = vmatpush3.bf16.msra.mxu1 %v5718_v24 }
  0x8a   : > { %5468 = vmatprep.subr.mxu1 %v5933_v7 }
  0x8c   : > { %5461 = vmatmul.mubr.msk.f32.vlgmr.msra.gmra.mrb[2].mxu1 %vm1294_vm2, %v6189_v9 }
  0x8d   : > { %5470 = vmatprep.mubr.msk.f32.mxu1 %vm5932_vm1, %v5933_v7 }
 0x157   : > { %v1364_v13 = vpop.f32.mrb[0].mxu1 }
 0x158   : > { %v1365_v14 = vadd.f32 %v5233_v12, %v1364_v13  ;;  %v5451_v15 = vpop.f32.mrb[1].mxu1 }
 0x15a   : > { %1454 = vrot.lane.b32.xlu0 %v1365_v14, %s5934_s15  ;;  %v1452_v16 = vmul.f32 0.35355338, %v1365_v14  ;;  %v2141_v17 = vrot.slane %v1365_v14, 4 }
 0x15c   : > { %1624 = vrot.lane.b32.xlu1 %v1452_v16, %s5935_s16  ;;  %v2140_v18 = vrot.slane %v1452_v16, 4 }
 0x15e   : > { %1626 = vrot.lane.b32.xlu0 %v1365_v14, %s5936_s23 }
 0x15f   : > { %v1448_v40 = vpop.f32.mrb[2].mxu1 }
 0x160   : > { %1798 = vrot.lane.b32.xlu1 %v1365_v14, %s5937_s26  ;;  %v5462_v41 = vpop.f32.mrb[3].mxu1  ;;  %v6263_v42 = vadd.f32 %v5235_v39, %v1448_v40 }
 0x162   : > { %1796 = vrot.lane.b32.xlu0 %v1452_v16, %s5938_s28  ;;  %5469 = vmatpush3.msk.msra.mxu1 %vm1548_vm4, %v6263_v42 }
 0x163   : > { %5478 = vmatprep.subr.mxu1 %v5933_v7 }
 0x164   : > { %1970 = vrot.lane.b32.xlu1 %v1365_v14, %s5939_s1 }
 0x166   : > { %1968 = vrot.lane.b32.xlu0 %v1452_v16, %s5940_s2 }
 0x168   : > { %2142 = vrot.lane.b32.xlu1 %v2141_v17, %s5934_s15  ;;  %s5943_s15 = smov 24  }
 0x16a   : > { %2308 = vrot.lane.b32.xlu0 %v2141_v17, %s5936_s23  ;;  %s6730_s23 = sld [smem:[#allocation36_spill]] }
 0x16c   : > { %2306 = vrot.lane.b32.xlu1 %v2140_v18, %s5935_s16 }
 0x16e   : > { %2479 = vrot.lane.b32.xlu0 %v2141_v17, %s5937_s26  ;;  %s6731_s26 = sld [smem:[#allocation3_spill]] }
 0x170   : > { %2477 = vrot.lane.b32.xlu1 %v2140_v18, %s5938_s28 }
 0x172   : > { %2650 = vrot.lane.b32.xlu0 %v2141_v17, %s5939_s1  ;;  %s6732_s1 = sld [smem:[#allocation4_spill]] }
 0x174   : > { %2648 = vrot.lane.b32.xlu1 %v2140_v18, %s5940_s2 }
 0x1cc   : > { %v1455_v25 = vpop.permute.xlu0 %1454 }
 0x1cd   : > { %5464 = vmatpush3.xpose.msk.msra.mxu0 %vm1456_vm3, %v1455_v25 }
 0x1ce   : > { %v1625_v26 = vpop.permute.xlu1 %1624  ;;  %5473 = vmatprep.subr.mxu0 %v5933_v7 }
 0x1d0   : > { %v1627_v27 = vpop.permute.xlu0 %1626  ;;  %5466 = vmatmul.mubr.msk.f32.vlgmr.msra.gmra.mrb[0].mxu0 %vm1456_vm3, %v1452_v16 }
 0x1d1   : > { %5474 = vmatpush3.xpose.msk.msra.mxu0 %vm1456_vm3, %v1627_v27  ;;  %5475 = vmatprep.mubr.msk.f32.mxu0 %vm5932_vm1, %v5933_v7 }
 0x1d2   : > { %v1799_v28 = vpop.permute.xlu1 %1798  ;;  %5483 = vmatprep.subr.mxu0 %v5933_v7 }
 0x1d4   : > { %v1797_v29 = vpop.permute.xlu0 %1796  ;;  %5476 = vmatmul.mubr.msk.f32.vlgmr.msra.gmra.mrb[2].mxu0 %vm1456_vm3, %v1625_v26 }
 0x1d5   : > { %5484 = vmatpush3.xpose.msk.msra.mxu0 %vm1456_vm3, %v1799_v28  ;;  %5485 = vmatprep.mubr.msk.f32.mxu0 %vm5932_vm1, %v5933_v7 }
 0x1d6   : > { %v1971_v30 = vpop.permute.xlu1 %1970  ;;  %5493 = vmatprep.subr.mxu0 %v5933_v7 }
 0x1d8   : > { %v1969_v31 = vpop.permute.xlu0 %1968  ;;  %5486 = vmatmul.mubr.msk.f32.vlgmr.msra.gmra.mrb[4].mxu0 %vm1456_vm3, %v1797_v29 }
 0x1d9   : > { %5494 = vmatpush3.xpose.msk.msra.mxu0 %vm1456_vm3, %v1971_v30  ;;  %5495 = vmatprep.mubr.msk.f32.mxu0 %vm5932_vm1, %v5933_v7 }
 0x1da   : > { %v2143_v32 = vpop.permute.xlu1 %2142  ;;  %5503 = vmatprep.subr.mxu0 %v5933_v7 }
 0x1dc   : > { %v2309_v33 = vpop.permute.xlu0 %2308  ;;  %5496 = vmatmul.mubr.msk.f32.vlgmr.msra.gmra.mrb[6].mxu0 %vm1456_vm3, %v1969_v31 }
 0x1dd   : > { %5504 = vmatpush3.xpose.msk.msra.mxu0 %vm1456_vm3, %v2143_v32  ;;  %5505 = vmatprep.mubr.msk.f32.mxu0 %vm5932_vm1, %v5933_v7 }
 0x1de   : > { %5513 = vmatprep.subr.mxu0 %v5933_v7  ;;  %v2307_v34 = vpop.permute.xlu1 %2306 }
 0x1e0   : > { %5506 = vmatmul.mubr.msk.f32.vlgmr.msra.gmra.mrb[8].mxu0 %vm1456_vm3, %v2140_v18  ;;  %v2480_v35 = vpop.permute.xlu0 %2479 }
 0x1e1   : > { %5514 = vmatpush3.xpose.msk.msra.mxu0 %vm1456_vm3, %v2309_v33  ;;  %5515 = vmatprep.mubr.msk.f32.mxu0 %vm5932_vm1, %v5933_v7 }
 0x1e2   : > { %5523 = vmatprep.subr.mxu0 %v5933_v7  ;;  %v2478_v36 = vpop.permute.xlu1 %2477 }
 0x1e4   : > { %5516 = vmatmul.mubr.msk.f32.vlgmr.msra.gmra.mrb[10].mxu0 %vm1456_vm3, %v2307_v34  ;;  %v2651_v37 = vpop.permute.xlu0 %2650 }
 0x1e5   : > { %5524 = vmatpush3.xpose.msk.msra.mxu0 %vm1456_vm3, %v2480_v35  ;;  %5525 = vmatprep.mubr.msk.f32.mxu0 %vm5932_vm1, %v5933_v7 }
 0x1e6   : > { %5533 = vmatprep.subr.mxu0 %v5933_v7  ;;  %v2649_v38 = vpop.permute.xlu1 %2648 }
 0x1e8   : > { %5526 = vmatmul.mubr.msk.f32.vlgmr.msra.gmra.mrb[12].mxu0 %vm1456_vm3, %v2478_v36 }
 0x1e9   : > { %5534 = vmatpush3.xpose.msk.msra.mxu0 %vm1456_vm3, %v2651_v37  ;;  %5535 = vmatprep.mubr.msk.f32.mxu0 %vm5932_vm1, %v5933_v7  ;;  %v2229_v37 = vrot.slane %v6263_v42, 4 }
 0x1ea   : > { %5720 = vmatprep.subr.bf16.mxu0 %v5931_v4 }
 0x1ec   : > { %5536 = vmatmul.mubr.msk.f32.vlgmr.msra.gmra.mrb[14].mxu0 %vm1456_vm3, %v2649_v38 }
 0x1ed   : > { %5551 = vmatprep.mubr.msk.f32.mxu0 %vm5932_vm1, %v5933_v7 }
 0x2a3   : > { %v1528_v43 = vpop.f32.mrb[0].mxu0 }
 0x2a4   : > { %v5467_v44 = vpop.f32.mrb[1].mxu0  ;;  %v1533_v45 = vsel %vm1532_vm5, %v1528_v43, -inf }
 0x2a5   : > { %1534 = vmax.xlane.f32.xlu0 %v1533_v45 }
 0x2a7   : > { %v1698_v46 = vpop.f32.mrb[2].mxu0 }
 0x2a8   : > { %v5477_v47 = vpop.f32.mrb[3].mxu0  ;;  %v1702_v48 = vsel %vm1532_vm5, %v1698_v46, -inf }
 0x2a9   : > { %1703 = vmax.xlane.f32.xlu1 %v1702_v48 }
 0x2ab   : > { %v1870_v49 = vpop.f32.mrb[4].mxu0 }
 0x2ac   : > { %v5487_v50 = vpop.f32.mrb[5].mxu0  ;;  %v1874_v51 = vsel %vm1532_vm5, %v1870_v49, -inf }
 0x2ad   : > { %1875 = vmax.xlane.f32.xlu0 %v1874_v51 }
 0x2af   : > { %v2042_v52 = vpop.f32.mrb[6].mxu0 }
 0x2b0   : > { %v5497_v53 = vpop.f32.mrb[7].mxu0  ;;  %v2046_v54 = vsel %vm1532_vm5, %v2042_v52, -inf }
 0x2b1   : > { %2047 = vmax.xlane.f32.xlu0 %v2046_v54 }
 0x2b3   : > { %v6272_v55 = vpop.f32.mrb[8].mxu0 }
 0x2b4   : > { %v5507_v56 = vpop.f32.mrb[9].mxu0  ;;  %v2218_v57 = vsel %vm1532_vm5, %v6272_v55, -inf }
 0x2b5   : > { %2219 = vmax.xlane.f32.xlu1 %v2218_v57 }
 0x2b7   : > { %v2380_v58 = vpop.f32.mrb[10].mxu0 }
 0x2b8   : > { %v5517_v59 = vpop.f32.mrb[11].mxu0  ;;  %v2384_v60 = vsel %vm1532_vm5, %v2380_v58, -inf }
 0x2b9   : > { %2385 = vmax.xlane.f32.xlu0 %v2384_v60 }
 0x2bb   : > { %v2551_v61 = vpop.f32.mrb[12].mxu0 }
 0x2bc   : > { %v5527_v62 = vpop.f32.mrb[13].mxu0  ;;  %v2555_v63 = vsel %vm1532_vm5, %v2551_v61, -inf }
 0x2bd   : > { %2556 = vmax.xlane.f32.xlu1 %v2555_v63 }
 0x2bf   : > { %v2722_v0 = vpop.f32.mrb[14].mxu0 }
 0x2c0   : > { %v5537_v1 = vpop.f32.mrb[15].mxu0  ;;  %v2726_v2 = vsel %vm1532_vm5, %v2722_v0, -inf }
 0x2c1   : > { %2727 = vmax.xlane.f32.xlu0 %v2726_v2 }
 0x2ce   : > { %1713 = vrot.lane.b32.xlu1 %v6263_v42, %s5935_s16 }
 0x332   : > { %v1535_v3 = vpop.xlane.xlu0 %1534 }
 0x333   : > { %v1536_v5 = vsub.f32 %v1528_v43, %v1535_v3 }
 0x335   : > { %v1537_v6 = vmul.f32 1.442695, %v1536_v5 }
 0x336   : > { %v1704_v8 = vpop.xlane.xlu1 %1703 }
 0x337   : > { %5823 = vpow2.f32 %v1537_v6  ;;  %v1705_v11 = vsub.f32 %v1698_v46, %v1704_v8 }
 0x339   : > { %v1706_v12 = vmul.f32 1.442695, %v1705_v11 }
 0x33a   : > { %v1876_v17 = vpop.xlane.xlu0 %1875 }
 0x33b   : > { %5825 = vpow2.f32 %v1706_v12  ;;  %v1877_v18 = vsub.f32 %v1870_v49, %v1876_v17 }
 0x33d   : > { %v1878_v20 = vmul.f32 1.442695, %v1877_v18 }
 0x33e   : > { %v2048_v19 = vpop.xlane.xlu0 %2047 }
 0x33f   : > { %v2049_v21 = vsub.f32 %v2042_v52, %v2048_v19  ;;  %5827 = vpow2.f32 %v1878_v20 }
 0x341   : > { %v5824_v13 = vpop.eup %5823  ;;  %v2050_v23 = vmul.f32 1.442695, %v2049_v21 }
 0x342   : > { %v1539_v14 = vsel %vm1532_vm5, %v5824_v13, 0.0  ;;  %v2220_v38 = vpop.xlane.xlu1 %2219 }
 0x343   : > { %1540 = vadd.xlane.f32.xlu1 %v1539_v14  ;;  %5829 = vpow2.f32 %v2050_v23  ;;  %v2221_v39 = vsub.f32 %v6272_v55, %v2220_v38 }
 0x345   : > { %v6282_v15 = vpop.eup %5825  ;;  %v2222_v41 = vmul.f32 1.442695, %v2221_v39 }
 0x346   : > { %v1708_v16 = vsel %vm1532_vm5, %v6282_v15, 0.0  ;;  %v2386_v22 = vpop.xlane.xlu0 %2385 }
 0x347   : > { %1709 = vadd.xlane.f32.xlu0 %v1708_v16  ;;  %v2387_v24 = vsub.f32 %v2380_v58, %v2386_v22 }
 0x349   : > { %v2388_v26 = vmul.f32 1.442695, %v2387_v24  ;;  %v5828_v29 = vpop.eup %5827 }
 0x34a   : > { %v1880_v30 = vsel %vm1532_vm5, %v5828_v29, 0.0  ;;  %v2557_v40 = vpop.xlane.xlu1 %2556 }
 0x34b   : > { %5831 = vpow2.f32 %v2388_v26  ;;  %v2558_v43 = vsub.f32 %v2551_v61, %v2557_v40  ;;  %v2820_v26 = vld [vmem:[%s6728_s13] sm:$0xff] }
 0x34d   : > { %v5830_v31 = vpop.eup %5829  ;;  %v2559_v44 = vmul.f32 1.442695, %v2558_v43 }
 0x34e   : > { %v2728_v25 = vpop.xlane.xlu0 %2727  ;;  %v2052_v32 = vsel %vm1532_vm5, %v5830_v31, 0.0  ;;  %v1714_v48 = vpop.permute.xlu1 %1713 }
 0x34f   : > { %v2729_v27 = vsub.f32 %v2722_v0, %v2728_v25 }
 0x351   : > { %v2730_v28 = vmul.f32 1.442695, %v2729_v27  ;;  %v2821_v27 = vld [vmem:[%s6728_s13 + $0x8] sm:$0xff] }
 0x353   : > { %5833 = vpow2.f32 %v2730_v28 }
 0x354   : > { %2057 = vrot.lane.b32.xlu1 %v6263_v42, %s5940_s2  ;;  %5835 = vpow2.f32 %v2222_v41 }
 0x355   : > { %v6292_v33 = vpop.eup %5831  ;;  %5837 = vpow2.f32 %v2559_v44 }
 0x356   : > { %v2390_v34 = vsel %vm1532_vm5, %v6292_v33, 0.0 }
 0x35d   : > { %1885 = vrot.lane.b32.xlu0 %v6263_v42, %s5938_s28  ;;  %v6296_v35 = vpop.eup %5833 }
 0x35e   : > { %v2732_v36 = vsel %vm1532_vm5, %v6296_v35, 0.0  ;;  %v5836_v45 = vpop.eup %5835 }
 0x35f   : > { %v2224_v46 = vsel %vm1532_vm5, %v5836_v45, 0.0  ;;  %v6305_v47 = vpop.eup %5837 }
 0x360   : > { %v2561_v42 = vsel %vm1532_vm5, %v6305_v47, 0.0 }
 0x378   : > { %1881 = vadd.xlane.f32.xlu1 %v1880_v30  ;;  %v2822_v30 = vld [vmem:[%s6728_s13 + $0x10] sm:$0xff] }
 0x37c   : > { %2053 = vadd.xlane.f32.xlu0 %v2052_v32 }
 0x380   : > { %2391 = vadd.xlane.f32.xlu0 %v2390_v34 }
 0x384   : > { %2733 = vadd.xlane.f32.xlu0 %v2732_v36 }
 0x389   : > { %2395 = vrot.lane.b32.xlu1 %v2229_v37, %s5935_s16 }
 0x39a   : > { %2566 = vrot.lane.b32.xlu0 %v2229_v37, %s5938_s28 }
 0x3ad   : > { %2225 = vadd.xlane.f32.xlu1 %v2224_v46 }
 0x3b1   : > { %2562 = vadd.xlane.f32.xlu1 %v2561_v42  ;;  %v5269_v42 = vld [vmem:[%s6733_s11] ss:$0 sm:$0xff] }
 0x3c2   : > { %2737 = vrot.lane.b32.xlu1 %v2229_v37, %s5940_s2 }
 0x3d0   : > { %v1541_v49 = vpop.xlane.xlu1 %1540 }
 0x3d1   : > { %5839 = vrcp.f32 %v1541_v49 }
 0x3d4   : > { %v1710_v50 = vpop.xlane.xlu0 %1709  ;;  %v2058_v56 = vpop.permute.xlu1 %2057 }
 0x3d5   : > { %5841 = vrcp.f32 %v1710_v50 }
 0x3d8   : > { %v1886_v55 = vpop.permute.xlu0 %1885 }
 0x3db   : > { %v5840_v51 = vpop.eup %5839 }
 0x3dc   : > { %v1543_v52 = vmul.f32 %v5840_v51, %v5824_v13 }
 0x3de   : > { %5471 = vmatmul.mubr.msk.f32.vlgmr.msra.gmra.mrb[4].mxu1 %vm1544_vm6, %v1543_v52 }
 0x3df   : > { %v5842_v53 = vpop.eup %5841  ;;  %5479 = vmatpush3.msk.msra.mxu1 %vm1548_vm4, %v1714_v48  ;;  %5480 = vmatprep.mubr.msk.f32.mxu1 %vm5932_vm1, %v5933_v7 }
 0x3e0   : > { %v1712_v54 = vmul.f32 %v5842_v53, %v6282_v15  ;;  %5488 = vmatprep.subr.mxu1 %v5933_v7  ;;  %v3022_v53 = vld [vmem:[%s6730_s23] sm:$0xff] }
 0x3e2   : > { %5481 = vmatmul.mubr.msk.f32.vlgmr.msra.gmra.mrb[6].mxu1 %vm1544_vm6, %v1712_v54  ;;  %v3023_v54 = vld [vmem:[%s6730_s23 + $0x8] sm:$0xff] }
 0x3e3   : > { %5489 = vmatpush3.msk.msra.mxu1 %vm1548_vm4, %v1886_v55  ;;  %5490 = vmatprep.mubr.msk.f32.mxu1 %vm5932_vm1, %v5933_v7  ;;  %v3024_v55 = vld [vmem:[%s6730_s23 + $0x10] sm:$0xff] }
 0x3e4   : > { %5498 = vmatprep.subr.mxu1 %v5933_v7 }
 0x405   : > { %v1882_v57 = vpop.xlane.xlu1 %1881 }
 0x406   : > { %5843 = vrcp.f32 %v1882_v57  ;;  %v3025_v57 = vld [vmem:[%s6730_s23 + $0x18] sm:$0xff] }
 0x409   : > { %v2054_v58 = vpop.xlane.xlu0 %2053  ;;  %v2396_v63 = vpop.permute.xlu1 %2395 }
 0x40a   : > { %5845 = vrcp.f32 %v2054_v58  ;;  %v1276_v58 = vld [vmem:[%s6731_s26] sm:$0xff] }
 0x40d   : > { %v2392_v0 = vpop.xlane.xlu0 %2391 }
 0x410   : > { %v5844_v59 = vpop.eup %5843 }
 0x411   : > { %v1884_v60 = vmul.f32 %v5844_v59, %v5828_v29  ;;  %v2734_v3 = vpop.xlane.xlu0 %2733  ;;  %v5721_v29 = vpack.c.bf16 %v2821_v27, %v2820_v26  ;;  %v1278_v59 = vld [vmem:[%s6732_s1] sm:$0xff] }
 0x412   : > { %v5272_v26 = vld [vmem:[%s1252_s29] ss:$0 sm:$0xff]  ;;  %s6742_s29 = sld [smem:[#allocation6_spill]] }
 0x413   : > { %5491 = vmatmul.mubr.msk.f32.vlgmr.msra.gmra.mrb[8].mxu1 %vm1544_vm6, %v1884_v60  ;;  %5722 = vmatpush3.bf16.msra.mxu0 %v5721_v29  ;;  %v5736_v60 = vpack.c.bf16 %v3025_v57, %v3024_v55 }
 0x414   : > { %v5846_v61 = vpop.eup %5845  ;;  %5499 = vmatpush3.msk.msra.mxu1 %vm1548_vm4, %v2058_v56  ;;  %5500 = vmatprep.mubr.msk.f32.mxu1 %vm5932_vm1, %v5933_v7  ;;  %v5732_v56 = vpack.c.bf16 %v3023_v54, %v3022_v53  ;;  %v3207_v53 = vlaneseq }
 0x415   : > { %v2056_v62 = vmul.f32 %v5846_v61, %v5830_v31  ;;  %5508 = vmatprep.subr.mxu1 %v5933_v7  ;;  %v2567_v13 = vpop.permute.xlu0 %2566  ;;  %v2823_v31 = vld [vmem:[%s6728_s13 + $0x18] sm:$0xff]  ;;  %5723 = vmatprep.subr.bf16.mxu0 %v5931_v4  ;;  %v3020_v61 = vadd.f32 %v1278_v59, %v1276_v58  ;;  %s6735_s13 = sld [smem:[#allocation16_spill]] }
 0x416   : > { %v3208_v54 = vshrl.u32 %v3207_v53, 7 }
 0x417   : > { %5501 = vmatmul.mubr.msk.f32.vlgmr.msra.gmra.mrb[10].mxu1 %vm1544_vm6, %v2056_v62  ;;  %v1279_v62 = vld [vmem:[%s6732_s1 + $0x8] sm:$0xff] }
 0x418   : > { %5509 = vmatpush3.msk.msra.mxu1 %vm1548_vm4, %v2229_v37  ;;  %5510 = vmatprep.mubr.msk.f32.mxu1 %vm5932_vm1, %v5933_v7  ;;  %v3209_v55 = vsub.s32 0, %v3208_v54 }
 0x419   : > { %5518 = vmatprep.subr.mxu1 %v5933_v7 }
 0x41b   : > { %s6736_s18 = scalar_lea.vmem %s6735_s13, %s6111_s0  ;;  %s6740_s13 = sld [smem:[#allocation37_spill]] }
 0x43a   : > { %v2226_v1 = vpop.xlane.xlu1 %2225 }
 0x43b   : > { %5847 = vrcp.f32 %v2226_v1 }
 0x43c   : > { %5849 = vrcp.f32 %v2392_v0 }
 0x43e   : > { %v2563_v2 = vpop.xlane.xlu1 %2562 }
 0x43f   : > { %5851 = vrcp.f32 %v2563_v2 }
 0x440   : > { %5853 = vrcp.f32 %v2734_v3 }
 0x442   : > { %v2738_v16 = vpop.permute.xlu1 %2737 }
 0x445   : > { %v5848_v5 = vpop.eup %5847 }
 0x446   : > { %v2228_v6 = vmul.f32 %v5848_v5, %v5836_v45  ;;  %v5850_v8 = vpop.eup %5849 }
 0x447   : > { %v2394_v11 = vmul.f32 %v5850_v8, %v6292_v33  ;;  %v5724_v33 = vpack.c.bf16 %v2823_v31, %v2822_v30  ;;  %v2937_v8 = vld [vmem:[%s6734_s25 + $0x8] sm:$0xff] }
 0x448   : > { %5511 = vmatmul.mubr.msk.f32.vlgmr.msra.gmra.mrb[12].mxu1 %vm1544_vm6, %v2228_v6  ;;  %v2936_v6 = vld [vmem:[%s6734_s25] sm:$0xff] }
 0x449   : > { %5519 = vmatpush3.msk.msra.mxu1 %vm1548_vm4, %v2396_v63  ;;  %5520 = vmatprep.mubr.msk.f32.mxu1 %vm5932_vm1, %v5933_v7  ;;  %v5852_v12 = vpop.eup %5851 }
 0x44a   : > { %5528 = vmatprep.subr.mxu1 %v5933_v7  ;;  %v2565_v14 = vmul.f32 %v5852_v12, %v6305_v47  ;;  %v5854_v15 = vpop.eup %5853  ;;  %5725 = vmatpush3.bf16.msra.mxu0 %v5724_v33  ;;  %v2938_v12 = vld [vmem:[%s6734_s25 + $0x10] sm:$0xff] }
 0x44b   : > { %v2736_v17 = vmul.f32 %v5854_v15, %v6296_v35  ;;  %5733 = vmatprep.subr.bf16.mxu0 %v5732_v56  ;;  %v5275_v15 = vld [vmem:[%s6736_s18] ss:$0 sm:$0xff] }
 0x44c   : > { %5521 = vmatmul.mubr.msk.f32.vlgmr.msra.gmra.mrb[14].mxu1 %vm1544_vm6, %v2394_v11  ;;  %v5727_v11 = vpack.c.bf16 %v2937_v8, %v2936_v6 }
 0x44d   : > { %5529 = vmatpush3.msk.msra.mxu1 %vm1548_vm4, %v2567_v13  ;;  %5530 = vmatprep.mubr.msk.f32.mxu1 %vm5932_vm1, %v5933_v7  ;;  %v2939_v13 = vld [vmem:[%s6734_s25 + $0x18] sm:$0xff]  ;;  %s6739_s25 = sld [smem:[#allocation14_spill]] }
 0x44e   : > { %5538 = vmatprep.subr.mxu1 %v5933_v7 }
 0x450   : > { %5531 = vmatmul.mubr.msk.f32.vlgmr.msra.gmra.mrb[16].mxu1 %vm1544_vm6, %v2565_v14  ;;  %v5730_v14 = vpack.c.bf16 %v2939_v13, %v2938_v12  ;;  %v3890_v13 = vsub.s32 1, %v3208_v54 }
 0x451   : > { %5539 = vmatpush3.msk.msra.mxu1 %vm1548_vm4, %v2738_v16  ;;  %5540 = vmatprep.mubr.msk.f32.mxu1 %vm5932_vm1, %v5933_v7 }
 0x452   : > { %5726 = vmatprep.subr.bf16.mxu1 %v5931_v4 }
 0x453   : > { %s6741_s18 = scalar_lea.vmem %s6739_s25, %s6111_s0 }
 0x454   : > { %5541 = vmatmul.mubr.msk.f32.vlgmr.msra.gmra.mrb[18].mxu1 %vm1544_vm6, %v2736_v17  ;;  %v5273_v30 = vld [vmem:[%s6741_s18] ss:$0 sm:$0xff] }
 0x455   : > { %5562 = vmatprep.mubr.msk.f32.mxu1 %vm5932_vm1, %v5933_v7  ;;  %5728 = vmatpush3.bf16.msra.mxu1 %v5727_v11 }
 0x456   : > { %5729 = vmatprep.subr.bf16.mxu1 %v5931_v4 }
 0x459   : > { %5731 = vmatpush3.bf16.msra.mxu1 %v5730_v14 }
 0x4b1   : > { %v1618_v18 = vpop.f32.mrb[4].mxu1 }
 0x4b2   : > { %1623 = vst.msk [vmem:[#allocation2] sm:$0xf] %vm1622_vm7, %v1618_v18  ;;  %v5472_v19 = vpop.f32.mrb[5].mxu1 }
 0x4b5   : > { %v1786_v20 = vpop.f32.mrb[6].mxu1 }
 0x4b6   : > { %1791 = vrot.lane.b32.xlu0 %v1786_v20, %s5941_s8  ;;  %v5482_v21 = vpop.f32.mrb[7].mxu1 }
 0x4e6   : > { %v1958_v22 = vpop.f32.mrb[8].mxu1 }
 0x4e7   : > { %1963 = vrot.lane.b32.xlu0 %v1958_v22, %s5942_s7  ;;  %v5492_v23 = vpop.f32.mrb[9].mxu1 }
 0x4ea   : > { %v2130_v24 = vpop.f32.mrb[10].mxu1 }
 0x4eb   : > { %2135 = vrot.lane.b32.xlu0 %v2130_v24, %s5943_s15  ;;  %v5502_v25 = vpop.f32.mrb[11].mxu1  ;;  %v5271_v24 = vld [vmem:[%s1249_s30] ss:$0 sm:$0xff]  ;;  %s6743_s30 = sld [smem:[#allocation18_spill]] }
 0x4f1   : > { %s6744_s23 = scalar_lea.vmem %s6743_s30, %s6111_s0 }
 0x51b   : > { %v2301_v28 = vpop.f32.mrb[12].mxu1 }
 0x51c   : > { %2305 = vst.msk [vmem:[#allocation2 + $0x4] sm:$0xf] %vm1622_vm7, %v2301_v28  ;;  %v5512_v32 = vpop.f32.mrb[13].mxu1 }
 0x51f   : > { %v2468_v34 = vpop.f32.mrb[14].mxu1 }
 0x520   : > { %2473 = vrot.lane.b32.xlu1 %v2468_v34, %s5941_s8  ;;  %v5522_v35 = vpop.f32.mrb[15].mxu1 }
 0x523   : > { %v2639_v36 = vpop.f32.mrb[16].mxu1 }
 0x524   : > { %2644 = vrot.lane.b32.xlu1 %v2639_v36, %s5942_s7  ;;  %v5532_v37 = vpop.f32.mrb[17].mxu1  ;;  %v3114_v36 = vld [vmem:[%s6740_s13] sm:$0xff] }
 0x525   : > { %v3115_v37 = vld [vmem:[%s6740_s13 + $0x8] sm:$0xff] }
 0x527   : > { %v2810_v38 = vpop.f32.mrb[18].mxu1 }
 0x528   : > { %v1792_v39 = vpop.permute.xlu0 %1791  ;;  %2815 = vrot.lane.b32.xlu1 %v2810_v38, %s5943_s15  ;;  %v5542_v40 = vpop.f32.mrb[19].mxu1  ;;  %v3116_v38 = vld [vmem:[%s6740_s13 + $0x10] sm:$0xff] }
 0x529   : > { %1795 = vst.msk [vmem:[#allocation2] sm:$0xf] %vm1794_vm8, %v1792_v39  ;;  %v5740_v39 = vpack.c.bf16 %v3115_v37, %v3114_v36  ;;  %v3117_v40 = vld [vmem:[%s6740_s13 + $0x18] sm:$0xff] }
 0x52b   : > { %5741 = vmatprep.subr.bf16.mxu1 %v5740_v39 }
 0x559   : > { %v1964_v41 = vpop.permute.xlu0 %1963 }
 0x55a   : > { %1967 = vst.msk [vmem:[#allocation2] sm:$0xf] %vm1966_vm9, %v1964_v41  ;;  %v5744_v41 = vpack.c.bf16 %v3117_v40, %v3116_v38 }
 0x55d   : > { %v2136_v43 = vpop.permute.xlu0 %2135 }
 0x55e   : > { %2139 = vst.msk [vmem:[#allocation2] sm:$0xf] %vm2138_vm10, %v2136_v43 }
 0x592   : > { %v2474_v44 = vpop.permute.xlu1 %2473 }
 0x593   : > { %2476 = vst.msk [vmem:[#allocation2 + $0x4] sm:$0xf] %vm1794_vm8, %v2474_v44 }
 0x596   : > { %v2645_v45 = vpop.permute.xlu1 %2644 }
 0x597   : > { %2647 = vst.msk [vmem:[#allocation2 + $0x4] sm:$0xf] %vm1966_vm9, %v2645_v45 }
 0x59a   : > { %v2816_v46 = vpop.permute.xlu1 %2815 }
 0x59b   : > { %2818 = vst.msk [vmem:[#allocation2 + $0x4] sm:$0xf] %vm2138_vm10, %v2816_v46 }
 0x5a2   : > { %v2819_v47 = vld [vmem:[#allocation2] sm:$0xff] }
 0x5a3   : > { %5552 = vmatmul.mubr.msk.f32.vlgmr.msra.gmra.mrb[16].mxu0 %vm1294_vm2, %v2819_v47 }
 0x5a4   : > { %5735 = vmatpush3.bf16.msra.mxu0 %v5732_v56  ;;  %5573 = vmatprep.mubr.msk.f32.mxu0 %vm1294_vm2, %v3020_v61  ;;  %v1281_v56 = vld [vmem:[%s6742_s29] sm:$0x3] }
 0x5a5   : > { %5737 = vmatprep.subr.bf16.mxu0 %v5736_v60  ;;  %v3210_v57 = vrot.slane %v1281_v56, %v3209_v55 }
 0x5a8   : > { %5739 = vmatpush3.bf16.msra.mxu0 %v5736_v60 }
 0x5a9   : > { %5587 = vmatprep.subr.mxu0 %v5933_v7 }
 0x676   : > { %v2900_v48 = vpop.f32.mrb[16].mxu0 }
 0x677   : > { %v2901_v49 = vadd.f32 %v5269_v42, %v2900_v48  ;;  %v5553_v50 = vpop.f32.mrb[17].mxu0 }
 0x679   : > { %v2904_v51 = vadd.f32 %v2901_v49, %v6189_v9  ;;  %v6385_v9 = vld [vmem:[%s6731_s26 + $0x8] sm:$0xff] }
 0x67a   : > { %v3021_v63 = vadd.f32 %v1279_v62, %v6385_v9  ;;  %v5278_v62 = vld [vmem:[%s6744_s23] ss:$0 sm:$0xff] }
 0x67b   : > { %v2907_v52 = vsel %vm1294_vm2, %v2904_v51, 0.0 }
 0x67c   : > { %2908 = vadd.xlane.f32.xlu0 %v2907_v52  ;;  %5574 = vmatmul.mubr.msk.f32.vlgmr.msra.gmra.mrb[18].mxu0 %vm1294_vm2, %v3021_v63 }
 0x67d   : > { %5589 = vmatprep.mubr.msk.f32.mxu0 %vm5932_vm1, %v5933_v7 }
 0x709   : > { %v2909_v0 = vpop.xlane.xlu0 %2908 }
 0x70a   : > { %v2911_v1 = vmul.f32 0.03125, %v2909_v0 }
 0x70c   : > { %v2912_v2 = vsub.f32 %v2904_v51, %v2911_v1 }
 0x70e   : > { %v2913_v3 = vmul.f32 %v2912_v2, %v2912_v2 }
 0x710   : > { %v2914_v5 = vsel %vm1294_vm2, %v2913_v3, 0.0 }
 0x711   : > { %2915 = vadd.xlane.f32.xlu1 %v2914_v5 }
 0x74f   : > { %v5575_v16 = vpop.f32.mrb[18].mxu0 }
 0x750   : > { %v3105_v17 = vpop.f32.mrb[19].mxu0  ;;  %v6406_v19 = vadd.f32 %v5575_v16, %v5275_v15 }
 0x751   : > { %v3106_v18 = vadd.f32 %v5275_v15, %v3105_v17 }
 0x753   : > { %3374 = vrot.lane.b32.xlu0 %v3106_v18, %s5935_s16  ;;  %5588 = vmatpush3.xpose.msk.msra.mxu0 %vm1456_vm3, %v3106_v18 }
 0x754   : > { %5597 = vmatprep.subr.mxu0 %v5933_v7 }
 0x757   : > { %3546 = vrot.lane.b32.xlu0 %v3106_v18, %s5938_s28 }
 0x75b   : > { %3717 = vrot.lane.b32.xlu0 %v3106_v18, %s5940_s2  ;;  %v3891_v18 = vrot.slane %v1281_v56, %v3890_v13 }
 0x75f   : > { %4055 = vrot.lane.b32.xlu0 %v6406_v19, %s5935_s16 }
 0x763   : > { %4227 = vrot.lane.b32.xlu0 %v6406_v19, %s5938_s28 }
 0x767   : > { %4398 = vrot.lane.b32.xlu0 %v6406_v19, %s5940_s2 }
 0x79e   : > { %v2916_v20 = vpop.xlane.xlu1 %2915 }
 0x79f   : > { %v2917_v21 = vmul.f32 0.03125, %v2916_v20 }
 0x7a1   : > { %v2918_v22 = vadd.f32 1e-05, %v2917_v21 }
 0x7a3   : > { %5855 = vrsqrt.f32 %v2918_v22 }
 0x7ad   : > { %v5856_v23 = vpop.eup %5855 }
 0x7ae   : > { %v2920_v25 = vmul.f32 %v5856_v23, %v2912_v2 }
 0x7b0   : > { %v2927_v27 = vmul.f32 %v5271_v24, %v2920_v25 }
 0x7b2   : > { %v6421_v28 = vadd.f32 %v5272_v26, %v2927_v27 }
 0x7b4   : > { %v2935_v29 = vadd.f32 %v6421_v28, %v6192_v10 }
 0x7b6   : > { %5563 = vmatmul.mubr.msk.f32.vlgmr.msra.gmra.mrb[20].mxu1 %vm1294_vm2, %v2935_v29 }
 0x7b7   : > { %5584 = vmatprep.mubr.msk.f32.mxu1 %vm1294_vm2, %v1276_v58  ;;  %5743 = vmatpush3.bf16.msra.mxu1 %v5740_v39 }
 0x7b8   : > { %5745 = vmatprep.subr.bf16.mxu1 %v5744_v41 }
 0x7bb   : > { %5747 = vmatpush3.bf16.msra.mxu1 %v5744_v41 }
 0x7bc   : > { %5592 = vmatprep.subr.mxu1 %v5933_v7 }
 0x7be   : > { %5585 = vmatmul.mubr.msk.f32.vlgmr.msra.gmra.mrb[22].mxu1 %vm1294_vm2, %v6385_v9 }
 0x7bf   : > { %5594 = vmatprep.mubr.msk.f32.mxu1 %vm5932_vm1, %v5933_v7 }
 0x7c5   : > { %v3375_v35 = vpop.permute.xlu0 %3374 }
 0x7c9   : > { %v3547_v43 = vpop.permute.xlu0 %3546 }
 0x7cd   : > { %v3718_v45 = vpop.permute.xlu0 %3717 }
 0x7d1   : > { %v4056_v42 = vpop.permute.xlu0 %4055 }
 0x7d5   : > { %v4228_v49 = vpop.permute.xlu0 %4227 }
 0x7d9   : > { %v4399_v51 = vpop.permute.xlu0 %4398 }
 0x889   : > { %v3016_v31 = vpop.f32.mrb[20].mxu1 }
 0x88a   : > { %v3017_v32 = vadd.f32 %v5273_v30, %v3016_v31  ;;  %v5564_v33 = vpop.f32.mrb[21].mxu1 }
 0x88c   : > { %v3206_v34 = vmul.f32 0.35355338, %v3017_v32 }
 0x88e   : > { %3372 = vrot.lane.b32.xlu1 %v3206_v34, %s5935_s16  ;;  %5590 = vmatmul.mubr.msk.f32.vlgmr.msra.gmra.mrb[20].mxu0 %vm1456_vm3, %v3206_v34  ;;  %v3892_v10 = vrot.slane %v3206_v34, 4 }
 0x88f   : > { %5598 = vmatpush3.xpose.msk.msra.mxu0 %vm1456_vm3, %v3375_v35  ;;  %5599 = vmatprep.mubr.msk.f32.mxu0 %vm5932_vm1, %v5933_v7 }
 0x890   : > { %5607 = vmatprep.subr.mxu0 %v5933_v7 }
 0x891   : > { %v5586_v9 = vpop.f32.mrb[22].mxu1 }
 0x892   : > { %3544 = vrot.lane.b32.xlu1 %v3206_v34, %s5938_s28  ;;  %v6489_v63 = vadd.f32 %v5586_v9, %v5278_v62  ;;  %v3197_v0 = vpop.f32.mrb[23].mxu1 }
 0x893   : > { %v6491_v1 = vadd.f32 %v5278_v62, %v3197_v0 }
 0x895   : > { %5593 = vmatpush3.msra.mxu1 %v6491_v1 }
 0x896   : > { %3715 = vrot.lane.b32.xlu1 %v3206_v34, %s5940_s2  ;;  %5602 = vmatprep.subr.mxu1 %v5933_v7 }
 0x89a   : > { %4053 = vrot.lane.b32.xlu1 %v3892_v10, %s5935_s16 }
 0x89e   : > { %4225 = vrot.lane.b32.xlu1 %v3892_v10, %s5938_s28 }
 0x8a2   : > { %4396 = vrot.lane.b32.xlu1 %v3892_v10, %s5940_s2 }
 0x900   : > { %v3373_v44 = vpop.permute.xlu1 %3372 }
 0x901   : > { %5600 = vmatmul.mubr.msk.f32.vlgmr.msra.gmra.mrb[22].mxu0 %vm1456_vm3, %v3373_v44 }
 0x902   : > { %5608 = vmatpush3.xpose.msk.msra.mxu0 %vm1456_vm3, %v3547_v43  ;;  %5609 = vmatprep.mubr.msk.f32.mxu0 %vm5932_vm1, %v5933_v7 }
 0x903   : > { %5617 = vmatprep.subr.mxu0 %v5933_v7 }
 0x904   : > { %v3545_v46 = vpop.permute.xlu1 %3544 }
 0x905   : > { %5610 = vmatmul.mubr.msk.f32.vlgmr.msra.gmra.mrb[24].mxu0 %vm1456_vm3, %v3545_v46 }
 0x906   : > { %5618 = vmatpush3.xpose.msk.msra.mxu0 %vm1456_vm3, %v3718_v45  ;;  %5619 = vmatprep.mubr.msk.f32.mxu0 %vm5932_vm1, %v5933_v7 }
 0x907   : > { %5627 = vmatprep.subr.mxu0 %v5933_v7 }
 0x908   : > { %v3716_v47 = vpop.permute.xlu1 %3715 }
 0x909   : > { %5620 = vmatmul.mubr.msk.f32.vlgmr.msra.gmra.mrb[26].mxu0 %vm1456_vm3, %v3716_v47 }
 0x90a   : > { %5628 = vmatpush3.xpose.msk.msra.mxu0 %vm1456_vm3, %v6406_v19  ;;  %5629 = vmatprep.mubr.msk.f32.mxu0 %vm5932_vm1, %v5933_v7 }
 0x90b   : > { %5637 = vmatprep.subr.mxu0 %v5933_v7 }
 0x90c   : > { %v4054_v48 = vpop.permute.xlu1 %4053 }
 0x90d   : > { %5630 = vmatmul.mubr.msk.f32.vlgmr.msra.gmra.mrb[28].mxu0 %vm1456_vm3, %v3892_v10 }
 0x90e   : > { %5638 = vmatpush3.xpose.msk.msra.mxu0 %vm1456_vm3, %v4056_v42  ;;  %5639 = vmatprep.mubr.msk.f32.mxu0 %vm5932_vm1, %v5933_v7 }
 0x90f   : > { %5647 = vmatprep.subr.mxu0 %v5933_v7 }
 0x910   : > { %v4226_v50 = vpop.permute.xlu1 %4225 }
 0x911   : > { %5640 = vmatmul.mubr.msk.f32.vlgmr.msra.gmra.mrb[30].mxu0 %vm1456_vm3, %v4054_v48 }
 0x912   : > { %5648 = vmatpush3.xpose.msk.msra.mxu0 %vm1456_vm3, %v4228_v49  ;;  %5649 = vmatprep.mubr.msk.f32.mxu0 %vm5932_vm1, %v5933_v7 }
 0x913   : > { %5657 = vmatprep.subr.mxu0 %v5933_v7 }
 0x914   : > { %v4397_v52 = vpop.permute.xlu1 %4396 }
 0x915   : > { %5650 = vmatmul.mubr.msk.f32.vlgmr.msra.gmra.mrb[32].mxu0 %vm1456_vm3, %v4226_v50 }
 0x916   : > { %5658 = vmatpush3.xpose.msk.msra.mxu0 %vm1456_vm3, %v4399_v51  ;;  %5659 = vmatprep.mubr.msk.f32.mxu0 %vm5932_vm1, %v5933_v7 }
 0x917   : > { %5748 = vmatprep.subr.bf16.mxu0 %v5931_v4 }
 0x919   : > { %5660 = vmatmul.mubr.msk.f32.vlgmr.msra.gmra.mrb[34].mxu0 %vm1456_vm3, %v4397_v52 }
 0x91a   : > { %5675 = vmatprep.mubr.msk.f32.mxu0 %vm5932_vm1, %v5933_v7 }
 0x961   : > { %v3283_v58 = vpop.f32.mrb[20].mxu0 }
 0x962   : > { %v3284_v59 = vadd.f32 %v3283_v58, %v3210_v57  ;;  %v5591_v60 = vpop.f32.mrb[21].mxu0 }
 0x964   : > { %v3287_v61 = vsel %vm1622_vm7, %v3284_v59, -inf }
 0x965   : > { %3288 = vmax.xlane.f32.xlu0 %v3287_v61 }
 0x9d4   : > { %v3446_v2 = vpop.f32.mrb[22].mxu0 }
 0x9d5   : > { %v3447_v3 = vadd.f32 %v3446_v2, %v3210_v57  ;;  %v5601_v5 = vpop.f32.mrb[23].mxu0 }
 0x9d7   : > { %v3450_v6 = vsel %vm1622_vm7, %v3447_v3, -inf }
 0x9d8   : > { %3451 = vmax.xlane.f32.xlu1 %v3450_v6  ;;  %v3618_v8 = vpop.f32.mrb[24].mxu0 }
 0x9d9   : > { %v3619_v11 = vadd.f32 %v3618_v8, %v3210_v57  ;;  %v5611_v12 = vpop.f32.mrb[25].mxu0 }
 0x9db   : > { %v3622_v14 = vsel %vm1622_vm7, %v3619_v11, -inf }
 0x9dc   : > { %3623 = vmax.xlane.f32.xlu0 %v3622_v14  ;;  %v3789_v15 = vpop.f32.mrb[26].mxu0 }
 0x9dd   : > { %v3790_v16 = vadd.f32 %v3789_v15, %v3210_v57  ;;  %v5621_v17 = vpop.f32.mrb[27].mxu0 }
 0x9df   : > { %v3793_v19 = vsel %vm1622_vm7, %v3790_v16, -inf }
 0x9e0   : > { %3794 = vmax.xlane.f32.xlu0 %v3793_v19  ;;  %v3964_v20 = vpop.f32.mrb[28].mxu0 }
 0x9e1   : > { %v3965_v21 = vadd.f32 %v3964_v20, %v3891_v18  ;;  %v5631_v22 = vpop.f32.mrb[29].mxu0 }
 0x9e3   : > { %v3968_v23 = vsel %vm1622_vm7, %v3965_v21, -inf }
 0x9e4   : > { %3969 = vmax.xlane.f32.xlu1 %v3968_v23  ;;  %v4127_v24 = vpop.f32.mrb[30].mxu0 }
 0x9e5   : > { %v4128_v25 = vadd.f32 %v4127_v24, %v3891_v18  ;;  %v5641_v26 = vpop.f32.mrb[31].mxu0 }
 0x9e7   : > { %v4131_v27 = vsel %vm1622_vm7, %v4128_v25, -inf }
 0x9e8   : > { %4132 = vmax.xlane.f32.xlu0 %v4131_v27  ;;  %v4299_v29 = vpop.f32.mrb[32].mxu0 }
 0x9e9   : > { %v4300_v30 = vadd.f32 %v4299_v29, %v3891_v18  ;;  %v5651_v31 = vpop.f32.mrb[33].mxu0 }
 0x9eb   : > { %v4303_v32 = vsel %vm1622_vm7, %v4300_v30, -inf }
 0x9ec   : > { %4304 = vmax.xlane.f32.xlu1 %v4303_v32  ;;  %v4470_v33 = vpop.f32.mrb[34].mxu0 }
 0x9ed   : > { %v4471_v34 = vadd.f32 %v4470_v33, %v3891_v18  ;;  %v5661_v35 = vpop.f32.mrb[35].mxu0 }
 0x9ef   : > { %v4474_v10 = vsel %vm1622_vm7, %v4471_v34, -inf }
 0x9f0   : > { %4475 = vmax.xlane.f32.xlu0 %v4474_v10 }
 0x9f2   : > { %v3289_v36 = vpop.xlane.xlu0 %3288 }
 0x9f3   : > { %v3290_v37 = vsub.f32 %v3284_v59, %v3289_v36 }
 0x9f5   : > { %v3291_v38 = vmul.f32 1.442695, %v3290_v37 }
 0x9f7   : > { %5857 = vpow2.f32 %v3291_v38 }
 0x9fd   : > { %3462 = vrot.lane.b32.xlu1 %v6491_v1, %s5935_s16 }
 0xa01   : > { %v5858_v39 = vpop.eup %5857 }
 0xa02   : > { %v3293_v40 = vsel %vm1622_vm7, %v5858_v39, 0.0 }
 0xa21   : > { %3294 = vadd.xlane.f32.xlu1 %v3293_v40 }
 0xa32   : > { %3804 = vrot.lane.b32.xlu1 %v6491_v1, %s5940_s2 }
 0xa65   : > { %v3452_v41 = vpop.xlane.xlu1 %3451 }
 0xa66   : > { %v3453_v43 = vsub.f32 %v3447_v3, %v3452_v41 }
 0xa68   : > { %v3454_v44 = vmul.f32 1.442695, %v3453_v43 }
 0xa69   : > { %v3624_v45 = vpop.xlane.xlu0 %3623 }
 0xa6a   : > { %5859 = vpow2.f32 %v3454_v44  ;;  %v3625_v46 = vsub.f32 %v3619_v11, %v3624_v45 }
 0xa6c   : > { %v3626_v47 = vmul.f32 1.442695, %v3625_v46 }
 0xa6d   : > { %v3795_v51 = vpop.xlane.xlu0 %3794 }
 0xa6e   : > { %5861 = vpow2.f32 %v3626_v47  ;;  %v3796_v52 = vsub.f32 %v3790_v16, %v3795_v51 }
 0xa70   : > { %v3797_v56 = vmul.f32 1.442695, %v3796_v52 }
 0xa71   : > { %v3970_v53 = vpop.xlane.xlu1 %3969 }
 0xa72   : > { %v3971_v55 = vsub.f32 %v3965_v21, %v3970_v53  ;;  %5863 = vpow2.f32 %v3797_v56 }
 0xa74   : > { %v5860_v42 = vpop.eup %5859  ;;  %v3972_v60 = vmul.f32 1.442695, %v3971_v55 }
 0xa75   : > { %v3456_v48 = vsel %vm1622_vm7, %v5860_v42, 0.0  ;;  %v4133_v54 = vpop.xlane.xlu0 %4132 }
 0xa76   : > { %3457 = vadd.xlane.f32.xlu0 %v3456_v48  ;;  %v4134_v57 = vsub.f32 %v4128_v25, %v4133_v54  ;;  %5865 = vpow2.f32 %v3972_v60 }
 0xa78   : > { %v6508_v49 = vpop.eup %5861  ;;  %v4135_v9 = vmul.f32 1.442695, %v4134_v57 }
 0xa79   : > { %v3628_v50 = vsel %vm1622_vm7, %v6508_v49, 0.0  ;;  %v4305_v58 = vpop.xlane.xlu1 %4304 }
 0xa7a   : > { %3629 = vadd.xlane.f32.xlu1 %v3628_v50  ;;  %v4306_v61 = vsub.f32 %v4300_v30, %v4305_v58  ;;  %5867 = vpow2.f32 %v4135_v9  ;;  %v4571_v9 = vld [vmem:[%s6145_s10 + $0x8] sm:$0xff] }
 0xa7c   : > { %v4307_v0 = vmul.f32 1.442695, %v4306_v61  ;;  %v4570_v61 = vld [vmem:[%s6145_s10] sm:$0xff] }
 0xa7d   : > { %v4476_v59 = vpop.xlane.xlu0 %4475  ;;  %v3463_v5 = vpop.permute.xlu1 %3462 }
 0xa7e   : > { %v4477_v62 = vsub.f32 %v4471_v34, %v4476_v59  ;;  %5869 = vpow2.f32 %v4307_v0  ;;  %v5749_v0 = vpack.c.bf16 %v4571_v9, %v4570_v61  ;;  %v5311_v61 = vld [vmem:[%s1246_s24] ss:$0 sm:$0xff] }
 0xa80   : > { %v4478_v2 = vmul.f32 1.442695, %v4477_v62  ;;  %5750 = vmatpush3.bf16.msra.mxu0 %v5749_v0 }
 0xa81   : > { %5751 = vmatprep.subr.bf16.mxu0 %v5931_v4 }
 0xa82   : > { %5871 = vpow2.f32 %v4478_v2  ;;  %v4572_v2 = vld [vmem:[%s6145_s10 + $0x10] sm:$0xff] }
 0xa8b   : > { %4143 = vrot.lane.b32.xlu1 %v6489_v63, %s5935_s16 }
 0xa8c   : > { %3633 = vrot.lane.b32.xlu0 %v6491_v1, %s5938_s28  ;;  %v5864_v1 = vpop.eup %5863 }
 0xa8d   : > { %v6516_v3 = vpop.eup %5865  ;;  %v3799_v6 = vsel %vm1622_vm7, %v5864_v1, 0.0 }
 0xa8e   : > { %v6519_v8 = vpop.eup %5867  ;;  %v3974_v14 = vsel %vm1622_vm7, %v6516_v3, 0.0 }
 0xa8f   : > { %v6521_v11 = vpop.eup %5869  ;;  %v4137_v13 = vsel %vm1622_vm7, %v6519_v8, 0.0 }
 0xa90   : > { %v6527_v15 = vpop.eup %5871  ;;  %v4309_v17 = vsel %vm1622_vm7, %v6521_v11, 0.0 }
 0xa91   : > { %v4480_v16 = vsel %vm1622_vm7, %v6527_v15, 0.0 }
 0xaab   : > { %3800 = vadd.xlane.f32.xlu0 %v3799_v6 }
 0xaae   : > { %v3295_v12 = vpop.xlane.xlu1 %3294 }
 0xaaf   : > { %5873 = vrcp.f32 %v3295_v12  ;;  %4138 = vadd.xlane.f32.xlu0 %v4137_v13  ;;  %3975 = vadd.xlane.f32.xlu1 %v3974_v14 }
 0xab2   : > { %v3805_v20 = vpop.permute.xlu1 %3804 }
 0xab3   : > { %4481 = vadd.xlane.f32.xlu0 %v4480_v16  ;;  %4310 = vadd.xlane.f32.xlu1 %v4309_v17 }
 0xab9   : > { %v5874_v18 = vpop.eup %5873 }
 0xaba   : > { %v3297_v19 = vmul.f32 %v5874_v18, %v5858_v39 }
 0xabc   : > { %5595 = vmatmul.mubr.msk.f32.vlgmr.msra.gmra.mrb[24].mxu1 %vm1456_vm3, %v3297_v19 }
 0xabd   : > { %5603 = vmatpush3.msra.mxu1 %v3463_v5  ;;  %5604 = vmatprep.mubr.msk.f32.mxu1 %vm5932_vm1, %v5933_v7 }
 0xabe   : > { %5612 = vmatprep.subr.mxu1 %v5933_v7 }
 0xac4   : > { %4485 = vrot.lane.b32.xlu1 %v6489_v63, %s5940_s2 }
 0xac9   : > { %4314 = vrot.lane.b32.xlu0 %v6489_v63, %s5938_s28 }
 0xb03   : > { %v3458_v21 = vpop.xlane.xlu0 %3457 }
 0xb04   : > { %5875 = vrcp.f32 %v3458_v21 }
 0xb07   : > { %v3630_v22 = vpop.xlane.xlu1 %3629  ;;  %v3634_v25 = vpop.permute.xlu0 %3633 }
 0xb08   : > { %5877 = vrcp.f32 %v3630_v22  ;;  %v5305_v22 = vld [vmem:[%s1230_s14] ss:$0 sm:$0xff] }
 0xb0b   : > { %v4144_v29 = vpop.permute.xlu1 %4143 }
 0xb0e   : > { %v5876_v23 = vpop.eup %5875 }
 0xb0f   : > { %v3460_v24 = vmul.f32 %v5876_v23, %v5860_v42 }
 0xb11   : > { %5605 = vmatmul.mubr.msk.f32.vlgmr.msra.gmra.mrb[26].mxu1 %vm1456_vm3, %v3460_v24  ;;  %v3543_v35 = vadd.f32 %v3460_v24, %v3297_v19 }
 0xb12   : > { %v5878_v26 = vpop.eup %5877  ;;  %5613 = vmatpush3.msra.mxu1 %v3634_v25  ;;  %5614 = vmatprep.mubr.msk.f32.mxu1 %vm5932_vm1, %v5933_v7 }
 0xb13   : > { %v3632_v27 = vmul.f32 %v5878_v26, %v6508_v49  ;;  %5622 = vmatprep.subr.mxu1 %v5933_v7 }
 0xb15   : > { %5615 = vmatmul.mubr.msk.f32.vlgmr.msra.gmra.mrb[28].mxu1 %vm1456_vm3, %v3632_v27  ;;  %v3714_v36 = vadd.f32 %v3632_v27, %v3543_v35 }
 0xb16   : > { %5623 = vmatpush3.msra.mxu1 %v3805_v20  ;;  %5624 = vmatprep.mubr.msk.f32.mxu1 %vm5932_vm1, %v5933_v7 }
 0xb17   : > { %5632 = vmatprep.subr.mxu1 %v5933_v7 }
 0xb38   : > { %v3801_v30 = vpop.xlane.xlu0 %3800 }
 0xb39   : > { %5879 = vrcp.f32 %v3801_v30 }
 0xb3c   : > { %v4139_v31 = vpop.xlane.xlu0 %4138  ;;  %v3976_v32 = vpop.xlane.xlu1 %3975 }
 0xb3d   : > { %5881 = vrcp.f32 %v4139_v31 }
 0xb3e   : > { %5883 = vrcp.f32 %v3976_v32 }
 0xb40   : > { %v4482_v33 = vpop.xlane.xlu0 %4481  ;;  %v4311_v34 = vpop.xlane.xlu1 %4310 }
 0xb41   : > { %5885 = vrcp.f32 %v4482_v33  ;;  %v4684_v33 = vld [vmem:[%s6150_s19] sm:$0xff] }
 0xb42   : > { %5887 = vrcp.f32 %v4311_v34  ;;  %v4685_v34 = vld [vmem:[%s6150_s19 + $0x8] sm:$0xff] }
 0xb43   : > { %v5880_v10 = vpop.eup %5879  ;;  %v5755_v35 = vpack.c.bf16 %v4685_v34, %v4684_v33 }
 0xb44   : > { %v3803_v37 = vmul.f32 %v5880_v10, %v5864_v1  ;;  %v4315_v49 = vpop.permute.xlu0 %4314  ;;  %v4486_v52 = vpop.permute.xlu1 %4485  ;;  %v4573_v1 = vld [vmem:[%s6145_s10 + $0x18] sm:$0xff] }
 0xb45   : > { %v5752_v5 = vpack.c.bf16 %v4573_v1, %v4572_v2  ;;  %v4687_v10 = vld [vmem:[%s6150_s19 + $0x18] sm:$0xff] }
 0xb46   : > { %v3885_v38 = vadd.f32 %v3803_v37, %v3714_v36  ;;  %5625 = vmatmul.mubr.msk.f32.vlgmr.msra.gmra.mrb[30].mxu1 %vm1456_vm3, %v3803_v37  ;;  %v4769_v37 = vld [vmem:[%s6156_s21] sm:$0xff] }
 0xb47   : > { %v5882_v39 = vpop.eup %5881  ;;  %5633 = vmatpush3.msra.mxu1 %v6489_v63  ;;  %5634 = vmatprep.mubr.msk.f32.mxu1 %vm5932_vm1, %v5933_v7 }
 0xb48   : > { %v5884_v40 = vpop.eup %5883  ;;  %v3886_v41 = vmul.f32 0.25, %v3885_v38  ;;  %5642 = vmatprep.subr.mxu1 %v5933_v7  ;;  %v4141_v43 = vmul.f32 %v5882_v39, %v6519_v8  ;;  %5753 = vmatpush3.bf16.msra.mxu0 %v5752_v5  ;;  %v4770_v38 = vld [vmem:[%s6156_s21 + $0x8] sm:$0xff]  ;;  %v4771_v39 = vld [vmem:[%s6156_s21 + $0x10] sm:$0xff] }
 0xb49   : > { %v3978_v44 = vmul.f32 %v5884_v40, %v6516_v3  ;;  %5760 = vmatprep.subr.bf16.mxu0 %v5931_v4  ;;  %v5761_v40 = vpack.c.bf16 %v4770_v38, %v4769_v37 }
 0xb4a   : > { %3887 = vst.msk [vmem:[%s6174_s20] sm:$0xf] %vm1622_vm7, %v3886_v41  ;;  %v4772_v41 = vld [vmem:[%s6156_s21 + $0x18] sm:$0xff] }
 0xb4b   : > { %v5886_v45 = vpop.eup %5885  ;;  %5635 = vmatmul.mubr.msk.f32.vlgmr.msra.gmra.mrb[32].mxu1 %vm1456_vm3, %v3978_v44  ;;  %v4224_v63 = vadd.f32 %v4141_v43, %v3978_v44  ;;  %v4773_v44 = vld [vmem:[%s6156_s21 + $0x20] sm:$0xff] }
 0xb4c   : > { %v5888_v46 = vpop.eup %5887  ;;  %5643 = vmatpush3.msra.mxu1 %v4144_v29  ;;  %5644 = vmatprep.mubr.msk.f32.mxu1 %vm5932_vm1, %v5933_v7  ;;  %v4484_v42 = vmul.f32 %v5886_v45, %v6527_v15  ;;  %v4774_v45 = vld [vmem:[%s6156_s21 + $0x28] sm:$0xff] }
 0xb4d   : > { %v4313_v47 = vmul.f32 %v5888_v46, %v6521_v11  ;;  %5652 = vmatprep.subr.mxu1 %v5933_v7  ;;  %v5767_v46 = vpack.c.bf16 %v4774_v45, %v4773_v44 }
 0xb4f   : > { %v4395_v48 = vadd.f32 %v4313_v47, %v4224_v63  ;;  %5645 = vmatmul.mubr.msk.f32.vlgmr.msra.gmra.mrb[34].mxu1 %vm1456_vm3, %v4141_v43  ;;  %v5764_v43 = vpack.c.bf16 %v4772_v41, %v4771_v39 }
 0xb50   : > { %5653 = vmatpush3.msra.mxu1 %v4315_v49  ;;  %5654 = vmatprep.mubr.msk.f32.mxu1 %vm5932_vm1, %v5933_v7  ;;  %v5307_v49 = vld [vmem:[%s1255_s22] ss:$0 sm:$0xff] }
 0xb51   : > { %v4566_v50 = vadd.f32 %v4484_v42, %v4395_v48  ;;  %5662 = vmatprep.subr.mxu1 %v5933_v7 }
 0xb53   : > { %v4567_v51 = vmul.f32 0.25, %v4566_v50  ;;  %5655 = vmatmul.mubr.msk.f32.vlgmr.msra.gmra.mrb[36].mxu1 %vm1456_vm3, %v4313_v47 }
 0xb54   : > { %5663 = vmatpush3.msra.mxu1 %v4486_v52  ;;  %5664 = vmatprep.mubr.msk.f32.mxu1 %vm5932_vm1, %v5933_v7 }
 0xb55   : > { %4568 = vst.msk [vmem:[%s6174_s20 + $0x4] sm:$0xf] %vm1622_vm7, %v4567_v51  ;;  %5754 = vmatprep.subr.bf16.mxu1 %v5931_v4  ;;  %v5308_v51 = vld [vmem:[%s1258_s3] ss:$0 sm:$0xff] }
 0xb57   : > { %5665 = vmatmul.mubr.msk.f32.vlgmr.msra.gmra.mrb[38].mxu1 %vm1456_vm3, %v4484_v42 }
 0xb58   : > { %5686 = vmatprep.mubr.msk.f32.mxu1 %vm5932_vm1, %v5933_v7  ;;  %5756 = vmatpush3.bf16.msra.mxu1 %v5755_v35 }
 0xb59   : > { %5757 = vmatprep.subr.bf16.mxu1 %v5931_v4 }
 0xb8f   : > { %v3367_v53 = vpop.f32.mrb[24].mxu1 }
 0xb90   : > { %3371 = vst.msk [vmem:[#allocation2] sm:$0xf] %vm1622_vm7, %v3367_v53  ;;  %v5596_v54 = vpop.f32.mrb[25].mxu1 }
 0xb91   : > { %v4775_v54 = vld [vmem:[%s6156_s21 + $0x30] sm:$0xff] }
 0xbe4   : > { %v3534_v55 = vpop.f32.mrb[26].mxu1 }
 0xbe5   : > { %3539 = vrot.lane.b32.xlu0 %v3534_v55, %s5941_s8  ;;  %v5606_v56 = vpop.f32.mrb[27].mxu1 }
 0xbe6   : > { %v5309_v56 = vld [vmem:[%s1238_s9] ss:$0 sm:$0xff] }
 0xbe8   : > { %v3705_v57 = vpop.f32.mrb[28].mxu1 }
 0xbe9   : > { %3710 = vrot.lane.b32.xlu0 %v3705_v57, %s5942_s7  ;;  %v5616_v58 = vpop.f32.mrb[29].mxu1 }
 0xc19   : > { %v3876_v59 = vpop.f32.mrb[30].mxu1 }
 0xc1a   : > { %3881 = vrot.lane.b32.xlu0 %v3876_v59, %s5943_s15  ;;  %v5626_v60 = vpop.f32.mrb[31].mxu1 }
 0xc1e   : > { %v4048_v62 = vpop.f32.mrb[32].mxu1 }
 0xc1f   : > { %4052 = vst.msk [vmem:[#allocation2 + $0x4] sm:$0xf] %vm1622_vm7, %v4048_v62  ;;  %v5636_v3 = vpop.f32.mrb[33].mxu1 }
 0xc22   : > { %v4215_v6 = vpop.f32.mrb[34].mxu1 }
 0xc23   : > { %4220 = vrot.lane.b32.xlu1 %v4215_v6, %s5941_s8  ;;  %v5646_v8 = vpop.f32.mrb[35].mxu1 }
 0xc26   : > { %v4386_v11 = vpop.f32.mrb[36].mxu1 }
 0xc27   : > { %4391 = vrot.lane.b32.xlu1 %v4386_v11, %s5942_s7  ;;  %v5656_v12 = vpop.f32.mrb[37].mxu1 }
 0xc2a   : > { %v4557_v13 = vpop.f32.mrb[38].mxu1 }
 0xc2b   : > { %4562 = vrot.lane.b32.xlu1 %v4557_v13, %s5943_s15  ;;  %v5666_v14 = vpop.f32.mrb[39].mxu1 }
 0xc57   : > { %v3540_v15 = vpop.permute.xlu0 %3539 }
 0xc58   : > { %3542 = vst.msk [vmem:[#allocation2] sm:$0xf] %vm1794_vm8, %v3540_v15 }
 0xc5b   : > { %v3711_v16 = vpop.permute.xlu0 %3710 }
 0xc5c   : > { %3713 = vst.msk [vmem:[#allocation2] sm:$0xf] %vm1966_vm9, %v3711_v16  ;;  %v5313_v16 = vld [vmem:[%s1261_s6] ss:$0 sm:$0xff] }
 0xc8c   : > { %v3882_v17 = vpop.permute.xlu0 %3881 }
 0xc8d   : > { %3884 = vst.msk [vmem:[#allocation2] sm:$0xf] %vm2138_vm10, %v3882_v17 }
 0xc95   : > { %v4221_v18 = vpop.permute.xlu1 %4220 }
 0xc96   : > { %4223 = vst.msk [vmem:[#allocation2 + $0x4] sm:$0xf] %vm1794_vm8, %v4221_v18  ;;  %v5314_v18 = vld [vmem:[%s1264_s12] ss:$0 sm:$0xff] }
 0xc99   : > { %v4392_v19 = vpop.permute.xlu1 %4391 }
 0xc9a   : > { %4394 = vst.msk [vmem:[#allocation2 + $0x4] sm:$0xf] %vm1966_vm9, %v4392_v19 }
 0xc9d   : > { %v4563_v20 = vpop.permute.xlu1 %4562 }
 0xc9e   : > { %4565 = vst.msk [vmem:[#allocation2 + $0x4] sm:$0xf] %vm2138_vm10, %v4563_v20 }
 0xca5   : > { %v4569_v21 = vld [vmem:[#allocation2] sm:$0xff] }
 0xca6   : > { %5676 = vmatmul.mubr.msk.f32.vlgmr.msra.gmra.mrb[36].mxu0 %vm1294_vm2, %v4569_v21 }
 0xca7   : > { %5705 = vmatprep.mubr.msk.f32.mxu0 %vm5932_vm1, %v5933_v7  ;;  %5762 = vmatpush3.bf16.msra.mxu0 %v5761_v40 }
 0xca8   : > { %5763 = vmatprep.subr.bf16.mxu0 %v5931_v4 }
 0xcab   : > { %5765 = vmatpush3.bf16.msra.mxu0 %v5764_v43 }
 0xcac   : > { %5766 = vmatprep.subr.bf16.mxu0 %v5931_v4 }
 0xcaf   : > { %5768 = vmatpush3.bf16.msra.mxu0 %v5767_v46 }
 0xcb0   : > { %5769 = vmatprep.subr.bf16.mxu0 %v5931_v4  ;;  %v4776_v4 = vld [vmem:[%s6156_s21 + $0x38] sm:$0xff] }
 0xcb1   : > { %v5770_v55 = vpack.c.bf16 %v4776_v4, %v4775_v54 }
 0xcb3   : > { %5771 = vmatpush3.bf16.msra.mxu0 %v5770_v55 }
 0xd79   : > { %v4650_v23 = vpop.f32.mrb[36].mxu0 }
 0xd7a   : > { %v4651_v24 = vadd.f32 %v5305_v22, %v4650_v23  ;;  %v5677_v25 = vpop.f32.mrb[37].mxu0 }
 0xd7c   : > { %v4654_v26 = vadd.f32 %v4651_v24, %v6421_v28  ;;  %v4686_v28 = vld [vmem:[%s6150_s19 + $0x10] sm:$0xff] }
 0xd7d   : > { %v5758_v36 = vpack.c.bf16 %v4687_v10, %v4686_v28 }
 0xd7e   : > { %v4657_v27 = vsel %vm1294_vm2, %v4654_v26, 0.0 }
 0xd7f   : > { %4658 = vadd.xlane.f32.xlu0 %v4657_v27  ;;  %5759 = vmatpush3.bf16.msra.mxu1 %v5758_v36 }
 0xe0c   : > { %v4659_v29 = vpop.xlane.xlu0 %4658 }
 0xe0d   : > { %v4660_v30 = vmul.f32 0.03125, %v4659_v29 }
 0xe0f   : > { %v4661_v31 = vsub.f32 %v4654_v26, %v4660_v30 }
 0xe11   : > { %v4662_v32 = vmul.f32 %v4661_v31, %v4661_v31 }
 0xe13   : > { %v4663_v7 = vsel %vm1294_vm2, %v4662_v32, 0.0 }
 0xe14   : > { %4664 = vadd.xlane.f32.xlu1 %v4663_v7 }
 0xea1   : > { %v4665_v63 = vpop.xlane.xlu1 %4664 }
 0xea2   : > { %v4666_v47 = vmul.f32 0.03125, %v4665_v63 }
 0xea4   : > { %v4667_v42 = vadd.f32 1e-05, %v4666_v47 }
 0xea6   : > { %5889 = vrsqrt.f32 %v4667_v42 }
 0xeb0   : > { %v5890_v48 = vpop.eup %5889 }
 0xeb1   : > { %v4669_v50 = vmul.f32 %v5890_v48, %v4661_v31 }
 0xeb3   : > { %v4676_v52 = vmul.f32 %v5307_v49, %v4669_v50 }
 0xeb5   : > { %v4683_v53 = vadd.f32 %v5308_v51, %v4676_v52 }
 0xeb7   : > { %5687 = vmatmul.mubr.msk.f32.vlgmr.msra.gmra.mrb[40].mxu1 %vm1294_vm2, %v4683_v53 }
 0xf8a   : > { %v4764_v57 = vpop.f32.mrb[40].mxu1 }
 0xf8b   : > { %v4765_v58 = vadd.f32 %v5309_v56, %v4764_v57  ;;  %v5688_v59 = vpop.f32.mrb[41].mxu1 }
 0xf8d   : > { %v4768_v60 = vmax.f32 %v4765_v58, 0.0 }
 0xf8f   : > { %5706 = vmatmul.mubr.msk.f32.vlgmr.msra.gmra.mrb[38].mxu0 %vm4784_vm11, %v4768_v60 }
0x1062   : > { %v4854_v9 = vpop.f32.mrb[38].mxu0 }
0x1063   : > { %v4855_v62 = vadd.f32 %v5311_v61, %v4854_v9  ;;  %v5707_v0 = vpop.f32.mrb[39].mxu0 }
0x1065   : > { %v4858_v2 = vadd.f32 %v4855_v62, %v4683_v53 }
0x1067   : > { %v4861_v1 = vsel %vm1294_vm2, %v4858_v2, 0.0 }
0x1068   : > { %4862 = vadd.xlane.f32.xlu0 %v4861_v1 }
0x10f5   : > { %v4863_v3 = vpop.xlane.xlu0 %4862 }
0x10f6   : > { %v4864_v5 = vmul.f32 0.03125, %v4863_v3 }
0x10f8   : > { %v4865_v6 = vsub.f32 %v4858_v2, %v4864_v5 }
0x10fa   : > { %v4866_v8 = vmul.f32 %v4865_v6, %v4865_v6 }
0x10fc   : > { %v4867_v11 = vsel %vm1294_vm2, %v4866_v8, 0.0 }
0x10fd   : > { %4868 = vadd.xlane.f32.xlu0 %v4867_v11 }
0x118a   : > { %v4869_v12 = vpop.xlane.xlu0 %4868 }
0x118b   : > { %v4870_v13 = vmul.f32 0.03125, %v4869_v12 }
0x118d   : > { %v4871_v14 = vadd.f32 1e-05, %v4870_v13 }
0x118f   : > { %5891 = vrsqrt.f32 %v4871_v14 }
0x1199   : > { %v5892_v15 = vpop.eup %5891 }
0x119a   : > { %v4873_v17 = vmul.f32 %v5892_v15, %v4865_v6 }
0x119c   : > { %v4880_v19 = vmul.f32 %v5313_v16, %v4873_v17 }
0x119e   : > { %v4887_v20 = vadd.f32 %v5314_v18, %v4880_v19 }
0x11a0   : > { %4888 = vst.msk [vmem:[%s6721_s5] sm:$0xff] %vm1294_vm2, %v4887_v20 }
0x11a1 PF: > { %s6750_s9 = sld [smem:[#allocation30_spill]] }
0x11a7   : > { %s70_s7 = sadd.s32 1, %s6750_s9  }
0x11a8   : > { %p67_p5 = scmp.ge.s32.totalorder %s70_s7, 4  }
0x11aa   :  { %69 = sbr.rel (!%p67_p5) target bundleno = 65 (0x41), region = 272 }

</bundles_post_ra>
